<compile_context>
chip_gen: v7x
topology: tpu7x:2x2x1
jax: 0.10.0
libtpu: 0.0.40
codegen_flags: <defaults>
</compile_context>

<pallas_src>
import math

import jax
import jax.numpy as jnp
from jax.experimental import pallas as pl
from jax.experimental.pallas import tpu as pltpu


# ---------------------------------------------------------------------------
# In-kernel helpers
# ---------------------------------------------------------------------------

def _lrelu(h):
    return jnp.where(h >= 0, h, 0.2 * h)


def _layernorm_c(h, g, be, eps=1e-5):
    """LayerNorm over the channel (sublane) axis of an (C, T) tile."""
    mean = jnp.mean(h, axis=0, keepdims=True)
    hc = h - mean
    var = jnp.mean(hc * hc, axis=0, keepdims=True)
    return hc * jax.lax.rsqrt(var + eps) * g + be


def _conv_same(x, w, b, K, dil, pad, sh, max_off):
    """Dilated stride-1 'same' conv as K shifted MXU matmuls.

    x: (Cin, T) value.  w: (K, Cout, Cin) value.  b: (Cout, 1) or None.
    sh: (2*max_off+1, T, T) 0/1 shift matrices, sh[o+max_off][j, t] = (j==t+o).
    """
    if K == 1:
        y = jnp.dot(w[0], x, preferred_element_type=jnp.float32)
    else:
        y = None
        for kk in range(K):
            o = kk * dil - pad
            xs = x if o == 0 else jnp.dot(x, sh[o + max_off],
                                          preferred_element_type=jnp.float32)
            t = jnp.dot(w[kk], xs, preferred_element_type=jnp.float32)
            y = t if y is None else y + t
    return y if b is None else y + b


def _sigmoid(x):
    return 1.0 / (1.0 + jnp.exp(-x))


# ---------------------------------------------------------------------------
# Fused kernel builders
# ---------------------------------------------------------------------------

def _make_encoder_vq_kernel(plan, n_in, p_off, x_idx, sh_idx, cb_idx, max_off):
    def kernel(*refs):
        ins = refs[:n_in]
        zq_ref, loss_ref, cnt_ref = refs[n_in], refs[n_in + 1], refs[n_in + 2]
        sh = ins[sh_idx][...]
        h = ins[x_idx][...].astype(jnp.float32)                  # (C_in, T)

        for e in plan:
            kind = e[0]
            if kind == 'conv':
                _, wi, bi, K, dil, pad = e
                h = _conv_same(h, ins[p_off + wi][...], ins[p_off + bi][...],
                               K, dil, pad, sh, max_off)
            elif kind == 'res':   # Conv1d_Layernorm_LRelu_Residual
                _, wi, bi, gi, bei, L, K, dil, pad = e
                w = ins[p_off + wi][...]
                b = ins[p_off + bi][...]
                g = ins[p_off + gi][...]
                be = ins[p_off + bei][...]
                r = h
                for l in range(L):
                    r = _conv_same(r, w[l], b[l], K, dil, pad, sh, max_off)
                    r = _lrelu(_layernorm_c(r, g[l], be[l]))
                h = h + r
            else:                 # stage-end LeakyReLU(0.2)
                h = _lrelu(h)

        # --- VectorQuantizer (normalize=True, reduction='frame_mean') -------
        cb = ins[cb_idx][...].astype(jnp.float32)                # (N, D)
        en = cb * jax.lax.rsqrt(
            jnp.maximum(jnp.sum(cb * cb, axis=1, keepdims=True), 1e-24))
        zn = h * jax.lax.rsqrt(
            jnp.maximum(jnp.sum(h * h, axis=0, keepdims=True), 1e-24))
        dist = 2.0 - 2.0 * jnp.dot(en, zn, preferred_element_type=jnp.float32)
        mind = jnp.min(dist, axis=0, keepdims=True)
        Ncb = dist.shape[0]
        iota = jax.lax.broadcasted_iota(jnp.int32, dist.shape, 0).astype(jnp.float32)
        idx = jnp.min(jnp.where(dist <= mind, iota, float(Ncb)),
                      axis=0, keepdims=True)                     # first argmin
        onehot = (iota == idx).astype(jnp.float32)               # (N, T)
        zq = jax.lax.dot_general(en, onehot, (((0,), (0,)), ((), ())),
                                 preferred_element_type=jnp.float32)  # (D, T)
        zq_ref[...] = zq.astype(zq_ref.dtype)
        diff = zq - zn
        loss_ref[...] = jnp.sum(jnp.sum(diff * diff, axis=1, keepdims=True),
                                axis=0, keepdims=True)           # (1, 1)
        cnt_ref[...] = jnp.sum(onehot, axis=1, keepdims=True)    # (N, 1)
    return kernel


def _make_decoder_kernel(plan, fin, n_in, p_off, z_idx, c_idx, xin_idx, sh_idx,
                         max_off, skip_ch, n_layers):
    sqrt_half = math.sqrt(0.5)
    out_scale = math.sqrt(1.0 / n_layers)

    def kernel(*refs):
        ins = refs[:n_in]
        xhat_ref, sse_ref = refs[n_in], refs[n_in + 1]
        sh = ins[sh_idx][...]
        x = ins[z_idx][...].astype(jnp.float32)                  # (D, T)
        c = ins[c_idx][...].astype(jnp.float32)                  # (1, cond)
        T = x.shape[1]
        x_out = jnp.zeros((skip_ch, T), jnp.float32)

        for e in plan:
            if e[0] == 'convT':   # ConvTranspose1d(stride=1) == flipped conv
                _, wi, bi, K, pad = e
                x = _conv_same(x, ins[p_off + wi][...], ins[p_off + bi][...],
                               K, 1, pad, sh, max_off)
            else:                 # DeConv1d_Layernorm_GLU_ResSkip
                (_, wi, bi, wci, bci, gi, bei, wri, bri, wsi, bsi,
                 K, dil, pad, C) = e
                # time-constant cond conv -> per-channel bias, in-kernel
                cond_bias = (jnp.sum(ins[p_off + wci][...] * c,
                                     axis=1, keepdims=True)
                             + ins[p_off + bci][...])            # (2C, 1)
                h = _conv_same(x, ins[p_off + wi][...], None, K, dil, pad,
                               sh, max_off)
                h = h + ins[p_off + bi][...] + cond_bias
                h = _layernorm_c(h, ins[p_off + gi][...], ins[p_off + bei][...])
                h = h[:C, :] * _sigmoid(h[C:, :])                # GLU -> (C, T)
                x = (jnp.dot(ins[p_off + wri][...], h,
                             preferred_element_type=jnp.float32)
                     + ins[p_off + bri][...] + x) * sqrt_half
                x_out = (x_out
                         + jnp.dot(ins[p_off + wsi][...], h,
                                   preferred_element_type=jnp.float32)
                         + ins[p_off + bsi][...])

        # final: scale -> ReLU -> 1x1 -> ReLU -> 1x1 (fused) + log-loss SSE
        w1i, b1i, w2i, b2i = fin
        hh = jnp.maximum(x_out * out_scale, 0.0)
        hh = jnp.maximum(jnp.dot(ins[p_off + w1i][...], hh,
                                 preferred_element_type=jnp.float32)
                         + ins[p_off + b1i][...], 0.0)
        xhat = (jnp.dot(ins[p_off + w2i][...], hh,
                        preferred_element_type=jnp.float32)
                + ins[p_off + b2i][...])
        xhat_ref[...] = xhat.astype(xhat_ref.dtype)
        d = xhat - ins[xin_idx][...].astype(jnp.float32)
        sse_ref[...] = jnp.sum(jnp.sum(d * d, axis=1, keepdims=True),
                               axis=0, keepdims=True)            # (1, 1)
    return kernel


# ---------------------------------------------------------------------------
# pallas_call wrappers
# ---------------------------------------------------------------------------

def _full_spec(a):
    return pl.BlockSpec(a.shape, lambda i, n=a.ndim: (0,) * n)


def encoder_vq(x, codebook, shift_mats, enc_arrays, enc_plan, max_off):
    B, C_in, T = x.shape
    N, D = codebook.shape
    inputs = [x, shift_mats, codebook] + list(enc_arrays)
    in_specs = [pl.BlockSpec((None, C_in, T), lambda i: (i, 0, 0)),
                _full_spec(shift_mats), _full_spec(codebook)]
    in_specs += [_full_spec(a) for a in enc_arrays]
    kernel = _make_encoder_vq_kernel(enc_plan, len(inputs), 3, 0, 1, 2, max_off)
    return pl.pallas_call(
        kernel,
        out_shape=(jax.ShapeDtypeStruct((B, D, T), x.dtype),
                   jax.ShapeDtypeStruct((B, 1, 1), jnp.float32),
                   jax.ShapeDtypeStruct((B, N, 1), jnp.float32)),
        grid=(B,),
        in_specs=in_specs,
        out_specs=(pl.BlockSpec((None, D, T), lambda i: (i, 0, 0)),
                   pl.BlockSpec((None, 1, 1), lambda i: (i, 0, 0)),
                   pl.BlockSpec((None, N, 1), lambda i: (i, 0, 0))),
        compiler_params=pltpu.CompilerParams(dimension_semantics=("parallel",)),
    )(*inputs)


def decoder_loss(z_vq, c, x, shift_mats, dec_arrays, dec_plan, dec_fin,
                 n_layers, skip_ch, final_ch, max_off):
    B, D, T = z_vq.shape
    C_in = x.shape[1]
    cond = c.shape[2]
    inputs = [z_vq, c, x, shift_mats] + list(dec_arrays)
    in_specs = [pl.BlockSpec((None, D, T), lambda i: (i, 0, 0)),
                pl.BlockSpec((None, 1, cond), lambda i: (i, 0, 0)),
                pl.BlockSpec((None, C_in, T), lambda i: (i, 0, 0)),
                _full_spec(shift_mats)]
    in_specs += [_full_spec(a) for a in dec_arrays]
    kernel = _make_decoder_kernel(dec_plan, dec_fin, len(inputs), 4,
                                  0, 1, 2, 3, max_off, skip_ch, n_layers)
    return pl.pallas_call(
        kernel,
        out_shape=(jax.ShapeDtypeStruct((B, final_ch, T), x.dtype),
                   jax.ShapeDtypeStruct((B, 1, 1), jnp.float32)),
        grid=(B,),
        in_specs=in_specs,
        out_specs=(pl.BlockSpec((None, final_ch, T), lambda i: (i, 0, 0)),
                   pl.BlockSpec((None, 1, 1), lambda i: (i, 0, 0))),
        compiler_params=pltpu.CompilerParams(dimension_semantics=("parallel",)),
    )(*inputs)


# ---------------------------------------------------------------------------
# Parameter init (deterministic, synthetic; layouts hoisted to init time)
# ---------------------------------------------------------------------------

class KeyGen:
    def __init__(self, key):
        self._key = key

    def __call__(self):
        self._key, sub = jax.random.split(self._key)
        return sub


def _kaiming(key, shape, fan_in):
    return jax.random.normal(key, shape, jnp.float32) * math.sqrt(2.0 / fan_in)


def init_encoder(kg, cfg):
    arrays, plan = [], []

    def add(a):
        arrays.append(a)
        return len(arrays) - 1

    k = cfg['kernel_size']
    for in_c, out_c, ds, stack in zip(cfg['in_channels'], cfg['out_channels'],
                                      cfg['downsample_scales'], cfg['stacks']):
        assert ds == 1, "stride-1 only (matches default arch)"
        w = _kaiming(kg(), (out_c, in_c, k), in_c * k)
        plan.append(('conv', add(jnp.transpose(w, (2, 0, 1))),      # (K, out, in)
                     add(jnp.zeros((out_c, 1), jnp.float32)), k, 1, (k - 1) // 2))
        for j in range(stack):
            dil = 2 ** j if cfg['dilation'] else 1
            sk, L = cfg['stack_kernel_size'], cfg['stack_layers']
            ws = jnp.stack([jnp.transpose(
                _kaiming(kg(), (out_c, out_c, sk), out_c * sk), (2, 0, 1))
                for _ in range(L)])                                 # (L, K, C, C)
            plan.append(('res', add(ws),
                         add(jnp.zeros((L, out_c, 1), jnp.float32)),
                         add(jnp.ones((L, out_c, 1), jnp.float32)),
                         add(jnp.zeros((L, out_c, 1), jnp.float32)),
                         L, sk, dil, (sk - 1) // 2 * dil))
        plan.append(('lrelu',))
    w = _kaiming(kg(), (cfg['z_channels'], cfg['out_channels'][-1], 1),
                 cfg['out_channels'][-1])
    plan.append(('conv', add(jnp.transpose(w, (2, 0, 1))),
                 add(jnp.zeros((cfg['z_channels'], 1), jnp.float32)), 1, 1, 0))
    return arrays, plan


def init_decoder(kg, cfg):
    arrays, plan = [], []

    def add(a):
        arrays.append(a)
        return len(arrays) - 1

    k = cfg['kernel_size']
    n_layers = 0
    for in_c, out_c, us, stack in zip(cfg['in_channels'], cfg['out_channels'],
                                      cfg['upsample_scales'], cfg['stacks']):
        assert us == 1, "stride-1 only (matches default arch)"
        p = (k - 1) // 2
        # ConvTranspose1d(stride=1, padding=p) == Conv1d(flipped, transposed
        # kernel, padding K-1-p); flip/transpose hoisted to init.
        wT = _kaiming(kg(), (in_c, out_c, k), in_c * k)
        w_eq = jnp.flip(jnp.transpose(wT, (1, 0, 2)), axis=2)
        plan.append(('convT', add(jnp.transpose(w_eq, (2, 0, 1))),
                     add(jnp.zeros((out_c, 1), jnp.float32)), k, k - 1 - p))
        n_layers += 1
        for j in range(stack):
            dil = 2 ** j if cfg['dilation'] else 1
            sk = cfg['stack_kernel_size']
            C, S, cond = out_c, cfg['skip_channels'], cfg['cond_channels']
            w = _kaiming(kg(), (2 * C, C, sk), C * sk)
            plan.append(('resskip',
                         add(jnp.transpose(w, (2, 0, 1))),          # (K, 2C, C)
                         add(jnp.zeros((2 * C, 1), jnp.float32)),   # conv bias
                         add(_kaiming(kg(), (2 * C, cond), cond)),  # cond weight
                         add(jnp.zeros((2 * C, 1), jnp.float32)),   # cond bias
                         add(jnp.ones((2 * C, 1), jnp.float32)),    # LN gamma
                         add(jnp.zeros((2 * C, 1), jnp.float32)),   # LN beta
                         add(_kaiming(kg(), (C, C), C)),            # 1x1 res
                         add(jnp.zeros((C, 1), jnp.float32)),
                         add(_kaiming(kg(), (S, C), C)),            # 1x1 skip
                         add(jnp.zeros((S, 1), jnp.float32)),
                         sk, dil, (sk - 1) // 2 * dil, C))
            n_layers += 1
    S, F = cfg['skip_channels'], cfg['final_channels']
    fin = (add(_kaiming(kg(), (S, S), S)), add(jnp.zeros((S, 1), jnp.float32)),
           add(_kaiming(kg(), (F, S), S)), add(jnp.zeros((F, 1), jnp.float32)))
    return arrays, plan, fin, n_layers


def _max_offset(enc_cfg, dec_cfg):
    offs = [0]

    def conv_off(K, dil, pad):
        offs.extend(abs(kk * dil - pad) for kk in range(K))

    k = enc_cfg['kernel_size']
    conv_off(k, 1, (k - 1) // 2)
    for stack in enc_cfg['stacks']:
        for j in range(stack):
            dil = 2 ** j if enc_cfg['dilation'] else 1
            conv_off(enc_cfg['stack_kernel_size'], dil,
                     (enc_cfg['stack_kernel_size'] - 1) // 2 * dil)
    k = dec_cfg['kernel_size']
    conv_off(k, 1, k - 1 - (k - 1) // 2)
    for stack in dec_cfg['stacks']:
        for j in range(stack):
            dil = 2 ** j if dec_cfg['dilation'] else 1
            conv_off(dec_cfg['stack_kernel_size'], dil,
                     (dec_cfg['stack_kernel_size'] - 1) // 2 * dil)
    return max(offs)


def make_shift_mats(T, max_off):
    j = jnp.arange(T)[:, None]
    t = jnp.arange(T)[None, :]
    mats = [(j == (t + o)).astype(jnp.float32)
            for o in range(-max_off, max_off + 1)]
    return jnp.stack(mats)                                         # (2m+1, T, T)


# ---------------------------------------------------------------------------
# Model forward
# ---------------------------------------------------------------------------

def model_forward(params, x, y_idx, beta):
    B, C_in, T = x.shape
    # Conditions(y_num, y_dim, normalize=False): embedding lookup -> (B, 1, cond)
    c = params['embed_y'][y_idx]

    z_vq, loss_sums, counts = encoder_vq(
        x, params['codebook'], params['shift_mats'],
        params['enc_arrays'], params['enc_plan'], params['max_off'])

    denom = float(B * T)
    vq_loss = jnp.sum(loss_sums) / denom                 # 'frame_mean' reduction
    probs = jnp.sum(counts[:, :, 0], axis=0) / denom
    perplexity = jnp.exp(-jnp.sum(probs * jnp.log(probs + 1e-10)))
    # forward values of codebook (qut) loss and commitment (enc) loss coincide
    # TODO(synk): no straight-through estimator / custom VJP (forward only).
    # TODO(synk): Jitter(probability=0.0) is the identity; p>0 not implemented.

    xhat, sse = decoder_loss(
        z_vq, c, x, params['shift_mats'], params['dec_arrays'],
        params['dec_plan'], params['dec_fin'], params['dec_n_layers'],
        params['skip_channels'], params['final_channels'], params['max_off'])

    # TODO(synk): exact log_loss definition not in the reference; Gaussian NLL
    # with unit variance and frame-mean reduction assumed.
    x_loss = 0.5 * (jnp.sum(sse) / denom + C_in * math.log(2.0 * math.pi))
    loss = x_loss + vq_loss + beta * vq_loss
    return xhat, loss, x_loss, vq_loss, perplexity


# ---------------------------------------------------------------------------
# Main
# ---------------------------------------------------------------------------

if __name__ == "__main__":
    # Small synthetic arch (channels shrunk from the defaults; same topology).
    # use_weight_norm omitted: at init weight_norm is a forward-identity reparam.
    arch = {
        'encoder': dict(in_channels=[12, 24], out_channels=[24, 16],
                        downsample_scales=[1, 1], kernel_size=3, z_channels=8,
                        dilation=True, stack_kernel_size=3, stack_layers=2,
                        stacks=[2, 1], use_weight_norm=False, use_causal_conv=False),
        'decoder': dict(in_channels=[8, 16], out_channels=[16, 24],
                        upsample_scales=[1, 1], cond_channels=8, skip_channels=8,
                        final_channels=12, kernel_size=3, dilation=True,
                        stack_kernel_size=3, stacks=[1, 1],
                        use_weight_norm=False, use_causal_conv=False),
        'z_num': 16, 'z_dim': 8, 'y_num': 4, 'y_dim': 8,
        'embed_norm': True, 'jitter_p': 0.0, 'beta': 0.01, 'use_ema': False,
    }

    B, C_in, T = 2, arch['encoder']['in_channels'][0], 16

    kg = KeyGen(jax.random.PRNGKey(0))
    enc_arrays, enc_plan = init_encoder(kg, arch['encoder'])
    dec_arrays, dec_plan, dec_fin, dec_n_layers = init_decoder(kg, arch['decoder'])
    max_off = _max_offset(arch['encoder'], arch['decoder'])

    params = dict(
        enc_arrays=enc_arrays, enc_plan=enc_plan,
        dec_arrays=dec_arrays, dec_plan=dec_plan, dec_fin=dec_fin,
        dec_n_layers=dec_n_layers,
        skip_channels=arch['decoder']['skip_channels'],
        final_channels=arch['decoder']['final_channels'],
        codebook=jax.random.normal(kg(), (arch['z_num'], arch['z_dim']), jnp.float32),
        embed_y=jax.random.normal(kg(), (arch['y_num'], arch['y_dim']), jnp.float32),
        shift_mats=make_shift_mats(T, max_off),
        max_off=max_off,
    )

    x = jax.random.normal(kg(), (B, C_in, T), jnp.float32)
    y_idx = jax.random.randint(kg(), (B, 1), 0, arch['y_num'])

    fwd = jax.jit(lambda xx, yy: model_forward(params, xx, yy, arch['beta']))
    xhat, loss, x_loss, vq_loss, ppl = fwd(x, y_idx)
    jax.block_until_ready((xhat, loss))

    assert xhat.shape == (B, arch['decoder']['final_channels'], T)
    vals = [float(loss), float(x_loss), float(vq_loss), float(ppl)]
    assert all(math.isfinite(v) for v in vals)
    print("KERNEL_OK")
</pallas_src>

<mosaic_0001>
module attributes {stable_mosaic.version = 11 : i64} {
  func.func @kernel(%arg0: i32, %arg1: memref<1x12x16xf32, #tpu.memory_space<vmem>>, %arg2: memref<5x16x16xf32, #tpu.memory_space<vmem>>, %arg3: memref<16x8xf32, #tpu.memory_space<vmem>>, %arg4: memref<3x24x12xf32, #tpu.memory_space<vmem>>, %arg5: memref<24x1xf32, #tpu.memory_space<vmem>>, %arg6: memref<2x3x24x24xf32, #tpu.memory_space<vmem>>, %arg7: memref<2x24x1xf32, #tpu.memory_space<vmem>>, %arg8: memref<2x24x1xf32, #tpu.memory_space<vmem>>, %arg9: memref<2x24x1xf32, #tpu.memory_space<vmem>>, %arg10: memref<2x3x24x24xf32, #tpu.memory_space<vmem>>, %arg11: memref<2x24x1xf32, #tpu.memory_space<vmem>>, %arg12: memref<2x24x1xf32, #tpu.memory_space<vmem>>, %arg13: memref<2x24x1xf32, #tpu.memory_space<vmem>>, %arg14: memref<3x16x24xf32, #tpu.memory_space<vmem>>, %arg15: memref<16x1xf32, #tpu.memory_space<vmem>>, %arg16: memref<2x3x16x16xf32, #tpu.memory_space<vmem>>, %arg17: memref<2x16x1xf32, #tpu.memory_space<vmem>>, %arg18: memref<2x16x1xf32, #tpu.memory_space<vmem>>, %arg19: memref<2x16x1xf32, #tpu.memory_space<vmem>>, %arg20: memref<1x8x16xf32, #tpu.memory_space<vmem>>, %arg21: memref<8x1xf32, #tpu.memory_space<vmem>>, %arg22: memref<1x8x16xf32, #tpu.memory_space<vmem>>, %arg23: memref<1x1x1xf32, #tpu.memory_space<vmem>>, %arg24: memref<1x16x1xf32, #tpu.memory_space<vmem>>) attributes {dimension_semantics = [#tpu.dimension_semantics<parallel>], iteration_bounds = array<i64: 2>, scalar_prefetch = 0 : i64, scratch_operands = 0 : i64, tpu.core_type = #tpu.core_type<tc>, window_params = [{transform_indices = @transform_0, window_bounds = array<i64: 1, 12, 16>}, {pipeline_mode = #tpu.pipeline_mode<synchronous>, transform_indices = @transform_1, window_bounds = array<i64: 5, 16, 16>}, {pipeline_mode = #tpu.pipeline_mode<synchronous>, transform_indices = @transform_2, window_bounds = array<i64: 16, 8>}, {pipeline_mode = #tpu.pipeline_mode<synchronous>, transform_indices = @transform_3, window_bounds = array<i64: 3, 24, 12>}, {pipeline_mode = #tpu.pipeline_mode<synchronous>, transform_indices = @transform_4, window_bounds = array<i64: 24, 1>}, {pipeline_mode = #tpu.pipeline_mode<synchronous>, transform_indices = @transform_5, window_bounds = array<i64: 2, 3, 24, 24>}, {pipeline_mode = #tpu.pipeline_mode<synchronous>, transform_indices = @transform_6, window_bounds = array<i64: 2, 24, 1>}, {pipeline_mode = #tpu.pipeline_mode<synchronous>, transform_indices = @transform_7, window_bounds = array<i64: 2, 24, 1>}, {pipeline_mode = #tpu.pipeline_mode<synchronous>, transform_indices = @transform_8, window_bounds = array<i64: 2, 24, 1>}, {pipeline_mode = #tpu.pipeline_mode<synchronous>, transform_indices = @transform_9, window_bounds = array<i64: 2, 3, 24, 24>}, {pipeline_mode = #tpu.pipeline_mode<synchronous>, transform_indices = @transform_10, window_bounds = array<i64: 2, 24, 1>}, {pipeline_mode = #tpu.pipeline_mode<synchronous>, transform_indices = @transform_11, window_bounds = array<i64: 2, 24, 1>}, {pipeline_mode = #tpu.pipeline_mode<synchronous>, transform_indices = @transform_12, window_bounds = array<i64: 2, 24, 1>}, {pipeline_mode = #tpu.pipeline_mode<synchronous>, transform_indices = @transform_13, window_bounds = array<i64: 3, 16, 24>}, {pipeline_mode = #tpu.pipeline_mode<synchronous>, transform_indices = @transform_14, window_bounds = array<i64: 16, 1>}, {pipeline_mode = #tpu.pipeline_mode<synchronous>, transform_indices = @transform_15, window_bounds = array<i64: 2, 3, 16, 16>}, {pipeline_mode = #tpu.pipeline_mode<synchronous>, transform_indices = @transform_16, window_bounds = array<i64: 2, 16, 1>}, {pipeline_mode = #tpu.pipeline_mode<synchronous>, transform_indices = @transform_17, window_bounds = array<i64: 2, 16, 1>}, {pipeline_mode = #tpu.pipeline_mode<synchronous>, transform_indices = @transform_18, window_bounds = array<i64: 2, 16, 1>}, {pipeline_mode = #tpu.pipeline_mode<synchronous>, transform_indices = @transform_19, window_bounds = array<i64: 1, 8, 16>}, {pipeline_mode = #tpu.pipeline_mode<synchronous>, transform_indices = @transform_20, window_bounds = array<i64: 8, 1>}, {transform_indices = @transform_21, window_bounds = array<i64: 1, 8, 16>}, {transform_indices = @transform_22, window_bounds = array<i64: 1, 1, 1>}, {transform_indices = @transform_23, window_bounds = array<i64: 1, 16, 1>}]} {
    %c0 = arith.constant 0 : index
    %c0_0 = arith.constant 0 : index
    %c0_1 = arith.constant 0 : index
    %0 = vector.load %arg2[%c0, %c0_0, %c0_1] : memref<5x16x16xf32, #tpu.memory_space<vmem>>, vector<5x16x16xf32>
    %c0_2 = arith.constant 0 : index
    %c0_3 = arith.constant 0 : index
    %c0_4 = arith.constant 0 : index
    %1 = vector.load %arg1[%c0_2, %c0_3, %c0_4] : memref<1x12x16xf32, #tpu.memory_space<vmem>>, vector<1x12x16xf32>
    %2 = vector.shape_cast %1 : vector<1x12x16xf32> to vector<12x16xf32>
    %c0_5 = arith.constant 0 : index
    %c0_6 = arith.constant 0 : index
    %c0_7 = arith.constant 0 : index
    %3 = vector.load %arg4[%c0_5, %c0_6, %c0_7] : memref<3x24x12xf32, #tpu.memory_space<vmem>>, vector<3x24x12xf32>
    %c0_8 = arith.constant 0 : index
    %c0_9 = arith.constant 0 : index
    %4 = vector.load %arg5[%c0_8, %c0_9] : memref<24x1xf32, #tpu.memory_space<vmem>>, vector<24x1xf32>
    %5 = vector.extract_strided_slice %0 {offsets = [1, 0, 0], sizes = [1, 16, 16], strides = [1, 1, 1]} : vector<5x16x16xf32> to vector<1x16x16xf32>
    %6 = vector.shape_cast %5 : vector<1x16x16xf32> to vector<16x16xf32>
    %cst = arith.constant dense<0.000000e+00> : vector<12x16xf32>
    %7 = tpu.matmul %2, %6, %cst {dimension_numbers = #tpu.dot_dimension_numbers<[1], [0], [0], [1], [0, 0, 1, 1], [], []>} : vector<12x16xf32>, vector<16x16xf32>, vector<12x16xf32> -> vector<12x16xf32>
    %8 = vector.extract_strided_slice %3 {offsets = [0, 0, 0], sizes = [1, 24, 12], strides = [1, 1, 1]} : vector<3x24x12xf32> to vector<1x24x12xf32>
    %9 = vector.shape_cast %8 : vector<1x24x12xf32> to vector<24x12xf32>
    %cst_10 = arith.constant dense<0.000000e+00> : vector<24x16xf32>
    %10 = tpu.matmul %9, %7, %cst_10 {dimension_numbers = #tpu.dot_dimension_numbers<[1], [0], [0], [1], [0, 0, 1, 1], [], []>} : vector<24x12xf32>, vector<12x16xf32>, vector<24x16xf32> -> vector<24x16xf32>
    %11 = vector.extract_strided_slice %3 {offsets = [1, 0, 0], sizes = [1, 24, 12], strides = [1, 1, 1]} : vector<3x24x12xf32> to vector<1x24x12xf32>
    %12 = vector.shape_cast %11 : vector<1x24x12xf32> to vector<24x12xf32>
    %cst_11 = arith.constant dense<0.000000e+00> : vector<24x16xf32>
    %13 = tpu.matmul %12, %2, %cst_11 {dimension_numbers = #tpu.dot_dimension_numbers<[1], [0], [0], [1], [0, 0, 1, 1], [], []>} : vector<24x12xf32>, vector<12x16xf32>, vector<24x16xf32> -> vector<24x16xf32>
    %14 = arith.addf %10, %13 : vector<24x16xf32>
    %15 = vector.extract_strided_slice %0 {offsets = [3, 0, 0], sizes = [1, 16, 16], strides = [1, 1, 1]} : vector<5x16x16xf32> to vector<1x16x16xf32>
    %16 = vector.shape_cast %15 : vector<1x16x16xf32> to vector<16x16xf32>
    %cst_12 = arith.constant dense<0.000000e+00> : vector<12x16xf32>
    %17 = tpu.matmul %2, %16, %cst_12 {dimension_numbers = #tpu.dot_dimension_numbers<[1], [0], [0], [1], [0, 0, 1, 1], [], []>} : vector<12x16xf32>, vector<16x16xf32>, vector<12x16xf32> -> vector<12x16xf32>
    %18 = vector.extract_strided_slice %3 {offsets = [2, 0, 0], sizes = [1, 24, 12], strides = [1, 1, 1]} : vector<3x24x12xf32> to vector<1x24x12xf32>
    %19 = vector.shape_cast %18 : vector<1x24x12xf32> to vector<24x12xf32>
    %cst_13 = arith.constant dense<0.000000e+00> : vector<24x16xf32>
    %20 = tpu.matmul %19, %17, %cst_13 {dimension_numbers = #tpu.dot_dimension_numbers<[1], [0], [0], [1], [0, 0, 1, 1], [], []>} : vector<24x12xf32>, vector<12x16xf32>, vector<24x16xf32> -> vector<24x16xf32>
    %21 = arith.addf %14, %20 : vector<24x16xf32>
    %22 = vector.broadcast %4 : vector<24x1xf32> to vector<24x16xf32>
    %23 = arith.addf %21, %22 : vector<24x16xf32>
    %c0_14 = arith.constant 0 : index
    %c0_15 = arith.constant 0 : index
    %c0_16 = arith.constant 0 : index
    %c0_17 = arith.constant 0 : index
    %24 = vector.load %arg6[%c0_14, %c0_15, %c0_16, %c0_17] : memref<2x3x24x24xf32, #tpu.memory_space<vmem>>, vector<2x3x24x24xf32>
    %c0_18 = arith.constant 0 : index
    %c0_19 = arith.constant 0 : index
    %c0_20 = arith.constant 0 : index
    %25 = vector.load %arg7[%c0_18, %c0_19, %c0_20] : memref<2x24x1xf32, #tpu.memory_space<vmem>>, vector<2x24x1xf32>
    %c0_21 = arith.constant 0 : index
    %c0_22 = arith.constant 0 : index
    %c0_23 = arith.constant 0 : index
    %26 = vector.load %arg8[%c0_21, %c0_22, %c0_23] : memref<2x24x1xf32, #tpu.memory_space<vmem>>, vector<2x24x1xf32>
    %c0_24 = arith.constant 0 : index
    %c0_25 = arith.constant 0 : index
    %c0_26 = arith.constant 0 : index
    %27 = vector.load %arg9[%c0_24, %c0_25, %c0_26] : memref<2x24x1xf32, #tpu.memory_space<vmem>>, vector<2x24x1xf32>
    %28 = vector.extract_strided_slice %24 {offsets = [0, 0, 0, 0], sizes = [1, 3, 24, 24], strides = [1, 1, 1, 1]} : vector<2x3x24x24xf32> to vector<1x3x24x24xf32>
    %29 = vector.shape_cast %28 : vector<1x3x24x24xf32> to vector<3x24x24xf32>
    %30 = vector.extract_strided_slice %25 {offsets = [0, 0, 0], sizes = [1, 24, 1], strides = [1, 1, 1]} : vector<2x24x1xf32> to vector<1x24x1xf32>
    %31 = vector.shape_cast %30 : vector<1x24x1xf32> to vector<24x1xf32>
    %32 = vector.extract_strided_slice %0 {offsets = [1, 0, 0], sizes = [1, 16, 16], strides = [1, 1, 1]} : vector<5x16x16xf32> to vector<1x16x16xf32>
    %33 = vector.shape_cast %32 : vector<1x16x16xf32> to vector<16x16xf32>
    %cst_27 = arith.constant dense<0.000000e+00> : vector<24x16xf32>
    %34 = tpu.matmul %23, %33, %cst_27 {dimension_numbers = #tpu.dot_dimension_numbers<[1], [0], [0], [1], [0, 0, 1, 1], [], []>} : vector<24x16xf32>, vector<16x16xf32>, vector<24x16xf32> -> vector<24x16xf32>
    %35 = vector.extract_strided_slice %29 {offsets = [0, 0, 0], sizes = [1, 24, 24], strides = [1, 1, 1]} : vector<3x24x24xf32> to vector<1x24x24xf32>
    %36 = vector.shape_cast %35 : vector<1x24x24xf32> to vector<24x24xf32>
    %cst_28 = arith.constant dense<0.000000e+00> : vector<24x16xf32>
    %37 = tpu.matmul %36, %34, %cst_28 {dimension_numbers = #tpu.dot_dimension_numbers<[1], [0], [0], [1], [0, 0, 1, 1], [], []>} : vector<24x24xf32>, vector<24x16xf32>, vector<24x16xf32> -> vector<24x16xf32>
    %38 = vector.extract_strided_slice %29 {offsets = [1, 0, 0], sizes = [1, 24, 24], strides = [1, 1, 1]} : vector<3x24x24xf32> to vector<1x24x24xf32>
    %39 = vector.shape_cast %38 : vector<1x24x24xf32> to vector<24x24xf32>
    %cst_29 = arith.constant dense<0.000000e+00> : vector<24x16xf32>
    %40 = tpu.matmul %39, %23, %cst_29 {dimension_numbers = #tpu.dot_dimension_numbers<[1], [0], [0], [1], [0, 0, 1, 1], [], []>} : vector<24x24xf32>, vector<24x16xf32>, vector<24x16xf32> -> vector<24x16xf32>
    %41 = arith.addf %37, %40 : vector<24x16xf32>
    %42 = vector.extract_strided_slice %0 {offsets = [3, 0, 0], sizes = [1, 16, 16], strides = [1, 1, 1]} : vector<5x16x16xf32> to vector<1x16x16xf32>
    %43 = vector.shape_cast %42 : vector<1x16x16xf32> to vector<16x16xf32>
    %cst_30 = arith.constant dense<0.000000e+00> : vector<24x16xf32>
    %44 = tpu.matmul %23, %43, %cst_30 {dimension_numbers = #tpu.dot_dimension_numbers<[1], [0], [0], [1], [0, 0, 1, 1], [], []>} : vector<24x16xf32>, vector<16x16xf32>, vector<24x16xf32> -> vector<24x16xf32>
    %45 = vector.extract_strided_slice %29 {offsets = [2, 0, 0], sizes = [1, 24, 24], strides = [1, 1, 1]} : vector<3x24x24xf32> to vector<1x24x24xf32>
    %46 = vector.shape_cast %45 : vector<1x24x24xf32> to vector<24x24xf32>
    %cst_31 = arith.constant dense<0.000000e+00> : vector<24x16xf32>
    %47 = tpu.matmul %46, %44, %cst_31 {dimension_numbers = #tpu.dot_dimension_numbers<[1], [0], [0], [1], [0, 0, 1, 1], [], []>} : vector<24x24xf32>, vector<24x16xf32>, vector<24x16xf32> -> vector<24x16xf32>
    %48 = arith.addf %41, %47 : vector<24x16xf32>
    %49 = vector.broadcast %31 : vector<24x1xf32> to vector<24x16xf32>
    %50 = arith.addf %48, %49 : vector<24x16xf32>
    %51 = vector.extract_strided_slice %26 {offsets = [0, 0, 0], sizes = [1, 24, 1], strides = [1, 1, 1]} : vector<2x24x1xf32> to vector<1x24x1xf32>
    %52 = vector.shape_cast %51 : vector<1x24x1xf32> to vector<24x1xf32>
    %53 = vector.extract_strided_slice %27 {offsets = [0, 0, 0], sizes = [1, 24, 1], strides = [1, 1, 1]} : vector<2x24x1xf32> to vector<1x24x1xf32>
    %54 = vector.shape_cast %53 : vector<1x24x1xf32> to vector<24x1xf32>
    %cst_32 = arith.constant dense<0.000000e+00> : vector<16xf32>
    %55 = vector.multi_reduction <add>, %50, %cst_32 [0] : vector<24x16xf32> to vector<16xf32>
    %56 = vector.shape_cast %55 : vector<16xf32> to vector<1x16xf32>
    %cst_33 = arith.constant 2.400000e+01 : f32
    %57 = vector.broadcast %cst_33 : f32 to vector<1x16xf32>
    %58 = arith.divf %56, %57 : vector<1x16xf32>
    %59 = vector.broadcast %58 : vector<1x16xf32> to vector<24x16xf32>
    %60 = arith.subf %50, %59 : vector<24x16xf32>
    %61 = arith.mulf %60, %60 : vector<24x16xf32>
    %cst_34 = arith.constant dense<0.000000e+00> : vector<16xf32>
    %62 = vector.multi_reduction <add>, %61, %cst_34 [0] : vector<24x16xf32> to vector<16xf32>
    %63 = vector.shape_cast %62 : vector<16xf32> to vector<1x16xf32>
    %cst_35 = arith.constant 2.400000e+01 : f32
    %64 = vector.broadcast %cst_35 : f32 to vector<1x16xf32>
    %65 = arith.divf %63, %64 : vector<1x16xf32>
    %cst_36 = arith.constant 9.99999974E-6 : f32
    %66 = vector.broadcast %cst_36 : f32 to vector<1x16xf32>
    %67 = arith.addf %65, %66 : vector<1x16xf32>
    %68 = math.rsqrt %67 : vector<1x16xf32>
    %69 = vector.broadcast %68 : vector<1x16xf32> to vector<24x16xf32>
    %70 = arith.mulf %60, %69 : vector<24x16xf32>
    %71 = vector.broadcast %52 : vector<24x1xf32> to vector<24x16xf32>
    %72 = arith.mulf %70, %71 : vector<24x16xf32>
    %73 = vector.broadcast %54 : vector<24x1xf32> to vector<24x16xf32>
    %74 = arith.addf %72, %73 : vector<24x16xf32>
    %cst_37 = arith.constant 0.000000e+00 : f32
    %75 = vector.broadcast %cst_37 : f32 to vector<24x16xf32>
    %76 = arith.cmpf oge, %74, %75 : vector<24x16xf32>
    %cst_38 = arith.constant 2.000000e-01 : f32
    %77 = vector.broadcast %cst_38 : f32 to vector<24x16xf32>
    %78 = arith.mulf %77, %74 : vector<24x16xf32>
    %79 = arith.select %76, %74, %78 : vector<24x16xi1>, vector<24x16xf32>
    %80 = vector.extract_strided_slice %24 {offsets = [1, 0, 0, 0], sizes = [1, 3, 24, 24], strides = [1, 1, 1, 1]} : vector<2x3x24x24xf32> to vector<1x3x24x24xf32>
    %81 = vector.shape_cast %80 : vector<1x3x24x24xf32> to vector<3x24x24xf32>
    %82 = vector.extract_strided_slice %25 {offsets = [1, 0, 0], sizes = [1, 24, 1], strides = [1, 1, 1]} : vector<2x24x1xf32> to vector<1x24x1xf32>
    %83 = vector.shape_cast %82 : vector<1x24x1xf32> to vector<24x1xf32>
    %84 = vector.extract_strided_slice %0 {offsets = [1, 0, 0], sizes = [1, 16, 16], strides = [1, 1, 1]} : vector<5x16x16xf32> to vector<1x16x16xf32>
    %85 = vector.shape_cast %84 : vector<1x16x16xf32> to vector<16x16xf32>
    %cst_39 = arith.constant dense<0.000000e+00> : vector<24x16xf32>
    %86 = tpu.matmul %79, %85, %cst_39 {dimension_numbers = #tpu.dot_dimension_numbers<[1], [0], [0], [1], [0, 0, 1, 1], [], []>} : vector<24x16xf32>, vector<16x16xf32>, vector<24x16xf32> -> vector<24x16xf32>
    %87 = vector.extract_strided_slice %81 {offsets = [0, 0, 0], sizes = [1, 24, 24], strides = [1, 1, 1]} : vector<3x24x24xf32> to vector<1x24x24xf32>
    %88 = vector.shape_cast %87 : vector<1x24x24xf32> to vector<24x24xf32>
    %cst_40 = arith.constant dense<0.000000e+00> : vector<24x16xf32>
    %89 = tpu.matmul %88, %86, %cst_40 {dimension_numbers = #tpu.dot_dimension_numbers<[1], [0], [0], [1], [0, 0, 1, 1], [], []>} : vector<24x24xf32>, vector<24x16xf32>, vector<24x16xf32> -> vector<24x16xf32>
    %90 = vector.extract_strided_slice %81 {offsets = [1, 0, 0], sizes = [1, 24, 24], strides = [1, 1, 1]} : vector<3x24x24xf32> to vector<1x24x24xf32>
    %91 = vector.shape_cast %90 : vector<1x24x24xf32> to vector<24x24xf32>
    %cst_41 = arith.constant dense<0.000000e+00> : vector<24x16xf32>
    %92 = tpu.matmul %91, %79, %cst_41 {dimension_numbers = #tpu.dot_dimension_numbers<[1], [0], [0], [1], [0, 0, 1, 1], [], []>} : vector<24x24xf32>, vector<24x16xf32>, vector<24x16xf32> -> vector<24x16xf32>
    %93 = arith.addf %89, %92 : vector<24x16xf32>
    %94 = vector.extract_strided_slice %0 {offsets = [3, 0, 0], sizes = [1, 16, 16], strides = [1, 1, 1]} : vector<5x16x16xf32> to vector<1x16x16xf32>
    %95 = vector.shape_cast %94 : vector<1x16x16xf32> to vector<16x16xf32>
    %cst_42 = arith.constant dense<0.000000e+00> : vector<24x16xf32>
    %96 = tpu.matmul %79, %95, %cst_42 {dimension_numbers = #tpu.dot_dimension_numbers<[1], [0], [0], [1], [0, 0, 1, 1], [], []>} : vector<24x16xf32>, vector<16x16xf32>, vector<24x16xf32> -> vector<24x16xf32>
    %97 = vector.extract_strided_slice %81 {offsets = [2, 0, 0], sizes = [1, 24, 24], strides = [1, 1, 1]} : vector<3x24x24xf32> to vector<1x24x24xf32>
    %98 = vector.shape_cast %97 : vector<1x24x24xf32> to vector<24x24xf32>
    %cst_43 = arith.constant dense<0.000000e+00> : vector<24x16xf32>
    %99 = tpu.matmul %98, %96, %cst_43 {dimension_numbers = #tpu.dot_dimension_numbers<[1], [0], [0], [1], [0, 0, 1, 1], [], []>} : vector<24x24xf32>, vector<24x16xf32>, vector<24x16xf32> -> vector<24x16xf32>
    %100 = arith.addf %93, %99 : vector<24x16xf32>
    %101 = vector.broadcast %83 : vector<24x1xf32> to vector<24x16xf32>
    %102 = arith.addf %100, %101 : vector<24x16xf32>
    %103 = vector.extract_strided_slice %26 {offsets = [1, 0, 0], sizes = [1, 24, 1], strides = [1, 1, 1]} : vector<2x24x1xf32> to vector<1x24x1xf32>
    %104 = vector.shape_cast %103 : vector<1x24x1xf32> to vector<24x1xf32>
    %105 = vector.extract_strided_slice %27 {offsets = [1, 0, 0], sizes = [1, 24, 1], strides = [1, 1, 1]} : vector<2x24x1xf32> to vector<1x24x1xf32>
    %106 = vector.shape_cast %105 : vector<1x24x1xf32> to vector<24x1xf32>
    %cst_44 = arith.constant dense<0.000000e+00> : vector<16xf32>
    %107 = vector.multi_reduction <add>, %102, %cst_44 [0] : vector<24x16xf32> to vector<16xf32>
    %108 = vector.shape_cast %107 : vector<16xf32> to vector<1x16xf32>
    %cst_45 = arith.constant 2.400000e+01 : f32
    %109 = vector.broadcast %cst_45 : f32 to vector<1x16xf32>
    %110 = arith.divf %108, %109 : vector<1x16xf32>
    %111 = vector.broadcast %110 : vector<1x16xf32> to vector<24x16xf32>
    %112 = arith.subf %102, %111 : vector<24x16xf32>
    %113 = arith.mulf %112, %112 : vector<24x16xf32>
    %cst_46 = arith.constant dense<0.000000e+00> : vector<16xf32>
    %114 = vector.multi_reduction <add>, %113, %cst_46 [0] : vector<24x16xf32> to vector<16xf32>
    %115 = vector.shape_cast %114 : vector<16xf32> to vector<1x16xf32>
    %cst_47 = arith.constant 2.400000e+01 : f32
    %116 = vector.broadcast %cst_47 : f32 to vector<1x16xf32>
    %117 = arith.divf %115, %116 : vector<1x16xf32>
    %cst_48 = arith.constant 9.99999974E-6 : f32
    %118 = vector.broadcast %cst_48 : f32 to vector<1x16xf32>
    %119 = arith.addf %117, %118 : vector<1x16xf32>
    %120 = math.rsqrt %119 : vector<1x16xf32>
    %121 = vector.broadcast %120 : vector<1x16xf32> to vector<24x16xf32>
    %122 = arith.mulf %112, %121 : vector<24x16xf32>
    %123 = vector.broadcast %104 : vector<24x1xf32> to vector<24x16xf32>
    %124 = arith.mulf %122, %123 : vector<24x16xf32>
    %125 = vector.broadcast %106 : vector<24x1xf32> to vector<24x16xf32>
    %126 = arith.addf %124, %125 : vector<24x16xf32>
    %cst_49 = arith.constant 0.000000e+00 : f32
    %127 = vector.broadcast %cst_49 : f32 to vector<24x16xf32>
    %128 = arith.cmpf oge, %126, %127 : vector<24x16xf32>
    %cst_50 = arith.constant 2.000000e-01 : f32
    %129 = vector.broadcast %cst_50 : f32 to vector<24x16xf32>
    %130 = arith.mulf %129, %126 : vector<24x16xf32>
    %131 = arith.select %128, %126, %130 : vector<24x16xi1>, vector<24x16xf32>
    %132 = arith.addf %23, %131 : vector<24x16xf32>
    %c0_51 = arith.constant 0 : index
    %c0_52 = arith.constant 0 : index
    %c0_53 = arith.constant 0 : index
    %c0_54 = arith.constant 0 : index
    %133 = vector.load %arg10[%c0_51, %c0_52, %c0_53, %c0_54] : memref<2x3x24x24xf32, #tpu.memory_space<vmem>>, vector<2x3x24x24xf32>
    %c0_55 = arith.constant 0 : index
    %c0_56 = arith.constant 0 : index
    %c0_57 = arith.constant 0 : index
    %134 = vector.load %arg11[%c0_55, %c0_56, %c0_57] : memref<2x24x1xf32, #tpu.memory_space<vmem>>, vector<2x24x1xf32>
    %c0_58 = arith.constant 0 : index
    %c0_59 = arith.constant 0 : index
    %c0_60 = arith.constant 0 : index
    %135 = vector.load %arg12[%c0_58, %c0_59, %c0_60] : memref<2x24x1xf32, #tpu.memory_space<vmem>>, vector<2x24x1xf32>
    %c0_61 = arith.constant 0 : index
    %c0_62 = arith.constant 0 : index
    %c0_63 = arith.constant 0 : index
    %136 = vector.load %arg13[%c0_61, %c0_62, %c0_63] : memref<2x24x1xf32, #tpu.memory_space<vmem>>, vector<2x24x1xf32>
    %137 = vector.extract_strided_slice %133 {offsets = [0, 0, 0, 0], sizes = [1, 3, 24, 24], strides = [1, 1, 1, 1]} : vector<2x3x24x24xf32> to vector<1x3x24x24xf32>
    %138 = vector.shape_cast %137 : vector<1x3x24x24xf32> to vector<3x24x24xf32>
    %139 = vector.extract_strided_slice %134 {offsets = [0, 0, 0], sizes = [1, 24, 1], strides = [1, 1, 1]} : vector<2x24x1xf32> to vector<1x24x1xf32>
    %140 = vector.shape_cast %139 : vector<1x24x1xf32> to vector<24x1xf32>
    %141 = vector.extract_strided_slice %0 {offsets = [0, 0, 0], sizes = [1, 16, 16], strides = [1, 1, 1]} : vector<5x16x16xf32> to vector<1x16x16xf32>
    %142 = vector.shape_cast %141 : vector<1x16x16xf32> to vector<16x16xf32>
    %cst_64 = arith.constant dense<0.000000e+00> : vector<24x16xf32>
    %143 = tpu.matmul %132, %142, %cst_64 {dimension_numbers = #tpu.dot_dimension_numbers<[1], [0], [0], [1], [0, 0, 1, 1], [], []>} : vector<24x16xf32>, vector<16x16xf32>, vector<24x16xf32> -> vector<24x16xf32>
    %144 = vector.extract_strided_slice %138 {offsets = [0, 0, 0], sizes = [1, 24, 24], strides = [1, 1, 1]} : vector<3x24x24xf32> to vector<1x24x24xf32>
    %145 = vector.shape_cast %144 : vector<1x24x24xf32> to vector<24x24xf32>
    %cst_65 = arith.constant dense<0.000000e+00> : vector<24x16xf32>
    %146 = tpu.matmul %145, %143, %cst_65 {dimension_numbers = #tpu.dot_dimension_numbers<[1], [0], [0], [1], [0, 0, 1, 1], [], []>} : vector<24x24xf32>, vector<24x16xf32>, vector<24x16xf32> -> vector<24x16xf32>
    %147 = vector.extract_strided_slice %138 {offsets = [1, 0, 0], sizes = [1, 24, 24], strides = [1, 1, 1]} : vector<3x24x24xf32> to vector<1x24x24xf32>
    %148 = vector.shape_cast %147 : vector<1x24x24xf32> to vector<24x24xf32>
    %cst_66 = arith.constant dense<0.000000e+00> : vector<24x16xf32>
    %149 = tpu.matmul %148, %132, %cst_66 {dimension_numbers = #tpu.dot_dimension_numbers<[1], [0], [0], [1], [0, 0, 1, 1], [], []>} : vector<24x24xf32>, vector<24x16xf32>, vector<24x16xf32> -> vector<24x16xf32>
    %150 = arith.addf %146, %149 : vector<24x16xf32>
    %151 = vector.extract_strided_slice %0 {offsets = [4, 0, 0], sizes = [1, 16, 16], strides = [1, 1, 1]} : vector<5x16x16xf32> to vector<1x16x16xf32>
    %152 = vector.shape_cast %151 : vector<1x16x16xf32> to vector<16x16xf32>
    %cst_67 = arith.constant dense<0.000000e+00> : vector<24x16xf32>
    %153 = tpu.matmul %132, %152, %cst_67 {dimension_numbers = #tpu.dot_dimension_numbers<[1], [0], [0], [1], [0, 0, 1, 1], [], []>} : vector<24x16xf32>, vector<16x16xf32>, vector<24x16xf32> -> vector<24x16xf32>
    %154 = vector.extract_strided_slice %138 {offsets = [2, 0, 0], sizes = [1, 24, 24], strides = [1, 1, 1]} : vector<3x24x24xf32> to vector<1x24x24xf32>
    %155 = vector.shape_cast %154 : vector<1x24x24xf32> to vector<24x24xf32>
    %cst_68 = arith.constant dense<0.000000e+00> : vector<24x16xf32>
    %156 = tpu.matmul %155, %153, %cst_68 {dimension_numbers = #tpu.dot_dimension_numbers<[1], [0], [0], [1], [0, 0, 1, 1], [], []>} : vector<24x24xf32>, vector<24x16xf32>, vector<24x16xf32> -> vector<24x16xf32>
    %157 = arith.addf %150, %156 : vector<24x16xf32>
    %158 = vector.broadcast %140 : vector<24x1xf32> to vector<24x16xf32>
    %159 = arith.addf %157, %158 : vector<24x16xf32>
    %160 = vector.extract_strided_slice %135 {offsets = [0, 0, 0], sizes = [1, 24, 1], strides = [1, 1, 1]} : vector<2x24x1xf32> to vector<1x24x1xf32>
    %161 = vector.shape_cast %160 : vector<1x24x1xf32> to vector<24x1xf32>
    %162 = vector.extract_strided_slice %136 {offsets = [0, 0, 0], sizes = [1, 24, 1], strides = [1, 1, 1]} : vector<2x24x1xf32> to vector<1x24x1xf32>
    %163 = vector.shape_cast %162 : vector<1x24x1xf32> to vector<24x1xf32>
    %cst_69 = arith.constant dense<0.000000e+00> : vector<16xf32>
    %164 = vector.multi_reduction <add>, %159, %cst_69 [0] : vector<24x16xf32> to vector<16xf32>
    %165 = vector.shape_cast %164 : vector<16xf32> to vector<1x16xf32>
    %cst_70 = arith.constant 2.400000e+01 : f32
    %166 = vector.broadcast %cst_70 : f32 to vector<1x16xf32>
    %167 = arith.divf %165, %166 : vector<1x16xf32>
    %168 = vector.broadcast %167 : vector<1x16xf32> to vector<24x16xf32>
    %169 = arith.subf %159, %168 : vector<24x16xf32>
    %170 = arith.mulf %169, %169 : vector<24x16xf32>
    %cst_71 = arith.constant dense<0.000000e+00> : vector<16xf32>
    %171 = vector.multi_reduction <add>, %170, %cst_71 [0] : vector<24x16xf32> to vector<16xf32>
    %172 = vector.shape_cast %171 : vector<16xf32> to vector<1x16xf32>
    %cst_72 = arith.constant 2.400000e+01 : f32
    %173 = vector.broadcast %cst_72 : f32 to vector<1x16xf32>
    %174 = arith.divf %172, %173 : vector<1x16xf32>
    %cst_73 = arith.constant 9.99999974E-6 : f32
    %175 = vector.broadcast %cst_73 : f32 to vector<1x16xf32>
    %176 = arith.addf %174, %175 : vector<1x16xf32>
    %177 = math.rsqrt %176 : vector<1x16xf32>
    %178 = vector.broadcast %177 : vector<1x16xf32> to vector<24x16xf32>
    %179 = arith.mulf %169, %178 : vector<24x16xf32>
    %180 = vector.broadcast %161 : vector<24x1xf32> to vector<24x16xf32>
    %181 = arith.mulf %179, %180 : vector<24x16xf32>
    %182 = vector.broadcast %163 : vector<24x1xf32> to vector<24x16xf32>
    %183 = arith.addf %181, %182 : vector<24x16xf32>
    %cst_74 = arith.constant 0.000000e+00 : f32
    %184 = vector.broadcast %cst_74 : f32 to vector<24x16xf32>
    %185 = arith.cmpf oge, %183, %184 : vector<24x16xf32>
    %cst_75 = arith.constant 2.000000e-01 : f32
    %186 = vector.broadcast %cst_75 : f32 to vector<24x16xf32>
    %187 = arith.mulf %186, %183 : vector<24x16xf32>
    %188 = arith.select %185, %183, %187 : vector<24x16xi1>, vector<24x16xf32>
    %189 = vector.extract_strided_slice %133 {offsets = [1, 0, 0, 0], sizes = [1, 3, 24, 24], strides = [1, 1, 1, 1]} : vector<2x3x24x24xf32> to vector<1x3x24x24xf32>
    %190 = vector.shape_cast %189 : vector<1x3x24x24xf32> to vector<3x24x24xf32>
    %191 = vector.extract_strided_slice %134 {offsets = [1, 0, 0], sizes = [1, 24, 1], strides = [1, 1, 1]} : vector<2x24x1xf32> to vector<1x24x1xf32>
    %192 = vector.shape_cast %191 : vector<1x24x1xf32> to vector<24x1xf32>
    %193 = vector.extract_strided_slice %0 {offsets = [0, 0, 0], sizes = [1, 16, 16], strides = [1, 1, 1]} : vector<5x16x16xf32> to vector<1x16x16xf32>
    %194 = vector.shape_cast %193 : vector<1x16x16xf32> to vector<16x16xf32>
    %cst_76 = arith.constant dense<0.000000e+00> : vector<24x16xf32>
    %195 = tpu.matmul %188, %194, %cst_76 {dimension_numbers = #tpu.dot_dimension_numbers<[1], [0], [0], [1], [0, 0, 1, 1], [], []>} : vector<24x16xf32>, vector<16x16xf32>, vector<24x16xf32> -> vector<24x16xf32>
    %196 = vector.extract_strided_slice %190 {offsets = [0, 0, 0], sizes = [1, 24, 24], strides = [1, 1, 1]} : vector<3x24x24xf32> to vector<1x24x24xf32>
    %197 = vector.shape_cast %196 : vector<1x24x24xf32> to vector<24x24xf32>
    %cst_77 = arith.constant dense<0.000000e+00> : vector<24x16xf32>
    %198 = tpu.matmul %197, %195, %cst_77 {dimension_numbers = #tpu.dot_dimension_numbers<[1], [0], [0], [1], [0, 0, 1, 1], [], []>} : vector<24x24xf32>, vector<24x16xf32>, vector<24x16xf32> -> vector<24x16xf32>
    %199 = vector.extract_strided_slice %190 {offsets = [1, 0, 0], sizes = [1, 24, 24], strides = [1, 1, 1]} : vector<3x24x24xf32> to vector<1x24x24xf32>
    %200 = vector.shape_cast %199 : vector<1x24x24xf32> to vector<24x24xf32>
    %cst_78 = arith.constant dense<0.000000e+00> : vector<24x16xf32>
    %201 = tpu.matmul %200, %188, %cst_78 {dimension_numbers = #tpu.dot_dimension_numbers<[1], [0], [0], [1], [0, 0, 1, 1], [], []>} : vector<24x24xf32>, vector<24x16xf32>, vector<24x16xf32> -> vector<24x16xf32>
    %202 = arith.addf %198, %201 : vector<24x16xf32>
    %203 = vector.extract_strided_slice %0 {offsets = [4, 0, 0], sizes = [1, 16, 16], strides = [1, 1, 1]} : vector<5x16x16xf32> to vector<1x16x16xf32>
    %204 = vector.shape_cast %203 : vector<1x16x16xf32> to vector<16x16xf32>
    %cst_79 = arith.constant dense<0.000000e+00> : vector<24x16xf32>
    %205 = tpu.matmul %188, %204, %cst_79 {dimension_numbers = #tpu.dot_dimension_numbers<[1], [0], [0], [1], [0, 0, 1, 1], [], []>} : vector<24x16xf32>, vector<16x16xf32>, vector<24x16xf32> -> vector<24x16xf32>
    %206 = vector.extract_strided_slice %190 {offsets = [2, 0, 0], sizes = [1, 24, 24], strides = [1, 1, 1]} : vector<3x24x24xf32> to vector<1x24x24xf32>
    %207 = vector.shape_cast %206 : vector<1x24x24xf32> to vector<24x24xf32>
    %cst_80 = arith.constant dense<0.000000e+00> : vector<24x16xf32>
    %208 = tpu.matmul %207, %205, %cst_80 {dimension_numbers = #tpu.dot_dimension_numbers<[1], [0], [0], [1], [0, 0, 1, 1], [], []>} : vector<24x24xf32>, vector<24x16xf32>, vector<24x16xf32> -> vector<24x16xf32>
    %209 = arith.addf %202, %208 : vector<24x16xf32>
    %210 = vector.broadcast %192 : vector<24x1xf32> to vector<24x16xf32>
    %211 = arith.addf %209, %210 : vector<24x16xf32>
    %212 = vector.extract_strided_slice %135 {offsets = [1, 0, 0], sizes = [1, 24, 1], strides = [1, 1, 1]} : vector<2x24x1xf32> to vector<1x24x1xf32>
    %213 = vector.shape_cast %212 : vector<1x24x1xf32> to vector<24x1xf32>
    %214 = vector.extract_strided_slice %136 {offsets = [1, 0, 0], sizes = [1, 24, 1], strides = [1, 1, 1]} : vector<2x24x1xf32> to vector<1x24x1xf32>
    %215 = vector.shape_cast %214 : vector<1x24x1xf32> to vector<24x1xf32>
    %cst_81 = arith.constant dense<0.000000e+00> : vector<16xf32>
    %216 = vector.multi_reduction <add>, %211, %cst_81 [0] : vector<24x16xf32> to vector<16xf32>
    %217 = vector.shape_cast %216 : vector<16xf32> to vector<1x16xf32>
    %cst_82 = arith.constant 2.400000e+01 : f32
    %218 = vector.broadcast %cst_82 : f32 to vector<1x16xf32>
    %219 = arith.divf %217, %218 : vector<1x16xf32>
    %220 = vector.broadcast %219 : vector<1x16xf32> to vector<24x16xf32>
    %221 = arith.subf %211, %220 : vector<24x16xf32>
    %222 = arith.mulf %221, %221 : vector<24x16xf32>
    %cst_83 = arith.constant dense<0.000000e+00> : vector<16xf32>
    %223 = vector.multi_reduction <add>, %222, %cst_83 [0] : vector<24x16xf32> to vector<16xf32>
    %224 = vector.shape_cast %223 : vector<16xf32> to vector<1x16xf32>
    %cst_84 = arith.constant 2.400000e+01 : f32
    %225 = vector.broadcast %cst_84 : f32 to vector<1x16xf32>
    %226 = arith.divf %224, %225 : vector<1x16xf32>
    %cst_85 = arith.constant 9.99999974E-6 : f32
    %227 = vector.broadcast %cst_85 : f32 to vector<1x16xf32>
    %228 = arith.addf %226, %227 : vector<1x16xf32>
    %229 = math.rsqrt %228 : vector<1x16xf32>
    %230 = vector.broadcast %229 : vector<1x16xf32> to vector<24x16xf32>
    %231 = arith.mulf %221, %230 : vector<24x16xf32>
    %232 = vector.broadcast %213 : vector<24x1xf32> to vector<24x16xf32>
    %233 = arith.mulf %231, %232 : vector<24x16xf32>
    %234 = vector.broadcast %215 : vector<24x1xf32> to vector<24x16xf32>
    %235 = arith.addf %233, %234 : vector<24x16xf32>
    %cst_86 = arith.constant 0.000000e+00 : f32
    %236 = vector.broadcast %cst_86 : f32 to vector<24x16xf32>
    %237 = arith.cmpf oge, %235, %236 : vector<24x16xf32>
    %cst_87 = arith.constant 2.000000e-01 : f32
    %238 = vector.broadcast %cst_87 : f32 to vector<24x16xf32>
    %239 = arith.mulf %238, %235 : vector<24x16xf32>
    %240 = arith.select %237, %235, %239 : vector<24x16xi1>, vector<24x16xf32>
    %241 = arith.addf %132, %240 : vector<24x16xf32>
    %cst_88 = arith.constant 0.000000e+00 : f32
    %242 = vector.broadcast %cst_88 : f32 to vector<24x16xf32>
    %243 = arith.cmpf oge, %241, %242 : vector<24x16xf32>
    %cst_89 = arith.constant 2.000000e-01 : f32
    %244 = vector.broadcast %cst_89 : f32 to vector<24x16xf32>
    %245 = arith.mulf %244, %241 : vector<24x16xf32>
    %246 = arith.select %243, %241, %245 : vector<24x16xi1>, vector<24x16xf32>
    %c0_90 = arith.constant 0 : index
    %c0_91 = arith.constant 0 : index
    %c0_92 = arith.constant 0 : index
    %247 = vector.load %arg14[%c0_90, %c0_91, %c0_92] : memref<3x16x24xf32, #tpu.memory_space<vmem>>, vector<3x16x24xf32>
    %c0_93 = arith.constant 0 : index
    %c0_94 = arith.constant 0 : index
    %248 = vector.load %arg15[%c0_93, %c0_94] : memref<16x1xf32, #tpu.memory_space<vmem>>, vector<16x1xf32>
    %249 = vector.extract_strided_slice %0 {offsets = [1, 0, 0], sizes = [1, 16, 16], strides = [1, 1, 1]} : vector<5x16x16xf32> to vector<1x16x16xf32>
    %250 = vector.shape_cast %249 : vector<1x16x16xf32> to vector<16x16xf32>
    %cst_95 = arith.constant dense<0.000000e+00> : vector<24x16xf32>
    %251 = tpu.matmul %246, %250, %cst_95 {dimension_numbers = #tpu.dot_dimension_numbers<[1], [0], [0], [1], [0, 0, 1, 1], [], []>} : vector<24x16xf32>, vector<16x16xf32>, vector<24x16xf32> -> vector<24x16xf32>
    %252 = vector.extract_strided_slice %247 {offsets = [0, 0, 0], sizes = [1, 16, 24], strides = [1, 1, 1]} : vector<3x16x24xf32> to vector<1x16x24xf32>
    %253 = vector.shape_cast %252 : vector<1x16x24xf32> to vector<16x24xf32>
    %cst_96 = arith.constant dense<0.000000e+00> : vector<16x16xf32>
    %254 = tpu.matmul %253, %251, %cst_96 {dimension_numbers = #tpu.dot_dimension_numbers<[1], [0], [0], [1], [0, 0, 1, 1], [], []>} : vector<16x24xf32>, vector<24x16xf32>, vector<16x16xf32> -> vector<16x16xf32>
    %255 = vector.extract_strided_slice %247 {offsets = [1, 0, 0], sizes = [1, 16, 24], strides = [1, 1, 1]} : vector<3x16x24xf32> to vector<1x16x24xf32>
    %256 = vector.shape_cast %255 : vector<1x16x24xf32> to vector<16x24xf32>
    %cst_97 = arith.constant dense<0.000000e+00> : vector<16x16xf32>
    %257 = tpu.matmul %256, %246, %cst_97 {dimension_numbers = #tpu.dot_dimension_numbers<[1], [0], [0], [1], [0, 0, 1, 1], [], []>} : vector<16x24xf32>, vector<24x16xf32>, vector<16x16xf32> -> vector<16x16xf32>
    %258 = arith.addf %254, %257 : vector<16x16xf32>
    %259 = vector.extract_strided_slice %0 {offsets = [3, 0, 0], sizes = [1, 16, 16], strides = [1, 1, 1]} : vector<5x16x16xf32> to vector<1x16x16xf32>
    %260 = vector.shape_cast %259 : vector<1x16x16xf32> to vector<16x16xf32>
    %cst_98 = arith.constant dense<0.000000e+00> : vector<24x16xf32>
    %261 = tpu.matmul %246, %260, %cst_98 {dimension_numbers = #tpu.dot_dimension_numbers<[1], [0], [0], [1], [0, 0, 1, 1], [], []>} : vector<24x16xf32>, vector<16x16xf32>, vector<24x16xf32> -> vector<24x16xf32>
    %262 = vector.extract_strided_slice %247 {offsets = [2, 0, 0], sizes = [1, 16, 24], strides = [1, 1, 1]} : vector<3x16x24xf32> to vector<1x16x24xf32>
    %263 = vector.shape_cast %262 : vector<1x16x24xf32> to vector<16x24xf32>
    %cst_99 = arith.constant dense<0.000000e+00> : vector<16x16xf32>
    %264 = tpu.matmul %263, %261, %cst_99 {dimension_numbers = #tpu.dot_dimension_numbers<[1], [0], [0], [1], [0, 0, 1, 1], [], []>} : vector<16x24xf32>, vector<24x16xf32>, vector<16x16xf32> -> vector<16x16xf32>
    %265 = arith.addf %258, %264 : vector<16x16xf32>
    %266 = vector.broadcast %248 : vector<16x1xf32> to vector<16x16xf32>
    %267 = arith.addf %265, %266 : vector<16x16xf32>
    %c0_100 = arith.constant 0 : index
    %c0_101 = arith.constant 0 : index
    %c0_102 = arith.constant 0 : index
    %c0_103 = arith.constant 0 : index
    %268 = vector.load %arg16[%c0_100, %c0_101, %c0_102, %c0_103] : memref<2x3x16x16xf32, #tpu.memory_space<vmem>>, vector<2x3x16x16xf32>
    %c0_104 = arith.constant 0 : index
    %c0_105 = arith.constant 0 : index
    %c0_106 = arith.constant 0 : index
    %269 = vector.load %arg17[%c0_104, %c0_105, %c0_106] : memref<2x16x1xf32, #tpu.memory_space<vmem>>, vector<2x16x1xf32>
    %c0_107 = arith.constant 0 : index
    %c0_108 = arith.constant 0 : index
    %c0_109 = arith.constant 0 : index
    %270 = vector.load %arg18[%c0_107, %c0_108, %c0_109] : memref<2x16x1xf32, #tpu.memory_space<vmem>>, vector<2x16x1xf32>
    %c0_110 = arith.constant 0 : index
    %c0_111 = arith.constant 0 : index
    %c0_112 = arith.constant 0 : index
    %271 = vector.load %arg19[%c0_110, %c0_111, %c0_112] : memref<2x16x1xf32, #tpu.memory_space<vmem>>, vector<2x16x1xf32>
    %272 = vector.extract_strided_slice %268 {offsets = [0, 0, 0, 0], sizes = [1, 3, 16, 16], strides = [1, 1, 1, 1]} : vector<2x3x16x16xf32> to vector<1x3x16x16xf32>
    %273 = vector.shape_cast %272 : vector<1x3x16x16xf32> to vector<3x16x16xf32>
    %274 = vector.extract_strided_slice %269 {offsets = [0, 0, 0], sizes = [1, 16, 1], strides = [1, 1, 1]} : vector<2x16x1xf32> to vector<1x16x1xf32>
    %275 = vector.shape_cast %274 : vector<1x16x1xf32> to vector<16x1xf32>
    %276 = vector.extract_strided_slice %0 {offsets = [1, 0, 0], sizes = [1, 16, 16], strides = [1, 1, 1]} : vector<5x16x16xf32> to vector<1x16x16xf32>
    %277 = vector.shape_cast %276 : vector<1x16x16xf32> to vector<16x16xf32>
    %cst_113 = arith.constant dense<0.000000e+00> : vector<16x16xf32>
    %278 = tpu.matmul %267, %277, %cst_113 {dimension_numbers = #tpu.dot_dimension_numbers<[1], [0], [0], [1], [0, 0, 1, 1], [], []>} : vector<16x16xf32>, vector<16x16xf32>, vector<16x16xf32> -> vector<16x16xf32>
    %279 = vector.extract_strided_slice %273 {offsets = [0, 0, 0], sizes = [1, 16, 16], strides = [1, 1, 1]} : vector<3x16x16xf32> to vector<1x16x16xf32>
    %280 = vector.shape_cast %279 : vector<1x16x16xf32> to vector<16x16xf32>
    %cst_114 = arith.constant dense<0.000000e+00> : vector<16x16xf32>
    %281 = tpu.matmul %280, %278, %cst_114 {dimension_numbers = #tpu.dot_dimension_numbers<[1], [0], [0], [1], [0, 0, 1, 1], [], []>} : vector<16x16xf32>, vector<16x16xf32>, vector<16x16xf32> -> vector<16x16xf32>
    %282 = vector.extract_strided_slice %273 {offsets = [1, 0, 0], sizes = [1, 16, 16], strides = [1, 1, 1]} : vector<3x16x16xf32> to vector<1x16x16xf32>
    %283 = vector.shape_cast %282 : vector<1x16x16xf32> to vector<16x16xf32>
    %cst_115 = arith.constant dense<0.000000e+00> : vector<16x16xf32>
    %284 = tpu.matmul %283, %267, %cst_115 {dimension_numbers = #tpu.dot_dimension_numbers<[1], [0], [0], [1], [0, 0, 1, 1], [], []>} : vector<16x16xf32>, vector<16x16xf32>, vector<16x16xf32> -> vector<16x16xf32>
    %285 = arith.addf %281, %284 : vector<16x16xf32>
    %286 = vector.extract_strided_slice %0 {offsets = [3, 0, 0], sizes = [1, 16, 16], strides = [1, 1, 1]} : vector<5x16x16xf32> to vector<1x16x16xf32>
    %287 = vector.shape_cast %286 : vector<1x16x16xf32> to vector<16x16xf32>
    %cst_116 = arith.constant dense<0.000000e+00> : vector<16x16xf32>
    %288 = tpu.matmul %267, %287, %cst_116 {dimension_numbers = #tpu.dot_dimension_numbers<[1], [0], [0], [1], [0, 0, 1, 1], [], []>} : vector<16x16xf32>, vector<16x16xf32>, vector<16x16xf32> -> vector<16x16xf32>
    %289 = vector.extract_strided_slice %273 {offsets = [2, 0, 0], sizes = [1, 16, 16], strides = [1, 1, 1]} : vector<3x16x16xf32> to vector<1x16x16xf32>
    %290 = vector.shape_cast %289 : vector<1x16x16xf32> to vector<16x16xf32>
    %cst_117 = arith.constant dense<0.000000e+00> : vector<16x16xf32>
    %291 = tpu.matmul %290, %288, %cst_117 {dimension_numbers = #tpu.dot_dimension_numbers<[1], [0], [0], [1], [0, 0, 1, 1], [], []>} : vector<16x16xf32>, vector<16x16xf32>, vector<16x16xf32> -> vector<16x16xf32>
    %292 = arith.addf %285, %291 : vector<16x16xf32>
    %293 = vector.broadcast %275 : vector<16x1xf32> to vector<16x16xf32>
    %294 = arith.addf %292, %293 : vector<16x16xf32>
    %295 = vector.extract_strided_slice %270 {offsets = [0, 0, 0], sizes = [1, 16, 1], strides = [1, 1, 1]} : vector<2x16x1xf32> to vector<1x16x1xf32>
    %296 = vector.shape_cast %295 : vector<1x16x1xf32> to vector<16x1xf32>
    %297 = vector.extract_strided_slice %271 {offsets = [0, 0, 0], sizes = [1, 16, 1], strides = [1, 1, 1]} : vector<2x16x1xf32> to vector<1x16x1xf32>
    %298 = vector.shape_cast %297 : vector<1x16x1xf32> to vector<16x1xf32>
    %cst_118 = arith.constant dense<0.000000e+00> : vector<16xf32>
    %299 = vector.multi_reduction <add>, %294, %cst_118 [0] : vector<16x16xf32> to vector<16xf32>
    %300 = vector.shape_cast %299 : vector<16xf32> to vector<1x16xf32>
    %cst_119 = arith.constant 1.600000e+01 : f32
    %301 = vector.broadcast %cst_119 : f32 to vector<1x16xf32>
    %302 = arith.divf %300, %301 : vector<1x16xf32>
    %303 = vector.broadcast %302 : vector<1x16xf32> to vector<16x16xf32>
    %304 = arith.subf %294, %303 : vector<16x16xf32>
    %305 = arith.mulf %304, %304 : vector<16x16xf32>
    %cst_120 = arith.constant dense<0.000000e+00> : vector<16xf32>
    %306 = vector.multi_reduction <add>, %305, %cst_120 [0] : vector<16x16xf32> to vector<16xf32>
    %307 = vector.shape_cast %306 : vector<16xf32> to vector<1x16xf32>
    %cst_121 = arith.constant 1.600000e+01 : f32
    %308 = vector.broadcast %cst_121 : f32 to vector<1x16xf32>
    %309 = arith.divf %307, %308 : vector<1x16xf32>
    %cst_122 = arith.constant 9.99999974E-6 : f32
    %310 = vector.broadcast %cst_122 : f32 to vector<1x16xf32>
    %311 = arith.addf %309, %310 : vector<1x16xf32>
    %312 = math.rsqrt %311 : vector<1x16xf32>
    %313 = vector.broadcast %312 : vector<1x16xf32> to vector<16x16xf32>
    %314 = arith.mulf %304, %313 : vector<16x16xf32>
    %315 = vector.broadcast %296 : vector<16x1xf32> to vector<16x16xf32>
    %316 = arith.mulf %314, %315 : vector<16x16xf32>
    %317 = vector.broadcast %298 : vector<16x1xf32> to vector<16x16xf32>
    %318 = arith.addf %316, %317 : vector<16x16xf32>
    %cst_123 = arith.constant 0.000000e+00 : f32
    %319 = vector.broadcast %cst_123 : f32 to vector<16x16xf32>
    %320 = arith.cmpf oge, %318, %319 : vector<16x16xf32>
    %cst_124 = arith.constant 2.000000e-01 : f32
    %321 = vector.broadcast %cst_124 : f32 to vector<16x16xf32>
    %322 = arith.mulf %321, %318 : vector<16x16xf32>
    %323 = arith.select %320, %318, %322 : vector<16x16xi1>, vector<16x16xf32>
    %324 = vector.extract_strided_slice %268 {offsets = [1, 0, 0, 0], sizes = [1, 3, 16, 16], strides = [1, 1, 1, 1]} : vector<2x3x16x16xf32> to vector<1x3x16x16xf32>
    %325 = vector.shape_cast %324 : vector<1x3x16x16xf32> to vector<3x16x16xf32>
    %326 = vector.extract_strided_slice %269 {offsets = [1, 0, 0], sizes = [1, 16, 1], strides = [1, 1, 1]} : vector<2x16x1xf32> to vector<1x16x1xf32>
    %327 = vector.shape_cast %326 : vector<1x16x1xf32> to vector<16x1xf32>
    %328 = vector.extract_strided_slice %0 {offsets = [1, 0, 0], sizes = [1, 16, 16], strides = [1, 1, 1]} : vector<5x16x16xf32> to vector<1x16x16xf32>
    %329 = vector.shape_cast %328 : vector<1x16x16xf32> to vector<16x16xf32>
    %cst_125 = arith.constant dense<0.000000e+00> : vector<16x16xf32>
    %330 = tpu.matmul %323, %329, %cst_125 {dimension_numbers = #tpu.dot_dimension_numbers<[1], [0], [0], [1], [0, 0, 1, 1], [], []>} : vector<16x16xf32>, vector<16x16xf32>, vector<16x16xf32> -> vector<16x16xf32>
    %331 = vector.extract_strided_slice %325 {offsets = [0, 0, 0], sizes = [1, 16, 16], strides = [1, 1, 1]} : vector<3x16x16xf32> to vector<1x16x16xf32>
    %332 = vector.shape_cast %331 : vector<1x16x16xf32> to vector<16x16xf32>
    %cst_126 = arith.constant dense<0.000000e+00> : vector<16x16xf32>
    %333 = tpu.matmul %332, %330, %cst_126 {dimension_numbers = #tpu.dot_dimension_numbers<[1], [0], [0], [1], [0, 0, 1, 1], [], []>} : vector<16x16xf32>, vector<16x16xf32>, vector<16x16xf32> -> vector<16x16xf32>
    %334 = vector.extract_strided_slice %325 {offsets = [1, 0, 0], sizes = [1, 16, 16], strides = [1, 1, 1]} : vector<3x16x16xf32> to vector<1x16x16xf32>
    %335 = vector.shape_cast %334 : vector<1x16x16xf32> to vector<16x16xf32>
    %cst_127 = arith.constant dense<0.000000e+00> : vector<16x16xf32>
    %336 = tpu.matmul %335, %323, %cst_127 {dimension_numbers = #tpu.dot_dimension_numbers<[1], [0], [0], [1], [0, 0, 1, 1], [], []>} : vector<16x16xf32>, vector<16x16xf32>, vector<16x16xf32> -> vector<16x16xf32>
    %337 = arith.addf %333, %336 : vector<16x16xf32>
    %338 = vector.extract_strided_slice %0 {offsets = [3, 0, 0], sizes = [1, 16, 16], strides = [1, 1, 1]} : vector<5x16x16xf32> to vector<1x16x16xf32>
    %339 = vector.shape_cast %338 : vector<1x16x16xf32> to vector<16x16xf32>
    %cst_128 = arith.constant dense<0.000000e+00> : vector<16x16xf32>
    %340 = tpu.matmul %323, %339, %cst_128 {dimension_numbers = #tpu.dot_dimension_numbers<[1], [0], [0], [1], [0, 0, 1, 1], [], []>} : vector<16x16xf32>, vector<16x16xf32>, vector<16x16xf32> -> vector<16x16xf32>
    %341 = vector.extract_strided_slice %325 {offsets = [2, 0, 0], sizes = [1, 16, 16], strides = [1, 1, 1]} : vector<3x16x16xf32> to vector<1x16x16xf32>
    %342 = vector.shape_cast %341 : vector<1x16x16xf32> to vector<16x16xf32>
    %cst_129 = arith.constant dense<0.000000e+00> : vector<16x16xf32>
    %343 = tpu.matmul %342, %340, %cst_129 {dimension_numbers = #tpu.dot_dimension_numbers<[1], [0], [0], [1], [0, 0, 1, 1], [], []>} : vector<16x16xf32>, vector<16x16xf32>, vector<16x16xf32> -> vector<16x16xf32>
    %344 = arith.addf %337, %343 : vector<16x16xf32>
    %345 = vector.broadcast %327 : vector<16x1xf32> to vector<16x16xf32>
    %346 = arith.addf %344, %345 : vector<16x16xf32>
    %347 = vector.extract_strided_slice %270 {offsets = [1, 0, 0], sizes = [1, 16, 1], strides = [1, 1, 1]} : vector<2x16x1xf32> to vector<1x16x1xf32>
    %348 = vector.shape_cast %347 : vector<1x16x1xf32> to vector<16x1xf32>
    %349 = vector.extract_strided_slice %271 {offsets = [1, 0, 0], sizes = [1, 16, 1], strides = [1, 1, 1]} : vector<2x16x1xf32> to vector<1x16x1xf32>
    %350 = vector.shape_cast %349 : vector<1x16x1xf32> to vector<16x1xf32>
    %cst_130 = arith.constant dense<0.000000e+00> : vector<16xf32>
    %351 = vector.multi_reduction <add>, %346, %cst_130 [0] : vector<16x16xf32> to vector<16xf32>
    %352 = vector.shape_cast %351 : vector<16xf32> to vector<1x16xf32>
    %cst_131 = arith.constant 1.600000e+01 : f32
    %353 = vector.broadcast %cst_131 : f32 to vector<1x16xf32>
    %354 = arith.divf %352, %353 : vector<1x16xf32>
    %355 = vector.broadcast %354 : vector<1x16xf32> to vector<16x16xf32>
    %356 = arith.subf %346, %355 : vector<16x16xf32>
    %357 = arith.mulf %356, %356 : vector<16x16xf32>
    %cst_132 = arith.constant dense<0.000000e+00> : vector<16xf32>
    %358 = vector.multi_reduction <add>, %357, %cst_132 [0] : vector<16x16xf32> to vector<16xf32>
    %359 = vector.shape_cast %358 : vector<16xf32> to vector<1x16xf32>
    %cst_133 = arith.constant 1.600000e+01 : f32
    %360 = vector.broadcast %cst_133 : f32 to vector<1x16xf32>
    %361 = arith.divf %359, %360 : vector<1x16xf32>
    %cst_134 = arith.constant 9.99999974E-6 : f32
    %362 = vector.broadcast %cst_134 : f32 to vector<1x16xf32>
    %363 = arith.addf %361, %362 : vector<1x16xf32>
    %364 = math.rsqrt %363 : vector<1x16xf32>
    %365 = vector.broadcast %364 : vector<1x16xf32> to vector<16x16xf32>
    %366 = arith.mulf %356, %365 : vector<16x16xf32>
    %367 = vector.broadcast %348 : vector<16x1xf32> to vector<16x16xf32>
    %368 = arith.mulf %366, %367 : vector<16x16xf32>
    %369 = vector.broadcast %350 : vector<16x1xf32> to vector<16x16xf32>
    %370 = arith.addf %368, %369 : vector<16x16xf32>
    %cst_135 = arith.constant 0.000000e+00 : f32
    %371 = vector.broadcast %cst_135 : f32 to vector<16x16xf32>
    %372 = arith.cmpf oge, %370, %371 : vector<16x16xf32>
    %cst_136 = arith.constant 2.000000e-01 : f32
    %373 = vector.broadcast %cst_136 : f32 to vector<16x16xf32>
    %374 = arith.mulf %373, %370 : vector<16x16xf32>
    %375 = arith.select %372, %370, %374 : vector<16x16xi1>, vector<16x16xf32>
    %376 = arith.addf %267, %375 : vector<16x16xf32>
    %cst_137 = arith.constant 0.000000e+00 : f32
    %377 = vector.broadcast %cst_137 : f32 to vector<16x16xf32>
    %378 = arith.cmpf oge, %376, %377 : vector<16x16xf32>
    %cst_138 = arith.constant 2.000000e-01 : f32
    %379 = vector.broadcast %cst_138 : f32 to vector<16x16xf32>
    %380 = arith.mulf %379, %376 : vector<16x16xf32>
    %381 = arith.select %378, %376, %380 : vector<16x16xi1>, vector<16x16xf32>
    %c0_139 = arith.constant 0 : index
    %c0_140 = arith.constant 0 : index
    %c0_141 = arith.constant 0 : index
    %382 = vector.load %arg20[%c0_139, %c0_140, %c0_141] : memref<1x8x16xf32, #tpu.memory_space<vmem>>, vector<1x8x16xf32>
    %c0_142 = arith.constant 0 : index
    %c0_143 = arith.constant 0 : index
    %383 = vector.load %arg21[%c0_142, %c0_143] : memref<8x1xf32, #tpu.memory_space<vmem>>, vector<8x1xf32>
    %384 = vector.shape_cast %382 : vector<1x8x16xf32> to vector<8x16xf32>
    %cst_144 = arith.constant dense<0.000000e+00> : vector<8x16xf32>
    %385 = tpu.matmul %384, %381, %cst_144 {dimension_numbers = #tpu.dot_dimension_numbers<[1], [0], [0], [1], [0, 0, 1, 1], [], []>} : vector<8x16xf32>, vector<16x16xf32>, vector<8x16xf32> -> vector<8x16xf32>
    %386 = vector.broadcast %383 : vector<8x1xf32> to vector<8x16xf32>
    %387 = arith.addf %385, %386 : vector<8x16xf32>
    %c0_145 = arith.constant 0 : index
    %c0_146 = arith.constant 0 : index
    %388 = vector.load %arg3[%c0_145, %c0_146] : memref<16x8xf32, #tpu.memory_space<vmem>>, vector<16x8xf32>
    %389 = arith.mulf %388, %388 : vector<16x8xf32>
    %cst_147 = arith.constant dense<0.000000e+00> : vector<16xf32>
    %390 = vector.multi_reduction <add>, %389, %cst_147 [1] : vector<16x8xf32> to vector<16xf32>
    %391 = vector.shape_cast %390 : vector<16xf32> to vector<16x1xf32>
    %cst_148 = arith.constant 1.000000e-24 : f32
    %392 = vector.broadcast %cst_148 : f32 to vector<16x1xf32>
    %393 = arith.maximumf %391, %392 : vector<16x1xf32>
    %394 = math.rsqrt %393 : vector<16x1xf32>
    %395 = vector.broadcast %394 : vector<16x1xf32> to vector<16x8xf32>
    %396 = arith.mulf %388, %395 : vector<16x8xf32>
    %397 = arith.mulf %387, %387 : vector<8x16xf32>
    %cst_149 = arith.constant dense<0.000000e+00> : vector<16xf32>
    %398 = vector.multi_reduction <add>, %397, %cst_149 [0] : vector<8x16xf32> to vector<16xf32>
    %399 = vector.shape_cast %398 : vector<16xf32> to vector<1x16xf32>
    %cst_150 = arith.constant 1.000000e-24 : f32
    %400 = vector.broadcast %cst_150 : f32 to vector<1x16xf32>
    %401 = arith.maximumf %399, %400 : vector<1x16xf32>
    %402 = math.rsqrt %401 : vector<1x16xf32>
    %403 = vector.broadcast %402 : vector<1x16xf32> to vector<8x16xf32>
    %404 = arith.mulf %387, %403 : vector<8x16xf32>
    %cst_151 = arith.constant dense<0.000000e+00> : vector<16x16xf32>
    %405 = tpu.matmul %396, %404, %cst_151 {dimension_numbers = #tpu.dot_dimension_numbers<[1], [0], [0], [1], [0, 0, 1, 1], [], []>} : vector<16x8xf32>, vector<8x16xf32>, vector<16x16xf32> -> vector<16x16xf32>
    %cst_152 = arith.constant 2.000000e+00 : f32
    %406 = vector.broadcast %cst_152 : f32 to vector<16x16xf32>
    %407 = arith.mulf %406, %405 : vector<16x16xf32>
    %cst_153 = arith.constant 2.000000e+00 : f32
    %408 = vector.broadcast %cst_153 : f32 to vector<16x16xf32>
    %409 = arith.subf %408, %407 : vector<16x16xf32>
    %cst_154 = arith.constant dense<0x7F800000> : vector<16xf32>
    %410 = vector.multi_reduction <minimumf>, %409, %cst_154 [0] : vector<16x16xf32> to vector<16xf32>
    %411 = vector.shape_cast %410 : vector<16xf32> to vector<1x16xf32>
    %412 = tpu.iota {dimensions = array<i32: 0>} : vector<16x16xi32>
    %413 = arith.sitofp %412 : vector<16x16xi32> to vector<16x16xf32>
    %414 = vector.broadcast %411 : vector<1x16xf32> to vector<16x16xf32>
    %415 = arith.cmpf ole, %409, %414 : vector<16x16xf32>
    %cst_155 = arith.constant 1.600000e+01 : f32
    %416 = vector.broadcast %cst_155 : f32 to vector<16x16xf32>
    %417 = arith.select %415, %413, %416 : vector<16x16xi1>, vector<16x16xf32>
    %cst_156 = arith.constant dense<0x7F800000> : vector<16xf32>
    %418 = vector.multi_reduction <minimumf>, %417, %cst_156 [0] : vector<16x16xf32> to vector<16xf32>
    %419 = vector.shape_cast %418 : vector<16xf32> to vector<1x16xf32>
    %420 = vector.broadcast %419 : vector<1x16xf32> to vector<16x16xf32>
    %421 = arith.cmpf oeq, %413, %420 : vector<16x16xf32>
    %422 = arith.extui %421 : vector<16x16xi1> to vector<16x16xi32>
    %423 = arith.sitofp %422 : vector<16x16xi32> to vector<16x16xf32>
    %cst_157 = arith.constant dense<0.000000e+00> : vector<8x16xf32>
    %424 = tpu.matmul %396, %423, %cst_157 {dimension_numbers = #tpu.dot_dimension_numbers<[0], [0], [1], [1], [0, 1, 1, 1], [], []>} : vector<16x8xf32>, vector<16x16xf32>, vector<8x16xf32> -> vector<8x16xf32>
    %c0_158 = arith.constant 0 : index
    %c0_159 = arith.constant 0 : index
    %c0_160 = arith.constant 0 : index
    %425 = vector.load %arg22[%c0_158, %c0_159, %c0_160] : memref<1x8x16xf32, #tpu.memory_space<vmem>>, vector<1x8x16xf32>
    %426 = vector.shape_cast %425 : vector<1x8x16xf32> to vector<8x16xf32>
    %427 = vector.shape_cast %424 : vector<8x16xf32> to vector<1x8x16xf32>
    tpu.vector_store %arg22[%c0_158, %c0_159, %c0_160], %427 {strides = array<i32>} : memref<1x8x16xf32, #tpu.memory_space<vmem>>, vector<1x8x16xf32>,
    %428 = arith.subf %424, %404 : vector<8x16xf32>
    %429 = arith.mulf %428, %428 : vector<8x16xf32>
    %cst_161 = arith.constant dense<0.000000e+00> : vector<8xf32>
    %430 = vector.multi_reduction <add>, %429, %cst_161 [1] : vector<8x16xf32> to vector<8xf32>
    %431 = vector.shape_cast %430 : vector<8xf32> to vector<8x1xf32>
    %cst_162 = arith.constant dense<0.000000e+00> : vector<1xf32>
    %432 = vector.multi_reduction <add>, %431, %cst_162 [0] : vector<8x1xf32> to vector<1xf32>
    %433 = vector.shape_cast %432 : vector<1xf32> to vector<1x1xf32>
    %c0_163 = arith.constant 0 : index
    %c0_164 = arith.constant 0 : index
    %c0_165 = arith.constant 0 : index
    %434 = vector.load %arg23[%c0_163, %c0_164, %c0_165] : memref<1x1x1xf32, #tpu.memory_space<vmem>>, vector<1x1x1xf32>
    %435 = vector.shape_cast %434 : vector<1x1x1xf32> to vector<1x1xf32>
    %436 = vector.shape_cast %433 : vector<1x1xf32> to vector<1x1x1xf32>
    tpu.vector_store %arg23[%c0_163, %c0_164, %c0_165], %436 {strides = array<i32>} : memref<1x1x1xf32, #tpu.memory_space<vmem>>, vector<1x1x1xf32>,
    %cst_166 = arith.constant dense<0.000000e+00> : vector<16xf32>
    %437 = vector.multi_reduction <add>, %423, %cst_166 [1] : vector<16x16xf32> to vector<16xf32>
    %438 = vector.shape_cast %437 : vector<16xf32> to vector<16x1xf32>
    %c0_167 = arith.constant 0 : index
    %c0_168 = arith.constant 0 : index
    %c0_169 = arith.constant 0 : index
    %439 = vector.load %arg24[%c0_167, %c0_168, %c0_169] : memref<1x16x1xf32, #tpu.memory_space<vmem>>, vector<1x16x1xf32>
    %440 = vector.shape_cast %439 : vector<1x16x1xf32> to vector<16x1xf32>
    %441 = vector.shape_cast %438 : vector<16x1xf32> to vector<1x16x1xf32>
    tpu.vector_store %arg24[%c0_167, %c0_168, %c0_169], %441 {strides = array<i32>} : memref<1x16x1xf32, #tpu.memory_space<vmem>>, vector<1x16x1xf32>,
    return
  }
  func.func @transform_0(%arg0: i32) -> (i32, i32, i32) {
    %c0_i32 = arith.constant 0 : i32
    %c0_i32_0 = arith.constant 0 : i32
    %c0_i32_1 = arith.constant 0 : i32
    return %arg0, %c0_i32, %c0_i32_0 : i32, i32, i32
  }
  func.func @transform_1(%arg0: i32) -> (i32, i32, i32) {
    %c0_i32 = arith.constant 0 : i32
    %c0_i32_0 = arith.constant 0 : i32
    %c0_i32_1 = arith.constant 0 : i32
    %c0_i32_2 = arith.constant 0 : i32
    return %c0_i32, %c0_i32_0, %c0_i32_1 : i32, i32, i32
  }
  func.func @transform_2(%arg0: i32) -> (i32, i32) {
    %c0_i32 = arith.constant 0 : i32
    %c0_i32_0 = arith.constant 0 : i32
    %c0_i32_1 = arith.constant 0 : i32
    return %c0_i32, %c0_i32_0 : i32, i32
  }
  func.func @transform_3(%arg0: i32) -> (i32, i32, i32) {
    %c0_i32 = arith.constant 0 : i32
    %c0_i32_0 = arith.constant 0 : i32
    %c0_i32_1 = arith.constant 0 : i32
    %c0_i32_2 = arith.constant 0 : i32
    return %c0_i32, %c0_i32_0, %c0_i32_1 : i32, i32, i32
  }
  func.func @transform_4(%arg0: i32) -> (i32, i32) {
    %c0_i32 = arith.constant 0 : i32
    %c0_i32_0 = arith.constant 0 : i32
    %c0_i32_1 = arith.constant 0 : i32
    return %c0_i32, %c0_i32_0 : i32, i32
  }
  func.func @transform_5(%arg0: i32) -> (i32, i32, i32, i32) {
    %c0_i32 = arith.constant 0 : i32
    %c0_i32_0 = arith.constant 0 : i32
    %c0_i32_1 = arith.constant 0 : i32
    %c0_i32_2 = arith.constant 0 : i32
    %c0_i32_3 = arith.constant 0 : i32
    return %c0_i32, %c0_i32_0, %c0_i32_1, %c0_i32_2 : i32, i32, i32, i32
  }
  func.func @transform_6(%arg0: i32) -> (i32, i32, i32) {
    %c0_i32 = arith.constant 0 : i32
    %c0_i32_0 = arith.constant 0 : i32
    %c0_i32_1 = arith.constant 0 : i32
    %c0_i32_2 = arith.constant 0 : i32
    return %c0_i32, %c0_i32_0, %c0_i32_1 : i32, i32, i32
  }
  func.func @transform_7(%arg0: i32) -> (i32, i32, i32) {
    %c0_i32 = arith.constant 0 : i32
    %c0_i32_0 = arith.constant 0 : i32
    %c0_i32_1 = arith.constant 0 : i32
    %c0_i32_2 = arith.constant 0 : i32
    return %c0_i32, %c0_i32_0, %c0_i32_1 : i32, i32, i32
  }
  func.func @transform_8(%arg0: i32) -> (i32, i32, i32) {
    %c0_i32 = arith.constant 0 : i32
    %c0_i32_0 = arith.constant 0 : i32
    %c0_i32_1 = arith.constant 0 : i32
    %c0_i32_2 = arith.constant 0 : i32
    return %c0_i32, %c0_i32_0, %c0_i32_1 : i32, i32, i32
  }
  func.func @transform_9(%arg0: i32) -> (i32, i32, i32, i32) {
    %c0_i32 = arith.constant 0 : i32
    %c0_i32_0 = arith.constant 0 : i32
    %c0_i32_1 = arith.constant 0 : i32
    %c0_i32_2 = arith.constant 0 : i32
    %c0_i32_3 = arith.constant 0 : i32
    return %c0_i32, %c0_i32_0, %c0_i32_1, %c0_i32_2 : i32, i32, i32, i32
  }
  func.func @transform_10(%arg0: i32) -> (i32, i32, i32) {
    %c0_i32 = arith.constant 0 : i32
    %c0_i32_0 = arith.constant 0 : i32
    %c0_i32_1 = arith.constant 0 : i32
    %c0_i32_2 = arith.constant 0 : i32
    return %c0_i32, %c0_i32_0, %c0_i32_1 : i32, i32, i32
  }
  func.func @transform_11(%arg0: i32) -> (i32, i32, i32) {
    %c0_i32 = arith.constant 0 : i32
    %c0_i32_0 = arith.constant 0 : i32
    %c0_i32_1 = arith.constant 0 : i32
    %c0_i32_2 = arith.constant 0 : i32
    return %c0_i32, %c0_i32_0, %c0_i32_1 : i32, i32, i32
  }
  func.func @transform_12(%arg0: i32) -> (i32, i32, i32) {
    %c0_i32 = arith.constant 0 : i32
    %c0_i32_0 = arith.constant 0 : i32
    %c0_i32_1 = arith.constant 0 : i32
    %c0_i32_2 = arith.constant 0 : i32
    return %c0_i32, %c0_i32_0, %c0_i32_1 : i32, i32, i32
  }
  func.func @transform_13(%arg0: i32) -> (i32, i32, i32) {
    %c0_i32 = arith.constant 0 : i32
    %c0_i32_0 = arith.constant 0 : i32
    %c0_i32_1 = arith.constant 0 : i32
    %c0_i32_2 = arith.constant 0 : i32
    return %c0_i32, %c0_i32_0, %c0_i32_1 : i32, i32, i32
  }
  func.func @transform_14(%arg0: i32) -> (i32, i32) {
    %c0_i32 = arith.constant 0 : i32
    %c0_i32_0 = arith.constant 0 : i32
    %c0_i32_1 = arith.constant 0 : i32
    return %c0_i32, %c0_i32_0 : i32, i32
  }
  func.func @transform_15(%arg0: i32) -> (i32, i32, i32, i32) {
    %c0_i32 = arith.constant 0 : i32
    %c0_i32_0 = arith.constant 0 : i32
    %c0_i32_1 = arith.constant 0 : i32
    %c0_i32_2 = arith.constant 0 : i32
    %c0_i32_3 = arith.constant 0 : i32
    return %c0_i32, %c0_i32_0, %c0_i32_1, %c0_i32_2 : i32, i32, i32, i32
  }
  func.func @transform_16(%arg0: i32) -> (i32, i32, i32) {
    %c0_i32 = arith.constant 0 : i32
    %c0_i32_0 = arith.constant 0 : i32
    %c0_i32_1 = arith.constant 0 : i32
    %c0_i32_2 = arith.constant 0 : i32
    return %c0_i32, %c0_i32_0, %c0_i32_1 : i32, i32, i32
  }
  func.func @transform_17(%arg0: i32) -> (i32, i32, i32) {
    %c0_i32 = arith.constant 0 : i32
    %c0_i32_0 = arith.constant 0 : i32
    %c0_i32_1 = arith.constant 0 : i32
    %c0_i32_2 = arith.constant 0 : i32
    return %c0_i32, %c0_i32_0, %c0_i32_1 : i32, i32, i32
  }
  func.func @transform_18(%arg0: i32) -> (i32, i32, i32) {
    %c0_i32 = arith.constant 0 : i32
    %c0_i32_0 = arith.constant 0 : i32
    %c0_i32_1 = arith.constant 0 : i32
    %c0_i32_2 = arith.constant 0 : i32
    return %c0_i32, %c0_i32_0, %c0_i32_1 : i32, i32, i32
  }
  func.func @transform_19(%arg0: i32) -> (i32, i32, i32) {
    %c0_i32 = arith.constant 0 : i32
    %c0_i32_0 = arith.constant 0 : i32
    %c0_i32_1 = arith.constant 0 : i32
    %c0_i32_2 = arith.constant 0 : i32
    return %c0_i32, %c0_i32_0, %c0_i32_1 : i32, i32, i32
  }
  func.func @transform_20(%arg0: i32) -> (i32, i32) {
    %c0_i32 = arith.constant 0 : i32
    %c0_i32_0 = arith.constant 0 : i32
    %c0_i32_1 = arith.constant 0 : i32
    return %c0_i32, %c0_i32_0 : i32, i32
  }
  func.func @transform_21(%arg0: i32) -> (i32, i32, i32) {
    %c0_i32 = arith.constant 0 : i32
    %c0_i32_0 = arith.constant 0 : i32
    %c0_i32_1 = arith.constant 0 : i32
    return %arg0, %c0_i32, %c0_i32_0 : i32, i32, i32
  }
  func.func @transform_22(%arg0: i32) -> (i32, i32, i32) {
    %c0_i32 = arith.constant 0 : i32
    %c0_i32_0 = arith.constant 0 : i32
    %c0_i32_1 = arith.constant 0 : i32
    return %arg0, %c0_i32, %c0_i32_0 : i32, i32, i32
  }
  func.func @transform_23(%arg0: i32) -> (i32, i32, i32) {
    %c0_i32 = arith.constant 0 : i32
    %c0_i32_0 = arith.constant 0 : i32
    %c0_i32_1 = arith.constant 0 : i32
    return %arg0, %c0_i32, %c0_i32_0 : i32, i32, i32
  }
}

module attributes {stable_mosaic.version = 11 : i64} {
  func.func @kernel(%arg0: i32, %arg1: memref<1x8x16xf32, #tpu.memory_space<vmem>>, %arg2: memref<1x1x8xf32, #tpu.memory_space<vmem>>, %arg3: memref<1x12x16xf32, #tpu.memory_space<vmem>>, %arg4: memref<5x16x16xf32, #tpu.memory_space<vmem>>, %arg5: memref<3x16x8xf32, #tpu.memory_space<vmem>>, %arg6: memref<16x1xf32, #tpu.memory_space<vmem>>, %arg7: memref<3x32x16xf32, #tpu.memory_space<vmem>>, %arg8: memref<32x1xf32, #tpu.memory_space<vmem>>, %arg9: memref<32x8xf32, #tpu.memory_space<vmem>>, %arg10: memref<32x1xf32, #tpu.memory_space<vmem>>, %arg11: memref<32x1xf32, #tpu.memory_space<vmem>>, %arg12: memref<32x1xf32, #tpu.memory_space<vmem>>, %arg13: memref<16x16xf32, #tpu.memory_space<vmem>>, %arg14: memref<16x1xf32, #tpu.memory_space<vmem>>, %arg15: memref<8x16xf32, #tpu.memory_space<vmem>>, %arg16: memref<8x1xf32, #tpu.memory_space<vmem>>, %arg17: memref<3x24x16xf32, #tpu.memory_space<vmem>>, %arg18: memref<24x1xf32, #tpu.memory_space<vmem>>, %arg19: memref<3x48x24xf32, #tpu.memory_space<vmem>>, %arg20: memref<48x1xf32, #tpu.memory_space<vmem>>, %arg21: memref<48x8xf32, #tpu.memory_space<vmem>>, %arg22: memref<48x1xf32, #tpu.memory_space<vmem>>, %arg23: memref<48x1xf32, #tpu.memory_space<vmem>>, %arg24: memref<48x1xf32, #tpu.memory_space<vmem>>, %arg25: memref<24x24xf32, #tpu.memory_space<vmem>>, %arg26: memref<24x1xf32, #tpu.memory_space<vmem>>, %arg27: memref<8x24xf32, #tpu.memory_space<vmem>>, %arg28: memref<8x1xf32, #tpu.memory_space<vmem>>, %arg29: memref<8x8xf32, #tpu.memory_space<vmem>>, %arg30: memref<8x1xf32, #tpu.memory_space<vmem>>, %arg31: memref<12x8xf32, #tpu.memory_space<vmem>>, %arg32: memref<12x1xf32, #tpu.memory_space<vmem>>, %arg33: memref<1x12x16xf32, #tpu.memory_space<vmem>>, %arg34: memref<1x1x1xf32, #tpu.memory_space<vmem>>) attributes {dimension_semantics = [#tpu.dimension_semantics<parallel>], iteration_bounds = array<i64: 2>, scalar_prefetch = 0 : i64, scratch_operands = 0 : i64, tpu.core_type = #tpu.core_type<tc>, window_params = [{transform_indices = @transform_0, window_bounds = array<i64: 1, 8, 16>}, {transform_indices = @transform_1, window_bounds = array<i64: 1, 1, 8>}, {transform_indices = @transform_2, window_bounds = array<i64: 1, 12, 16>}, {pipeline_mode = #tpu.pipeline_mode<synchronous>, transform_indices = @transform_3, window_bounds = array<i64: 5, 16, 16>}, {pipeline_mode = #tpu.pipeline_mode<synchronous>, transform_indices = @transform_4, window_bounds = array<i64: 3, 16, 8>}, {pipeline_mode = #tpu.pipeline_mode<synchronous>, transform_indices = @transform_5, window_bounds = array<i64: 16, 1>}, {pipeline_mode = #tpu.pipeline_mode<synchronous>, transform_indices = @transform_6, window_bounds = array<i64: 3, 32, 16>}, {pipeline_mode = #tpu.pipeline_mode<synchronous>, transform_indices = @transform_7, window_bounds = array<i64: 32, 1>}, {pipeline_mode = #tpu.pipeline_mode<synchronous>, transform_indices = @transform_8, window_bounds = array<i64: 32, 8>}, {pipeline_mode = #tpu.pipeline_mode<synchronous>, transform_indices = @transform_9, window_bounds = array<i64: 32, 1>}, {pipeline_mode = #tpu.pipeline_mode<synchronous>, transform_indices = @transform_10, window_bounds = array<i64: 32, 1>}, {pipeline_mode = #tpu.pipeline_mode<synchronous>, transform_indices = @transform_11, window_bounds = array<i64: 32, 1>}, {pipeline_mode = #tpu.pipeline_mode<synchronous>, transform_indices = @transform_12, window_bounds = array<i64: 16, 16>}, {pipeline_mode = #tpu.pipeline_mode<synchronous>, transform_indices = @transform_13, window_bounds = array<i64: 16, 1>}, {pipeline_mode = #tpu.pipeline_mode<synchronous>, transform_indices = @transform_14, window_bounds = array<i64: 8, 16>}, {pipeline_mode = #tpu.pipeline_mode<synchronous>, transform_indices = @transform_15, window_bounds = array<i64: 8, 1>}, {pipeline_mode = #tpu.pipeline_mode<synchronous>, transform_indices = @transform_16, window_bounds = array<i64: 3, 24, 16>}, {pipeline_mode = #tpu.pipeline_mode<synchronous>, transform_indices = @transform_17, window_bounds = array<i64: 24, 1>}, {pipeline_mode = #tpu.pipeline_mode<synchronous>, transform_indices = @transform_18, window_bounds = array<i64: 3, 48, 24>}, {pipeline_mode = #tpu.pipeline_mode<synchronous>, transform_indices = @transform_19, window_bounds = array<i64: 48, 1>}, {pipeline_mode = #tpu.pipeline_mode<synchronous>, transform_indices = @transform_20, window_bounds = array<i64: 48, 8>}, {pipeline_mode = #tpu.pipeline_mode<synchronous>, transform_indices = @transform_21, window_bounds = array<i64: 48, 1>}, {pipeline_mode = #tpu.pipeline_mode<synchronous>, transform_indices = @transform_22, window_bounds = array<i64: 48, 1>}, {pipeline_mode = #tpu.pipeline_mode<synchronous>, transform_indices = @transform_23, window_bounds = array<i64: 48, 1>}, {pipeline_mode = #tpu.pipeline_mode<synchronous>, transform_indices = @transform_24, window_bounds = array<i64: 24, 24>}, {pipeline_mode = #tpu.pipeline_mode<synchronous>, transform_indices = @transform_25, window_bounds = array<i64: 24, 1>}, {pipeline_mode = #tpu.pipeline_mode<synchronous>, transform_indices = @transform_26, window_bounds = array<i64: 8, 24>}, {pipeline_mode = #tpu.pipeline_mode<synchronous>, transform_indices = @transform_27, window_bounds = array<i64: 8, 1>}, {pipeline_mode = #tpu.pipeline_mode<synchronous>, transform_indices = @transform_28, window_bounds = array<i64: 8, 8>}, {pipeline_mode = #tpu.pipeline_mode<synchronous>, transform_indices = @transform_29, window_bounds = array<i64: 8, 1>}, {pipeline_mode = #tpu.pipeline_mode<synchronous>, transform_indices = @transform_30, window_bounds = array<i64: 12, 8>}, {pipeline_mode = #tpu.pipeline_mode<synchronous>, transform_indices = @transform_31, window_bounds = array<i64: 12, 1>}, {transform_indices = @transform_32, window_bounds = array<i64: 1, 12, 16>}, {transform_indices = @transform_33, window_bounds = array<i64: 1, 1, 1>}]} {
    %c0 = arith.constant 0 : index
    %c0_0 = arith.constant 0 : index
    %c0_1 = arith.constant 0 : index
    %0 = vector.load %arg4[%c0, %c0_0, %c0_1] : memref<5x16x16xf32, #tpu.memory_space<vmem>>, vector<5x16x16xf32>
    %c0_2 = arith.constant 0 : index
    %c0_3 = arith.constant 0 : index
    %c0_4 = arith.constant 0 : index
    %1 = vector.load %arg1[%c0_2, %c0_3, %c0_4] : memref<1x8x16xf32, #tpu.memory_space<vmem>>, vector<1x8x16xf32>
    %2 = vector.shape_cast %1 : vector<1x8x16xf32> to vector<8x16xf32>
    %c0_5 = arith.constant 0 : index
    %c0_6 = arith.constant 0 : index
    %c0_7 = arith.constant 0 : index
    %3 = vector.load %arg2[%c0_5, %c0_6, %c0_7] : memref<1x1x8xf32, #tpu.memory_space<vmem>>, vector<1x1x8xf32>
    %4 = vector.shape_cast %3 : vector<1x1x8xf32> to vector<1x8xf32>
    %cst = arith.constant 0.000000e+00 : f32
    %5 = vector.broadcast %cst : f32 to vector<8x16xf32>
    %c0_8 = arith.constant 0 : index
    %c0_9 = arith.constant 0 : index
    %c0_10 = arith.constant 0 : index
    %6 = vector.load %arg5[%c0_8, %c0_9, %c0_10] : memref<3x16x8xf32, #tpu.memory_space<vmem>>, vector<3x16x8xf32>
    %c0_11 = arith.constant 0 : index
    %c0_12 = arith.constant 0 : index
    %7 = vector.load %arg6[%c0_11, %c0_12] : memref<16x1xf32, #tpu.memory_space<vmem>>, vector<16x1xf32>
    %8 = vector.extract_strided_slice %0 {offsets = [1, 0, 0], sizes = [1, 16, 16], strides = [1, 1, 1]} : vector<5x16x16xf32> to vector<1x16x16xf32>
    %9 = vector.shape_cast %8 : vector<1x16x16xf32> to vector<16x16xf32>
    %cst_13 = arith.constant dense<0.000000e+00> : vector<8x16xf32>
    %10 = tpu.matmul %2, %9, %cst_13 {dimension_numbers = #tpu.dot_dimension_numbers<[1], [0], [0], [1], [0, 0, 1, 1], [], []>} : vector<8x16xf32>, vector<16x16xf32>, vector<8x16xf32> -> vector<8x16xf32>
    %11 = vector.extract_strided_slice %6 {offsets = [0, 0, 0], sizes = [1, 16, 8], strides = [1, 1, 1]} : vector<3x16x8xf32> to vector<1x16x8xf32>
    %12 = vector.shape_cast %11 : vector<1x16x8xf32> to vector<16x8xf32>
    %cst_14 = arith.constant dense<0.000000e+00> : vector<16x16xf32>
    %13 = tpu.matmul %12, %10, %cst_14 {dimension_numbers = #tpu.dot_dimension_numbers<[1], [0], [0], [1], [0, 0, 1, 1], [], []>} : vector<16x8xf32>, vector<8x16xf32>, vector<16x16xf32> -> vector<16x16xf32>
    %14 = vector.extract_strided_slice %6 {offsets = [1, 0, 0], sizes = [1, 16, 8], strides = [1, 1, 1]} : vector<3x16x8xf32> to vector<1x16x8xf32>
    %15 = vector.shape_cast %14 : vector<1x16x8xf32> to vector<16x8xf32>
    %cst_15 = arith.constant dense<0.000000e+00> : vector<16x16xf32>
    %16 = tpu.matmul %15, %2, %cst_15 {dimension_numbers = #tpu.dot_dimension_numbers<[1], [0], [0], [1], [0, 0, 1, 1], [], []>} : vector<16x8xf32>, vector<8x16xf32>, vector<16x16xf32> -> vector<16x16xf32>
    %17 = arith.addf %13, %16 : vector<16x16xf32>
    %18 = vector.extract_strided_slice %0 {offsets = [3, 0, 0], sizes = [1, 16, 16], strides = [1, 1, 1]} : vector<5x16x16xf32> to vector<1x16x16xf32>
    %19 = vector.shape_cast %18 : vector<1x16x16xf32> to vector<16x16xf32>
    %cst_16 = arith.constant dense<0.000000e+00> : vector<8x16xf32>
    %20 = tpu.matmul %2, %19, %cst_16 {dimension_numbers = #tpu.dot_dimension_numbers<[1], [0], [0], [1], [0, 0, 1, 1], [], []>} : vector<8x16xf32>, vector<16x16xf32>, vector<8x16xf32> -> vector<8x16xf32>
    %21 = vector.extract_strided_slice %6 {offsets = [2, 0, 0], sizes = [1, 16, 8], strides = [1, 1, 1]} : vector<3x16x8xf32> to vector<1x16x8xf32>
    %22 = vector.shape_cast %21 : vector<1x16x8xf32> to vector<16x8xf32>
    %cst_17 = arith.constant dense<0.000000e+00> : vector<16x16xf32>
    %23 = tpu.matmul %22, %20, %cst_17 {dimension_numbers = #tpu.dot_dimension_numbers<[1], [0], [0], [1], [0, 0, 1, 1], [], []>} : vector<16x8xf32>, vector<8x16xf32>, vector<16x16xf32> -> vector<16x16xf32>
    %24 = arith.addf %17, %23 : vector<16x16xf32>
    %25 = vector.broadcast %7 : vector<16x1xf32> to vector<16x16xf32>
    %26 = arith.addf %24, %25 : vector<16x16xf32>
    %c0_18 = arith.constant 0 : index
    %c0_19 = arith.constant 0 : index
    %27 = vector.load %arg9[%c0_18, %c0_19] : memref<32x8xf32, #tpu.memory_space<vmem>>, vector<32x8xf32>
    %28 = vector.broadcast %4 : vector<1x8xf32> to vector<32x8xf32>
    %29 = arith.mulf %27, %28 : vector<32x8xf32>
    %cst_20 = arith.constant dense<0.000000e+00> : vector<32xf32>
    %30 = vector.multi_reduction <add>, %29, %cst_20 [1] : vector<32x8xf32> to vector<32xf32>
    %31 = vector.shape_cast %30 : vector<32xf32> to vector<32x1xf32>
    %c0_21 = arith.constant 0 : index
    %c0_22 = arith.constant 0 : index
    %32 = vector.load %arg10[%c0_21, %c0_22] : memref<32x1xf32, #tpu.memory_space<vmem>>, vector<32x1xf32>
    %33 = arith.addf %31, %32 : vector<32x1xf32>
    %c0_23 = arith.constant 0 : index
    %c0_24 = arith.constant 0 : index
    %c0_25 = arith.constant 0 : index
    %34 = vector.load %arg7[%c0_23, %c0_24, %c0_25] : memref<3x32x16xf32, #tpu.memory_space<vmem>>, vector<3x32x16xf32>
    %35 = vector.extract_strided_slice %0 {offsets = [1, 0, 0], sizes = [1, 16, 16], strides = [1, 1, 1]} : vector<5x16x16xf32> to vector<1x16x16xf32>
    %36 = vector.shape_cast %35 : vector<1x16x16xf32> to vector<16x16xf32>
    %cst_26 = arith.constant dense<0.000000e+00> : vector<16x16xf32>
    %37 = tpu.matmul %26, %36, %cst_26 {dimension_numbers = #tpu.dot_dimension_numbers<[1], [0], [0], [1], [0, 0, 1, 1], [], []>} : vector<16x16xf32>, vector<16x16xf32>, vector<16x16xf32> -> vector<16x16xf32>
    %38 = vector.extract_strided_slice %34 {offsets = [0, 0, 0], sizes = [1, 32, 16], strides = [1, 1, 1]} : vector<3x32x16xf32> to vector<1x32x16xf32>
    %39 = vector.shape_cast %38 : vector<1x32x16xf32> to vector<32x16xf32>
    %cst_27 = arith.constant dense<0.000000e+00> : vector<32x16xf32>
    %40 = tpu.matmul %39, %37, %cst_27 {dimension_numbers = #tpu.dot_dimension_numbers<[1], [0], [0], [1], [0, 0, 1, 1], [], []>} : vector<32x16xf32>, vector<16x16xf32>, vector<32x16xf32> -> vector<32x16xf32>
    %41 = vector.extract_strided_slice %34 {offsets = [1, 0, 0], sizes = [1, 32, 16], strides = [1, 1, 1]} : vector<3x32x16xf32> to vector<1x32x16xf32>
    %42 = vector.shape_cast %41 : vector<1x32x16xf32> to vector<32x16xf32>
    %cst_28 = arith.constant dense<0.000000e+00> : vector<32x16xf32>
    %43 = tpu.matmul %42, %26, %cst_28 {dimension_numbers = #tpu.dot_dimension_numbers<[1], [0], [0], [1], [0, 0, 1, 1], [], []>} : vector<32x16xf32>, vector<16x16xf32>, vector<32x16xf32> -> vector<32x16xf32>
    %44 = arith.addf %40, %43 : vector<32x16xf32>
    %45 = vector.extract_strided_slice %0 {offsets = [3, 0, 0], sizes = [1, 16, 16], strides = [1, 1, 1]} : vector<5x16x16xf32> to vector<1x16x16xf32>
    %46 = vector.shape_cast %45 : vector<1x16x16xf32> to vector<16x16xf32>
    %cst_29 = arith.constant dense<0.000000e+00> : vector<16x16xf32>
    %47 = tpu.matmul %26, %46, %cst_29 {dimension_numbers = #tpu.dot_dimension_numbers<[1], [0], [0], [1], [0, 0, 1, 1], [], []>} : vector<16x16xf32>, vector<16x16xf32>, vector<16x16xf32> -> vector<16x16xf32>
    %48 = vector.extract_strided_slice %34 {offsets = [2, 0, 0], sizes = [1, 32, 16], strides = [1, 1, 1]} : vector<3x32x16xf32> to vector<1x32x16xf32>
    %49 = vector.shape_cast %48 : vector<1x32x16xf32> to vector<32x16xf32>
    %cst_30 = arith.constant dense<0.000000e+00> : vector<32x16xf32>
    %50 = tpu.matmul %49, %47, %cst_30 {dimension_numbers = #tpu.dot_dimension_numbers<[1], [0], [0], [1], [0, 0, 1, 1], [], []>} : vector<32x16xf32>, vector<16x16xf32>, vector<32x16xf32> -> vector<32x16xf32>
    %51 = arith.addf %44, %50 : vector<32x16xf32>
    %c0_31 = arith.constant 0 : index
    %c0_32 = arith.constant 0 : index
    %52 = vector.load %arg8[%c0_31, %c0_32] : memref<32x1xf32, #tpu.memory_space<vmem>>, vector<32x1xf32>
    %53 = vector.broadcast %52 : vector<32x1xf32> to vector<32x16xf32>
    %54 = arith.addf %51, %53 : vector<32x16xf32>
    %55 = vector.broadcast %33 : vector<32x1xf32> to vector<32x16xf32>
    %56 = arith.addf %54, %55 : vector<32x16xf32>
    %c0_33 = arith.constant 0 : index
    %c0_34 = arith.constant 0 : index
    %57 = vector.load %arg11[%c0_33, %c0_34] : memref<32x1xf32, #tpu.memory_space<vmem>>, vector<32x1xf32>
    %c0_35 = arith.constant 0 : index
    %c0_36 = arith.constant 0 : index
    %58 = vector.load %arg12[%c0_35, %c0_36] : memref<32x1xf32, #tpu.memory_space<vmem>>, vector<32x1xf32>
    %cst_37 = arith.constant dense<0.000000e+00> : vector<16xf32>
    %59 = vector.multi_reduction <add>, %56, %cst_37 [0] : vector<32x16xf32> to vector<16xf32>
    %60 = vector.shape_cast %59 : vector<16xf32> to vector<1x16xf32>
    %cst_38 = arith.constant 3.200000e+01 : f32
    %61 = vector.broadcast %cst_38 : f32 to vector<1x16xf32>
    %62 = arith.divf %60, %61 : vector<1x16xf32>
    %63 = vector.broadcast %62 : vector<1x16xf32> to vector<32x16xf32>
    %64 = arith.subf %56, %63 : vector<32x16xf32>
    %65 = arith.mulf %64, %64 : vector<32x16xf32>
    %cst_39 = arith.constant dense<0.000000e+00> : vector<16xf32>
    %66 = vector.multi_reduction <add>, %65, %cst_39 [0] : vector<32x16xf32> to vector<16xf32>
    %67 = vector.shape_cast %66 : vector<16xf32> to vector<1x16xf32>
    %cst_40 = arith.constant 3.200000e+01 : f32
    %68 = vector.broadcast %cst_40 : f32 to vector<1x16xf32>
    %69 = arith.divf %67, %68 : vector<1x16xf32>
    %cst_41 = arith.constant 9.99999974E-6 : f32
    %70 = vector.broadcast %cst_41 : f32 to vector<1x16xf32>
    %71 = arith.addf %69, %70 : vector<1x16xf32>
    %72 = math.rsqrt %71 : vector<1x16xf32>
    %73 = vector.broadcast %72 : vector<1x16xf32> to vector<32x16xf32>
    %74 = arith.mulf %64, %73 : vector<32x16xf32>
    %75 = vector.broadcast %57 : vector<32x1xf32> to vector<32x16xf32>
    %76 = arith.mulf %74, %75 : vector<32x16xf32>
    %77 = vector.broadcast %58 : vector<32x1xf32> to vector<32x16xf32>
    %78 = arith.addf %76, %77 : vector<32x16xf32>
    %79 = vector.extract_strided_slice %78 {offsets = [0, 0], sizes = [16, 16], strides = [1, 1]} : vector<32x16xf32> to vector<16x16xf32>
    %80 = vector.extract_strided_slice %78 {offsets = [16, 0], sizes = [16, 16], strides = [1, 1]} : vector<32x16xf32> to vector<16x16xf32>
    %cst_42 = arith.constant 0.000000e+00 : f32
    %81 = vector.broadcast %cst_42 : f32 to vector<16x16xf32>
    %82 = arith.subf %81, %80 : vector<16x16xf32>
    %83 = math.exp %82 : vector<16x16xf32>
    %cst_43 = arith.constant 1.000000e+00 : f32
    %84 = vector.broadcast %cst_43 : f32 to vector<16x16xf32>
    %85 = arith.addf %84, %83 : vector<16x16xf32>
    %cst_44 = arith.constant 1.000000e+00 : f32
    %86 = vector.broadcast %cst_44 : f32 to vector<16x16xf32>
    %87 = arith.divf %86, %85 : vector<16x16xf32>
    %88 = arith.mulf %79, %87 : vector<16x16xf32>
    %c0_45 = arith.constant 0 : index
    %c0_46 = arith.constant 0 : index
    %89 = vector.load %arg13[%c0_45, %c0_46] : memref<16x16xf32, #tpu.memory_space<vmem>>, vector<16x16xf32>
    %cst_47 = arith.constant dense<0.000000e+00> : vector<16x16xf32>
    %90 = tpu.matmul %89, %88, %cst_47 {dimension_numbers = #tpu.dot_dimension_numbers<[1], [0], [0], [1], [0, 0, 1, 1], [], []>} : vector<16x16xf32>, vector<16x16xf32>, vector<16x16xf32> -> vector<16x16xf32>
    %c0_48 = arith.constant 0 : index
    %c0_49 = arith.constant 0 : index
    %91 = vector.load %arg14[%c0_48, %c0_49] : memref<16x1xf32, #tpu.memory_space<vmem>>, vector<16x1xf32>
    %92 = vector.broadcast %91 : vector<16x1xf32> to vector<16x16xf32>
    %93 = arith.addf %90, %92 : vector<16x16xf32>
    %94 = arith.addf %93, %26 : vector<16x16xf32>
    %cst_50 = arith.constant 0.707106769 : f32
    %95 = vector.broadcast %cst_50 : f32 to vector<16x16xf32>
    %96 = arith.mulf %94, %95 : vector<16x16xf32>
    %c0_51 = arith.constant 0 : index
    %c0_52 = arith.constant 0 : index
    %97 = vector.load %arg15[%c0_51, %c0_52] : memref<8x16xf32, #tpu.memory_space<vmem>>, vector<8x16xf32>
    %cst_53 = arith.constant dense<0.000000e+00> : vector<8x16xf32>
    %98 = tpu.matmul %97, %88, %cst_53 {dimension_numbers = #tpu.dot_dimension_numbers<[1], [0], [0], [1], [0, 0, 1, 1], [], []>} : vector<8x16xf32>, vector<16x16xf32>, vector<8x16xf32> -> vector<8x16xf32>
    %99 = arith.addf %5, %98 : vector<8x16xf32>
    %c0_54 = arith.constant 0 : index
    %c0_55 = arith.constant 0 : index
    %100 = vector.load %arg16[%c0_54, %c0_55] : memref<8x1xf32, #tpu.memory_space<vmem>>, vector<8x1xf32>
    %101 = vector.broadcast %100 : vector<8x1xf32> to vector<8x16xf32>
    %102 = arith.addf %99, %101 : vector<8x16xf32>
    %c0_56 = arith.constant 0 : index
    %c0_57 = arith.constant 0 : index
    %c0_58 = arith.constant 0 : index
    %103 = vector.load %arg17[%c0_56, %c0_57, %c0_58] : memref<3x24x16xf32, #tpu.memory_space<vmem>>, vector<3x24x16xf32>
    %c0_59 = arith.constant 0 : index
    %c0_60 = arith.constant 0 : index
    %104 = vector.load %arg18[%c0_59, %c0_60] : memref<24x1xf32, #tpu.memory_space<vmem>>, vector<24x1xf32>
    %105 = vector.extract_strided_slice %0 {offsets = [1, 0, 0], sizes = [1, 16, 16], strides = [1, 1, 1]} : vector<5x16x16xf32> to vector<1x16x16xf32>
    %106 = vector.shape_cast %105 : vector<1x16x16xf32> to vector<16x16xf32>
    %cst_61 = arith.constant dense<0.000000e+00> : vector<16x16xf32>
    %107 = tpu.matmul %96, %106, %cst_61 {dimension_numbers = #tpu.dot_dimension_numbers<[1], [0], [0], [1], [0, 0, 1, 1], [], []>} : vector<16x16xf32>, vector<16x16xf32>, vector<16x16xf32> -> vector<16x16xf32>
    %108 = vector.extract_strided_slice %103 {offsets = [0, 0, 0], sizes = [1, 24, 16], strides = [1, 1, 1]} : vector<3x24x16xf32> to vector<1x24x16xf32>
    %109 = vector.shape_cast %108 : vector<1x24x16xf32> to vector<24x16xf32>
    %cst_62 = arith.constant dense<0.000000e+00> : vector<24x16xf32>
    %110 = tpu.matmul %109, %107, %cst_62 {dimension_numbers = #tpu.dot_dimension_numbers<[1], [0], [0], [1], [0, 0, 1, 1], [], []>} : vector<24x16xf32>, vector<16x16xf32>, vector<24x16xf32> -> vector<24x16xf32>
    %111 = vector.extract_strided_slice %103 {offsets = [1, 0, 0], sizes = [1, 24, 16], strides = [1, 1, 1]} : vector<3x24x16xf32> to vector<1x24x16xf32>
    %112 = vector.shape_cast %111 : vector<1x24x16xf32> to vector<24x16xf32>
    %cst_63 = arith.constant dense<0.000000e+00> : vector<24x16xf32>
    %113 = tpu.matmul %112, %96, %cst_63 {dimension_numbers = #tpu.dot_dimension_numbers<[1], [0], [0], [1], [0, 0, 1, 1], [], []>} : vector<24x16xf32>, vector<16x16xf32>, vector<24x16xf32> -> vector<24x16xf32>
    %114 = arith.addf %110, %113 : vector<24x16xf32>
    %115 = vector.extract_strided_slice %0 {offsets = [3, 0, 0], sizes = [1, 16, 16], strides = [1, 1, 1]} : vector<5x16x16xf32> to vector<1x16x16xf32>
    %116 = vector.shape_cast %115 : vector<1x16x16xf32> to vector<16x16xf32>
    %cst_64 = arith.constant dense<0.000000e+00> : vector<16x16xf32>
    %117 = tpu.matmul %96, %116, %cst_64 {dimension_numbers = #tpu.dot_dimension_numbers<[1], [0], [0], [1], [0, 0, 1, 1], [], []>} : vector<16x16xf32>, vector<16x16xf32>, vector<16x16xf32> -> vector<16x16xf32>
    %118 = vector.extract_strided_slice %103 {offsets = [2, 0, 0], sizes = [1, 24, 16], strides = [1, 1, 1]} : vector<3x24x16xf32> to vector<1x24x16xf32>
    %119 = vector.shape_cast %118 : vector<1x24x16xf32> to vector<24x16xf32>
    %cst_65 = arith.constant dense<0.000000e+00> : vector<24x16xf32>
    %120 = tpu.matmul %119, %117, %cst_65 {dimension_numbers = #tpu.dot_dimension_numbers<[1], [0], [0], [1], [0, 0, 1, 1], [], []>} : vector<24x16xf32>, vector<16x16xf32>, vector<24x16xf32> -> vector<24x16xf32>
    %121 = arith.addf %114, %120 : vector<24x16xf32>
    %122 = vector.broadcast %104 : vector<24x1xf32> to vector<24x16xf32>
    %123 = arith.addf %121, %122 : vector<24x16xf32>
    %c0_66 = arith.constant 0 : index
    %c0_67 = arith.constant 0 : index
    %124 = vector.load %arg21[%c0_66, %c0_67] : memref<48x8xf32, #tpu.memory_space<vmem>>, vector<48x8xf32>
    %125 = vector.broadcast %4 : vector<1x8xf32> to vector<48x8xf32>
    %126 = arith.mulf %124, %125 : vector<48x8xf32>
    %cst_68 = arith.constant dense<0.000000e+00> : vector<48xf32>
    %127 = vector.multi_reduction <add>, %126, %cst_68 [1] : vector<48x8xf32> to vector<48xf32>
    %128 = vector.shape_cast %127 : vector<48xf32> to vector<48x1xf32>
    %c0_69 = arith.constant 0 : index
    %c0_70 = arith.constant 0 : index
    %129 = vector.load %arg22[%c0_69, %c0_70] : memref<48x1xf32, #tpu.memory_space<vmem>>, vector<48x1xf32>
    %130 = arith.addf %128, %129 : vector<48x1xf32>
    %c0_71 = arith.constant 0 : index
    %c0_72 = arith.constant 0 : index
    %c0_73 = arith.constant 0 : index
    %131 = vector.load %arg19[%c0_71, %c0_72, %c0_73] : memref<3x48x24xf32, #tpu.memory_space<vmem>>, vector<3x48x24xf32>
    %132 = vector.extract_strided_slice %0 {offsets = [1, 0, 0], sizes = [1, 16, 16], strides = [1, 1, 1]} : vector<5x16x16xf32> to vector<1x16x16xf32>
    %133 = vector.shape_cast %132 : vector<1x16x16xf32> to vector<16x16xf32>
    %cst_74 = arith.constant dense<0.000000e+00> : vector<24x16xf32>
    %134 = tpu.matmul %123, %133, %cst_74 {dimension_numbers = #tpu.dot_dimension_numbers<[1], [0], [0], [1], [0, 0, 1, 1], [], []>} : vector<24x16xf32>, vector<16x16xf32>, vector<24x16xf32> -> vector<24x16xf32>
    %135 = vector.extract_strided_slice %131 {offsets = [0, 0, 0], sizes = [1, 48, 24], strides = [1, 1, 1]} : vector<3x48x24xf32> to vector<1x48x24xf32>
    %136 = vector.shape_cast %135 : vector<1x48x24xf32> to vector<48x24xf32>
    %cst_75 = arith.constant dense<0.000000e+00> : vector<48x16xf32>
    %137 = tpu.matmul %136, %134, %cst_75 {dimension_numbers = #tpu.dot_dimension_numbers<[1], [0], [0], [1], [0, 0, 1, 1], [], []>} : vector<48x24xf32>, vector<24x16xf32>, vector<48x16xf32> -> vector<48x16xf32>
    %138 = vector.extract_strided_slice %131 {offsets = [1, 0, 0], sizes = [1, 48, 24], strides = [1, 1, 1]} : vector<3x48x24xf32> to vector<1x48x24xf32>
    %139 = vector.shape_cast %138 : vector<1x48x24xf32> to vector<48x24xf32>
    %cst_76 = arith.constant dense<0.000000e+00> : vector<48x16xf32>
    %140 = tpu.matmul %139, %123, %cst_76 {dimension_numbers = #tpu.dot_dimension_numbers<[1], [0], [0], [1], [0, 0, 1, 1], [], []>} : vector<48x24xf32>, vector<24x16xf32>, vector<48x16xf32> -> vector<48x16xf32>
    %141 = arith.addf %137, %140 : vector<48x16xf32>
    %142 = vector.extract_strided_slice %0 {offsets = [3, 0, 0], sizes = [1, 16, 16], strides = [1, 1, 1]} : vector<5x16x16xf32> to vector<1x16x16xf32>
    %143 = vector.shape_cast %142 : vector<1x16x16xf32> to vector<16x16xf32>
    %cst_77 = arith.constant dense<0.000000e+00> : vector<24x16xf32>
    %144 = tpu.matmul %123, %143, %cst_77 {dimension_numbers = #tpu.dot_dimension_numbers<[1], [0], [0], [1], [0, 0, 1, 1], [], []>} : vector<24x16xf32>, vector<16x16xf32>, vector<24x16xf32> -> vector<24x16xf32>
    %145 = vector.extract_strided_slice %131 {offsets = [2, 0, 0], sizes = [1, 48, 24], strides = [1, 1, 1]} : vector<3x48x24xf32> to vector<1x48x24xf32>
    %146 = vector.shape_cast %145 : vector<1x48x24xf32> to vector<48x24xf32>
    %cst_78 = arith.constant dense<0.000000e+00> : vector<48x16xf32>
    %147 = tpu.matmul %146, %144, %cst_78 {dimension_numbers = #tpu.dot_dimension_numbers<[1], [0], [0], [1], [0, 0, 1, 1], [], []>} : vector<48x24xf32>, vector<24x16xf32>, vector<48x16xf32> -> vector<48x16xf32>
    %148 = arith.addf %141, %147 : vector<48x16xf32>
    %c0_79 = arith.constant 0 : index
    %c0_80 = arith.constant 0 : index
    %149 = vector.load %arg20[%c0_79, %c0_80] : memref<48x1xf32, #tpu.memory_space<vmem>>, vector<48x1xf32>
    %150 = vector.broadcast %149 : vector<48x1xf32> to vector<48x16xf32>
    %151 = arith.addf %148, %150 : vector<48x16xf32>
    %152 = vector.broadcast %130 : vector<48x1xf32> to vector<48x16xf32>
    %153 = arith.addf %151, %152 : vector<48x16xf32>
    %c0_81 = arith.constant 0 : index
    %c0_82 = arith.constant 0 : index
    %154 = vector.load %arg23[%c0_81, %c0_82] : memref<48x1xf32, #tpu.memory_space<vmem>>, vector<48x1xf32>
    %c0_83 = arith.constant 0 : index
    %c0_84 = arith.constant 0 : index
    %155 = vector.load %arg24[%c0_83, %c0_84] : memref<48x1xf32, #tpu.memory_space<vmem>>, vector<48x1xf32>
    %cst_85 = arith.constant dense<0.000000e+00> : vector<16xf32>
    %156 = vector.multi_reduction <add>, %153, %cst_85 [0] : vector<48x16xf32> to vector<16xf32>
    %157 = vector.shape_cast %156 : vector<16xf32> to vector<1x16xf32>
    %cst_86 = arith.constant 4.800000e+01 : f32
    %158 = vector.broadcast %cst_86 : f32 to vector<1x16xf32>
    %159 = arith.divf %157, %158 : vector<1x16xf32>
    %160 = vector.broadcast %159 : vector<1x16xf32> to vector<48x16xf32>
    %161 = arith.subf %153, %160 : vector<48x16xf32>
    %162 = arith.mulf %161, %161 : vector<48x16xf32>
    %cst_87 = arith.constant dense<0.000000e+00> : vector<16xf32>
    %163 = vector.multi_reduction <add>, %162, %cst_87 [0] : vector<48x16xf32> to vector<16xf32>
    %164 = vector.shape_cast %163 : vector<16xf32> to vector<1x16xf32>
    %cst_88 = arith.constant 4.800000e+01 : f32
    %165 = vector.broadcast %cst_88 : f32 to vector<1x16xf32>
    %166 = arith.divf %164, %165 : vector<1x16xf32>
    %cst_89 = arith.constant 9.99999974E-6 : f32
    %167 = vector.broadcast %cst_89 : f32 to vector<1x16xf32>
    %168 = arith.addf %166, %167 : vector<1x16xf32>
    %169 = math.rsqrt %168 : vector<1x16xf32>
    %170 = vector.broadcast %169 : vector<1x16xf32> to vector<48x16xf32>
    %171 = arith.mulf %161, %170 : vector<48x16xf32>
    %172 = vector.broadcast %154 : vector<48x1xf32> to vector<48x16xf32>
    %173 = arith.mulf %171, %172 : vector<48x16xf32>
    %174 = vector.broadcast %155 : vector<48x1xf32> to vector<48x16xf32>
    %175 = arith.addf %173, %174 : vector<48x16xf32>
    %176 = vector.extract_strided_slice %175 {offsets = [0, 0], sizes = [24, 16], strides = [1, 1]} : vector<48x16xf32> to vector<24x16xf32>
    %177 = vector.extract_strided_slice %175 {offsets = [24, 0], sizes = [24, 16], strides = [1, 1]} : vector<48x16xf32> to vector<24x16xf32>
    %cst_90 = arith.constant 0.000000e+00 : f32
    %178 = vector.broadcast %cst_90 : f32 to vector<24x16xf32>
    %179 = arith.subf %178, %177 : vector<24x16xf32>
    %180 = math.exp %179 : vector<24x16xf32>
    %cst_91 = arith.constant 1.000000e+00 : f32
    %181 = vector.broadcast %cst_91 : f32 to vector<24x16xf32>
    %182 = arith.addf %181, %180 : vector<24x16xf32>
    %cst_92 = arith.constant 1.000000e+00 : f32
    %183 = vector.broadcast %cst_92 : f32 to vector<24x16xf32>
    %184 = arith.divf %183, %182 : vector<24x16xf32>
    %185 = arith.mulf %176, %184 : vector<24x16xf32>
    %c0_93 = arith.constant 0 : index
    %c0_94 = arith.constant 0 : index
    %186 = vector.load %arg27[%c0_93, %c0_94] : memref<8x24xf32, #tpu.memory_space<vmem>>, vector<8x24xf32>
    %cst_95 = arith.constant dense<0.000000e+00> : vector<8x16xf32>
    %187 = tpu.matmul %186, %185, %cst_95 {dimension_numbers = #tpu.dot_dimension_numbers<[1], [0], [0], [1], [0, 0, 1, 1], [], []>} : vector<8x24xf32>, vector<24x16xf32>, vector<8x16xf32> -> vector<8x16xf32>
    %188 = arith.addf %102, %187 : vector<8x16xf32>
    %c0_96 = arith.constant 0 : index
    %c0_97 = arith.constant 0 : index
    %189 = vector.load %arg28[%c0_96, %c0_97] : memref<8x1xf32, #tpu.memory_space<vmem>>, vector<8x1xf32>
    %190 = vector.broadcast %189 : vector<8x1xf32> to vector<8x16xf32>
    %191 = arith.addf %188, %190 : vector<8x16xf32>
    %cst_98 = arith.constant 5.000000e-01 : f32
    %192 = vector.broadcast %cst_98 : f32 to vector<8x16xf32>
    %193 = arith.mulf %191, %192 : vector<8x16xf32>
    %cst_99 = arith.constant 0.000000e+00 : f32
    %194 = vector.broadcast %cst_99 : f32 to vector<8x16xf32>
    %195 = arith.maximumf %193, %194 : vector<8x16xf32>
    %c0_100 = arith.constant 0 : index
    %c0_101 = arith.constant 0 : index
    %196 = vector.load %arg29[%c0_100, %c0_101] : memref<8x8xf32, #tpu.memory_space<vmem>>, vector<8x8xf32>
    %cst_102 = arith.constant dense<0.000000e+00> : vector<8x16xf32>
    %197 = tpu.matmul %196, %195, %cst_102 {dimension_numbers = #tpu.dot_dimension_numbers<[1], [0], [0], [1], [0, 0, 1, 1], [], []>} : vector<8x8xf32>, vector<8x16xf32>, vector<8x16xf32> -> vector<8x16xf32>
    %c0_103 = arith.constant 0 : index
    %c0_104 = arith.constant 0 : index
    %198 = vector.load %arg30[%c0_103, %c0_104] : memref<8x1xf32, #tpu.memory_space<vmem>>, vector<8x1xf32>
    %199 = vector.broadcast %198 : vector<8x1xf32> to vector<8x16xf32>
    %200 = arith.addf %197, %199 : vector<8x16xf32>
    %cst_105 = arith.constant 0.000000e+00 : f32
    %201 = vector.broadcast %cst_105 : f32 to vector<8x16xf32>
    %202 = arith.maximumf %200, %201 : vector<8x16xf32>
    %c0_106 = arith.constant 0 : index
    %c0_107 = arith.constant 0 : index
    %203 = vector.load %arg31[%c0_106, %c0_107] : memref<12x8xf32, #tpu.memory_space<vmem>>, vector<12x8xf32>
    %cst_108 = arith.constant dense<0.000000e+00> : vector<12x16xf32>
    %204 = tpu.matmul %203, %202, %cst_108 {dimension_numbers = #tpu.dot_dimension_numbers<[1], [0], [0], [1], [0, 0, 1, 1], [], []>} : vector<12x8xf32>, vector<8x16xf32>, vector<12x16xf32> -> vector<12x16xf32>
    %c0_109 = arith.constant 0 : index
    %c0_110 = arith.constant 0 : index
    %205 = vector.load %arg32[%c0_109, %c0_110] : memref<12x1xf32, #tpu.memory_space<vmem>>, vector<12x1xf32>
    %206 = vector.broadcast %205 : vector<12x1xf32> to vector<12x16xf32>
    %207 = arith.addf %204, %206 : vector<12x16xf32>
    %c0_111 = arith.constant 0 : index
    %c0_112 = arith.constant 0 : index
    %c0_113 = arith.constant 0 : index
    %208 = vector.load %arg33[%c0_111, %c0_112, %c0_113] : memref<1x12x16xf32, #tpu.memory_space<vmem>>, vector<1x12x16xf32>
    %209 = vector.shape_cast %208 : vector<1x12x16xf32> to vector<12x16xf32>
    %210 = vector.shape_cast %207 : vector<12x16xf32> to vector<1x12x16xf32>
    tpu.vector_store %arg33[%c0_111, %c0_112, %c0_113], %210 {strides = array<i32>} : memref<1x12x16xf32, #tpu.memory_space<vmem>>, vector<1x12x16xf32>,
    %c0_114 = arith.constant 0 : index
    %c0_115 = arith.constant 0 : index
    %c0_116 = arith.constant 0 : index
    %211 = vector.load %arg3[%c0_114, %c0_115, %c0_116] : memref<1x12x16xf32, #tpu.memory_space<vmem>>, vector<1x12x16xf32>
    %212 = vector.shape_cast %211 : vector<1x12x16xf32> to vector<12x16xf32>
    %213 = arith.subf %207, %212 : vector<12x16xf32>
    %214 = arith.mulf %213, %213 : vector<12x16xf32>
    %cst_117 = arith.constant dense<0.000000e+00> : vector<12xf32>
    %215 = vector.multi_reduction <add>, %214, %cst_117 [1] : vector<12x16xf32> to vector<12xf32>
    %216 = vector.shape_cast %215 : vector<12xf32> to vector<12x1xf32>
    %cst_118 = arith.constant dense<0.000000e+00> : vector<1xf32>
    %217 = vector.multi_reduction <add>, %216, %cst_118 [0] : vector<12x1xf32> to vector<1xf32>
    %218 = vector.shape_cast %217 : vector<1xf32> to vector<1x1xf32>
    %c0_119 = arith.constant 0 : index
    %c0_120 = arith.constant 0 : index
    %c0_121 = arith.constant 0 : index
    %219 = vector.load %arg34[%c0_119, %c0_120, %c0_121] : memref<1x1x1xf32, #tpu.memory_space<vmem>>, vector<1x1x1xf32>
    %220 = vector.shape_cast %219 : vector<1x1x1xf32> to vector<1x1xf32>
    %221 = vector.shape_cast %218 : vector<1x1xf32> to vector<1x1x1xf32>
    tpu.vector_store %arg34[%c0_119, %c0_120, %c0_121], %221 {strides = array<i32>} : memref<1x1x1xf32, #tpu.memory_space<vmem>>, vector<1x1x1xf32>,
    return
  }
  func.func @transform_0(%arg0: i32) -> (i32, i32, i32) {
    %c0_i32 = arith.constant 0 : i32
    %c0_i32_0 = arith.constant 0 : i32
    %c0_i32_1 = arith.constant 0 : i32
    return %arg0, %c0_i32, %c0_i32_0 : i32, i32, i32
  }
  func.func @transform_1(%arg0: i32) -> (i32, i32, i32) {
    %c0_i32 = arith.constant 0 : i32
    %c0_i32_0 = arith.constant 0 : i32
    %c0_i32_1 = arith.constant 0 : i32
    return %arg0, %c0_i32, %c0_i32_0 : i32, i32, i32
  }
  func.func @transform_2(%arg0: i32) -> (i32, i32, i32) {
    %c0_i32 = arith.constant 0 : i32
    %c0_i32_0 = arith.constant 0 : i32
    %c0_i32_1 = arith.constant 0 : i32
    return %arg0, %c0_i32, %c0_i32_0 : i32, i32, i32
  }
  func.func @transform_3(%arg0: i32) -> (i32, i32, i32) {
    %c0_i32 = arith.constant 0 : i32
    %c0_i32_0 = arith.constant 0 : i32
    %c0_i32_1 = arith.constant 0 : i32
    %c0_i32_2 = arith.constant 0 : i32
    return %c0_i32, %c0_i32_0, %c0_i32_1 : i32, i32, i32
  }
  func.func @transform_4(%arg0: i32) -> (i32, i32, i32) {
    %c0_i32 = arith.constant 0 : i32
    %c0_i32_0 = arith.constant 0 : i32
    %c0_i32_1 = arith.constant 0 : i32
    %c0_i32_2 = arith.constant 0 : i32
    return %c0_i32, %c0_i32_0, %c0_i32_1 : i32, i32, i32
  }
  func.func @transform_5(%arg0: i32) -> (i32, i32) {
    %c0_i32 = arith.constant 0 : i32
    %c0_i32_0 = arith.constant 0 : i32
    %c0_i32_1 = arith.constant 0 : i32
    return %c0_i32, %c0_i32_0 : i32, i32
  }
  func.func @transform_6(%arg0: i32) -> (i32, i32, i32) {
    %c0_i32 = arith.constant 0 : i32
    %c0_i32_0 = arith.constant 0 : i32
    %c0_i32_1 = arith.constant 0 : i32
    %c0_i32_2 = arith.constant 0 : i32
    return %c0_i32, %c0_i32_0, %c0_i32_1 : i32, i32, i32
  }
  func.func @transform_7(%arg0: i32) -> (i32, i32) {
    %c0_i32 = arith.constant 0 : i32
    %c0_i32_0 = arith.constant 0 : i32
    %c0_i32_1 = arith.constant 0 : i32
    return %c0_i32, %c0_i32_0 : i32, i32
  }
  func.func @transform_8(%arg0: i32) -> (i32, i32) {
    %c0_i32 = arith.constant 0 : i32
    %c0_i32_0 = arith.constant 0 : i32
    %c0_i32_1 = arith.constant 0 : i32
    return %c0_i32, %c0_i32_0 : i32, i32
  }
  func.func @transform_9(%arg0: i32) -> (i32, i32) {
    %c0_i32 = arith.constant 0 : i32
    %c0_i32_0 = arith.constant 0 : i32
    %c0_i32_1 = arith.constant 0 : i32
    return %c0_i32, %c0_i32_0 : i32, i32
  }
  func.func @transform_10(%arg0: i32) -> (i32, i32) {
    %c0_i32 = arith.constant 0 : i32
    %c0_i32_0 = arith.constant 0 : i32
    %c0_i32_1 = arith.constant 0 : i32
    return %c0_i32, %c0_i32_0 : i32, i32
  }
  func.func @transform_11(%arg0: i32) -> (i32, i32) {
    %c0_i32 = arith.constant 0 : i32
    %c0_i32_0 = arith.constant 0 : i32
    %c0_i32_1 = arith.constant 0 : i32
    return %c0_i32, %c0_i32_0 : i32, i32
  }
  func.func @transform_12(%arg0: i32) -> (i32, i32) {
    %c0_i32 = arith.constant 0 : i32
    %c0_i32_0 = arith.constant 0 : i32
    %c0_i32_1 = arith.constant 0 : i32
    return %c0_i32, %c0_i32_0 : i32, i32
  }
  func.func @transform_13(%arg0: i32) -> (i32, i32) {
    %c0_i32 = arith.constant 0 : i32
    %c0_i32_0 = arith.constant 0 : i32
    %c0_i32_1 = arith.constant 0 : i32
    return %c0_i32, %c0_i32_0 : i32, i32
  }
  func.func @transform_14(%arg0: i32) -> (i32, i32) {
    %c0_i32 = arith.constant 0 : i32
    %c0_i32_0 = arith.constant 0 : i32
    %c0_i32_1 = arith.constant 0 : i32
    return %c0_i32, %c0_i32_0 : i32, i32
  }
  func.func @transform_15(%arg0: i32) -> (i32, i32) {
    %c0_i32 = arith.constant 0 : i32
    %c0_i32_0 = arith.constant 0 : i32
    %c0_i32_1 = arith.constant 0 : i32
    return %c0_i32, %c0_i32_0 : i32, i32
  }
  func.func @transform_16(%arg0: i32) -> (i32, i32, i32) {
    %c0_i32 = arith.constant 0 : i32
    %c0_i32_0 = arith.constant 0 : i32
    %c0_i32_1 = arith.constant 0 : i32
    %c0_i32_2 = arith.constant 0 : i32
    return %c0_i32, %c0_i32_0, %c0_i32_1 : i32, i32, i32
  }
  func.func @transform_17(%arg0: i32) -> (i32, i32) {
    %c0_i32 = arith.constant 0 : i32
    %c0_i32_0 = arith.constant 0 : i32
    %c0_i32_1 = arith.constant 0 : i32
    return %c0_i32, %c0_i32_0 : i32, i32
  }
  func.func @transform_18(%arg0: i32) -> (i32, i32, i32) {
    %c0_i32 = arith.constant 0 : i32
    %c0_i32_0 = arith.constant 0 : i32
    %c0_i32_1 = arith.constant 0 : i32
    %c0_i32_2 = arith.constant 0 : i32
    return %c0_i32, %c0_i32_0, %c0_i32_1 : i32, i32, i32
  }
  func.func @transform_19(%arg0: i32) -> (i32, i32) {
    %c0_i32 = arith.constant 0 : i32
    %c0_i32_0 = arith.constant 0 : i32
    %c0_i32_1 = arith.constant 0 : i32
    return %c0_i32, %c0_i32_0 : i32, i32
  }
  func.func @transform_20(%arg0: i32) -> (i32, i32) {
    %c0_i32 = arith.constant 0 : i32
    %c0_i32_0 = arith.constant 0 : i32
    %c0_i32_1 = arith.constant 0 : i32
    return %c0_i32, %c0_i32_0 : i32, i32
  }
  func.func @transform_21(%arg0: i32) -> (i32, i32) {
    %c0_i32 = arith.constant 0 : i32
    %c0_i32_0 = arith.constant 0 : i32
    %c0_i32_1 = arith.constant 0 : i32
    return %c0_i32, %c0_i32_0 : i32, i32
  }
  func.func @transform_22(%arg0: i32) -> (i32, i32) {
    %c0_i32 = arith.constant 0 : i32
    %c0_i32_0 = arith.constant 0 : i32
    %c0_i32_1 = arith.constant 0 : i32
    return %c0_i32, %c0_i32_0 : i32, i32
  }
  func.func @transform_23(%arg0: i32) -> (i32, i32) {
    %c0_i32 = arith.constant 0 : i32
    %c0_i32_0 = arith.constant 0 : i32
    %c0_i32_1 = arith.constant 0 : i32
    return %c0_i32, %c0_i32_0 : i32, i32
  }
  func.func @transform_24(%arg0: i32) -> (i32, i32) {
    %c0_i32 = arith.constant 0 : i32
    %c0_i32_0 = arith.constant 0 : i32
    %c0_i32_1 = arith.constant 0 : i32
    return %c0_i32, %c0_i32_0 : i32, i32
  }
  func.func @transform_25(%arg0: i32) -> (i32, i32) {
    %c0_i32 = arith.constant 0 : i32
    %c0_i32_0 = arith.constant 0 : i32
    %c0_i32_1 = arith.constant 0 : i32
    return %c0_i32, %c0_i32_0 : i32, i32
  }
  func.func @transform_26(%arg0: i32) -> (i32, i32) {
    %c0_i32 = arith.constant 0 : i32
    %c0_i32_0 = arith.constant 0 : i32
    %c0_i32_1 = arith.constant 0 : i32
    return %c0_i32, %c0_i32_0 : i32, i32
  }
  func.func @transform_27(%arg0: i32) -> (i32, i32) {
    %c0_i32 = arith.constant 0 : i32
    %c0_i32_0 = arith.constant 0 : i32
    %c0_i32_1 = arith.constant 0 : i32
    return %c0_i32, %c0_i32_0 : i32, i32
  }
  func.func @transform_28(%arg0: i32) -> (i32, i32) {
    %c0_i32 = arith.constant 0 : i32
    %c0_i32_0 = arith.constant 0 : i32
    %c0_i32_1 = arith.constant 0 : i32
    return %c0_i32, %c0_i32_0 : i32, i32
  }
  func.func @transform_29(%arg0: i32) -> (i32, i32) {
    %c0_i32 = arith.constant 0 : i32
    %c0_i32_0 = arith.constant 0 : i32
    %c0_i32_1 = arith.constant 0 : i32
    return %c0_i32, %c0_i32_0 : i32, i32
  }
  func.func @transform_30(%arg0: i32) -> (i32, i32) {
    %c0_i32 = arith.constant 0 : i32
    %c0_i32_0 = arith.constant 0 : i32
    %c0_i32_1 = arith.constant 0 : i32
    return %c0_i32, %c0_i32_0 : i32, i32
  }
  func.func @transform_31(%arg0: i32) -> (i32, i32) {
    %c0_i32 = arith.constant 0 : i32
    %c0_i32_0 = arith.constant 0 : i32
    %c0_i32_1 = arith.constant 0 : i32
    return %c0_i32, %c0_i32_0 : i32, i32
  }
  func.func @transform_32(%arg0: i32) -> (i32, i32, i32) {
    %c0_i32 = arith.constant 0 : i32
    %c0_i32_0 = arith.constant 0 : i32
    %c0_i32_1 = arith.constant 0 : i32
    return %arg0, %c0_i32, %c0_i32_0 : i32, i32, i32
  }
  func.func @transform_33(%arg0: i32) -> (i32, i32, i32) {
    %c0_i32 = arith.constant 0 : i32
    %c0_i32_0 = arith.constant 0 : i32
    %c0_i32_1 = arith.constant 0 : i32
    return %arg0, %c0_i32, %c0_i32_0 : i32, i32, i32
  }
}

</mosaic_0001>

<bundles_post_ra>
// kernel: _lambda_.3
= control target key start
LH: loop header
LB: loop body
LE: loop exit
PB: predicated region body
PF: predicated region fallthrough
CT: control target
= control target key end

     0   :  { %s4603_s6 = smov 1   ;;  %s4604_s10 = smov 2   ;;  %s5209_s0 = inlined_call_operand.smem [shape: u32[34], index: -1, kind: input, shape index: {}] }
   0x1   :  { %s4646_s5 = sld [smem:[%s5209_s0]]   ;;  %s4605_s14 = smov 3  }
   0x2   :  { %s4651_s9 = sld [smem:[%s5209_s0 + %s4603_s6]]   ;;  %s4606_s18 = smov 4  }
   0x3   :  { %s4656_s13 = sld [smem:[%s5209_s0 + %s4604_s10]]   ;;  %s4607_s22 = smov 5  }
   0x4   :  { %s4661_s17 = sld [smem:[%s5209_s0 + %s4605_s14]]   ;;  %s4608_s26 = smov 6  }
   0x5   :  { %s4666_s21 = sld [smem:[%s5209_s0 + %s4606_s18]]   ;;  %s4609_s30 = smov 7  }
   0x6   :  { %s4671_s25 = sld [smem:[%s5209_s0 + %s4607_s22]]   ;;  %s4610_s4 = smov 8  }
   0x7   :  { %s4676_s29 = sld [smem:[%s5209_s0 + %s4608_s26]]   ;;  %s4611_s10 = smov 9  }
   0x8   :  { %s4681_s3 = sld [smem:[%s5209_s0 + %s4609_s30]]   ;;  %s4612_s15 = smov 10  }
   0x9   :  { %5217 = sst [smem:[#allocation2_spill]] %s4656_s13  ;;  %s4613_s20 = smov 11  }
   0xa   :  { %s4686_s8 = sld [smem:[%s5209_s0 + %s4610_s4]]   ;;  %s4614_s26 = smov 12  }
   0xb   :  { %s4691_s14 = sld [smem:[%s5209_s0 + %s4611_s10]]   ;;  %s4615_s1 = smov 13  }
   0xc   :  { %s4696_s19 = sld [smem:[%s5209_s0 + %s4612_s15]]   ;;  %s4616_s7 = smov 14  }
   0xd   :  { %5218 = sst [smem:[#allocation3_spill]] %s4676_s29  ;;  %s4617_s15 = smov 15  }
   0xe   :  { %s4701_s24 = sld [smem:[%s5209_s0 + %s4613_s20]]   ;;  %s4618_s22 = smov 16  }
   0xf   :  { %s4706_s30 = sld [smem:[%s5209_s0 + %s4614_s26]]   ;;  %s4619_s28 = smov 17  }
  0x10   :  { %s4711_s6 = sld [smem:[%s5209_s0 + %s4615_s1]]  }
  0x11   :  { %s4716_s12 = sld [smem:[%s5209_s0 + %s4616_s7]]   ;;  %s4620_s7 = smov 18  }
  0x12   :  { %s4721_s20 = sld [smem:[%s5209_s0 + %s4617_s15]]   ;;  %s4621_s15 = smov 19  }
  0x13   :  { %s4726_s27 = sld [smem:[%s5209_s0 + %s4618_s22]]   ;;  %s4622_s22 = smov 20  }
  0x14   :  { %s4731_s4 = sld [smem:[%s5209_s0 + %s4619_s28]]   ;;  %s4623_s28 = smov 21  }
  0x15   :  { %5219 = sst [smem:[#allocation4_spill]] %s4706_s30 }
  0x16   :  { %s4736_s13 = sld [smem:[%s5209_s0 + %s4620_s7]]   ;;  %s4624_s7 = smov 22  }
  0x17   :  { %5220 = sst [smem:[#allocation5_spill]] %s4716_s12 }
  0x18   :  { %5221 = sst [smem:[#allocation6_spill]] %s4721_s20 }
  0x19   :  { %5222 = sst [smem:[#allocation7_spill]] %s4726_s27 }
  0x1a   :  { %s4741_s12 = sld [smem:[%s5209_s0 + %s4621_s15]]   ;;  %s4625_s15 = smov 23  }
  0x1b   :  { %s4746_s27 = sld [smem:[%s5209_s0 + %s4622_s22]]   ;;  %s4626_s22 = smov 26  }
  0x1c   :  { %5223 = sst [smem:[#allocation8_spill]] %s4736_s13 }
  0x1d   :  { %s4751_s30 = sld [smem:[%s5209_s0 + %s4623_s28]]   ;;  %s4627_s28 = smov 27  }
  0x1e   :  { %s4756_s13 = sld [smem:[%s5209_s0 + %s4624_s7]]   ;;  %s4628_s7 = smov 28  }
  0x1f   :  { %s4761_s20 = sld [smem:[%s5209_s0 + %s4625_s15]]   ;;  %s4629_s15 = smov 29  }
  0x20   :  { %s4766_s29 = sld [smem:[%s5209_s0 + %s4626_s22]]   ;;  %s4630_s22 = smov 30  }
  0x23   :  { %5224 = sst [smem:[#allocation9_spill]] %s4751_s30 }
  0x24   :  { %5225 = sst [smem:[#allocation10_spill]] %s4756_s13 }
  0x25   :  { %5226 = sst [smem:[#allocation11_spill]] %s4761_s20 }
  0x26   :  { %5227 = sst [smem:[#allocation12_spill]] %s4766_s29 }
  0x27   :  { %s4771_s30 = sld [smem:[%s5209_s0 + %s4627_s28]]   ;;  %s4631_s28 = smov 31  }
  0x28   :  { %s4776_s13 = sld [smem:[%s5209_s0 + %s4628_s7]]   ;;  %s4632_s7 = smov 32  }
  0x29   :  { %s4781_s20 = sld [smem:[%s5209_s0 + %s4629_s15]]   ;;  %s4633_s15 = smov 33  }
  0x2a   :  { %s4786_s29 = sld [smem:[%s5209_s0 + %s4630_s22]]   ;;  %s4803_s22 = smov 0  }
  0x2d   :  { %5228 = sst [smem:[#allocation13_spill]] %s4771_s30 }
  0x2e   :  { %5229 = sst [smem:[#allocation14_spill]] %s4776_s13 }
  0x2f   :  { %5230 = sst [smem:[#allocation15_spill]] %s4781_s20 }
  0x30   :  { %s4791_s30 = sld [smem:[%s5209_s0 + %s4631_s28]]  }
  0x31   :  { %s4796_s13 = sld [smem:[%s5209_s0 + %s4632_s7]]  }
  0x32   :  { %s4801_s20 = sld [smem:[%s5209_s0 + %s4633_s15]]  }
  0x33 LB: > { %s4001_s23 = sadd.s32 4294967295, %s4601_s22   ;;  %p4005_p0 = scmp.ge.s32.totalorder %s4601_s22, 1  ;;  %s4601_s22 = sphi %s4803_s22, %s78_s22  }
  0x34   : > { %p941_p1 = scmp.lt.s32.totalorder %s4601_s22, 3 }
  0x36   : > { %p942_p2 = pnand %p4005_p0, %p941_p1 }
  0x37   : > { %v1067_v0 = vld [vmem:[%s4671_s25] sm:$0xff] (!%p942_p2)  ;;  %v1055_v1 = vld [vmem:[%s4661_s17 + $0x10] sm:$0xff] (!%p942_p2)  ;;  %v1056_v2 = vld [vmem:[%s4661_s17 + $0x18] sm:$0xff] (!%p942_p2)  ;;  %v4634_v3 = vmov (!%p942_p2), 0   ;;  %v4635_v4 = vmov (!%p942_p2), 0.0|0.0   ;;  %p1035_p3 = scmp.lt.s32.totalorder (!%p942_p2), %s4001_s23, 1 }
  0x38   : > { %945 = sbr.rel (%p942_p2) target bundleno = 3105 (0xc21), region = 148  ;;  %4569 = vset.pattern.permute.xlu0 (!%p942_p2), %v4634_v3  ;;  %4431 = vmatprep.subr.bf16.mxu1 (!%p942_p2), %v4635_v4  ;;  %v4815_v5 = vpack.c.bf16 (!%p942_p2), %v1056_v2, %v1055_v1  ;;  %v1057_v6 = vld [vmem:[%s4661_s17 + $0x30] sm:$0xff] (!%p942_p2)  ;;  %v1058_v7 = vld [vmem:[%s4661_s17 + $0x38] sm:$0xff] (!%p942_p2)  ;;  %vm4636_vm0 = vmmov (!%p942_p2), 0   ;;  %v4637_v8 = vmov (!%p942_p2), 0.0   ;;  %v1068_v10 = vld [vmem:[%s4671_s25 + $0x8] sm:$0xff] (!%p942_p2) }
  0x39   : > { %1461 = vperm.xlu0 (!%p942_p2), %4569, %v1067_v0   ;;  %4205 = vmatprep.mubr.msk.f32.mxu1 (!%p942_p2), %vm4636_vm0, %v4637_v8  ;;  %v4821_v9 = vpack.c.bf16 (!%p942_p2), %v1058_v7, %v1057_v6  ;;  %v1471_v11 = vld [vmem:[%s4686_s8] sm:$0xff] (!%p942_p2)  ;;  %v1472_v12 = vld [vmem:[%s4686_s8 + $0x8] sm:$0xff] (!%p942_p2)  ;;  %vm1069_vm1 = vcmask (!%p942_p2), 130048   ;;  %vm1143_vm2 = vcmask (!%p942_p2), 64512   ;;  %v1474_v17 = vld [vmem:[%s4686_s8 + $0x18] sm:$0xff] (!%p942_p2)  ;;  %s5231_s1 = sld [smem:[#allocation9_spill]] (!%p942_p2) }
  0x3a   : > { %4433 = vmatpush3.bf16.msra.mxu1 (!%p942_p2), %v4815_v5  ;;  %4434 = vmatprep.subr.bf16.mxu0 (!%p942_p2), %v4635_v4  ;;  %v1473_v22 = vld [vmem:[%s4686_s8 + $0x10] sm:$0xff] (!%p942_p2)  ;;  %v1968_v24 = vld [vmem:[%s4681_s3] sm:$0xff] (!%p942_p2)  ;;  %v1969_v26 = vld [vmem:[%s4681_s3 + $0x8] sm:$0xff] (!%p942_p2)  ;;  %s5232_s2 = sld [smem:[#allocation10_spill]] (!%p942_p2)  ;;  %s5233_s7 = sld [smem:[#allocation11_spill]] (!%p942_p2)  ;;  %vm2917_vm3 = vcmask (!%p942_p2), 195584  }
  0x3b   : > { %4436 = vmatpush3.bf16.msra.mxu0 (!%p942_p2), %v4821_v9  ;;  %4222 = vmatprep.mubr.msk.f32.mxu0 (!%p942_p2), %vm4636_vm0, %v4637_v8  ;;  %v1970_v27 = vld [vmem:[%s4681_s3 + $0x10] sm:$0xff] (!%p942_p2)  ;;  %v1064_v29 = vld [vmem:[%s4666_s21 + $0x18] sm:$0xff] (!%p942_p2)  ;;  %v1061_v30 = vld [vmem:[%s4666_s21] sm:$0xff] (!%p942_p2)  ;;  %s5234_s10 = sld [smem:[#allocation13_spill]] (!%p942_p2)  ;;  %s5235_s11 = sld [smem:[#allocation3_spill]] (!%p942_p2)  ;;  %vm3844_vm4 = vcmask (!%p942_p2), 125952  }
  0x3c   : > { %4570 = vset.pattern.permute.xlu1 (!%p942_p2), %v4634_v3  ;;  %4438 = vmatprep.subr.bf16.mxu0 (!%p942_p2), %v4815_v5  ;;  %v1063_v28 = vld [vmem:[%s4666_s21 + $0x10] sm:$0xff] (!%p942_p2)  ;;  %v1497_v31 = vld [vmem:[%s4691_s14] sm:$0xff] (!%p942_p2)  ;;  %v1498_v34 = vld [vmem:[%s4691_s14 + $0x8] sm:$0xff] (!%p942_p2)  ;;  %s5236_s15 = sld [smem:[#allocation6_spill]] (!%p942_p2)  ;;  %s5237_s16 = sld [smem:[#allocation15_spill]] (!%p942_p2)  ;;  %vm3858_vm5 = vcmask (!%p942_p2), 1043456  }
  0x3d   : > { %1466 = vperm.xlu0 (!%p942_p2), %4569, %v1068_v10   ;;  %v1971_v35 = vld [vmem:[%s4681_s3 + $0x18] sm:$0xff] (!%p942_p2)  ;;  %v2026_v38 = vld [vmem:[%s4701_s24 + $0x10] sm:$0xff] (!%p942_p2)  ;;  %v2020_v39 = vld [vmem:[%s4696_s19] sm:$0xff] (!%p942_p2)  ;;  %s5238_s18 = sld [smem:[#allocation4_spill]] (!%p942_p2)  ;;  %vm3867_vm6 = vcmask (!%p942_p2), 0  }
  0x3e   : > { %v2024_v41 = vld [vmem:[%s4701_s24] sm:$0xff] (!%p942_p2)  ;;  %v1499_v45 = vld [vmem:[%s4691_s14 + $0x10] sm:$0xff] (!%p942_p2)  ;;  %v1500_v47 = vld [vmem:[%s4691_s14 + $0x18] sm:$0xff] (!%p942_p2) }
  0x3f   : > { %s5246_s23 = smov (!%p1035_p3, %s4001_s23), 1  ;;  %v2135_v42 = vld [vmem:[%s4711_s6] sm:$0xff]  ;;  %v2323_v50 = vld [vmem:[%s4731_s4 + $0x10] sm:$0xff]  ;;  %v2023_v53 = vld [vmem:[%s4696_s19 + $0x18] sm:$0xff] }
  0x40   : > { %s4006_s0 = sshll.u32 %s5246_s23, 3  ;;  %s1041_s26 = scalar_lea.vmem %s4651_s9, %s5246_s23  ;;  %v2321_v44 = vld [vmem:[%s4731_s4] sm:$0xff]  ;;  %v2022_v52 = vld [vmem:[%s4696_s19 + $0x10] sm:$0xff]  ;;  %v2027_v54 = vld [vmem:[%s4701_s24 + $0x18] sm:$0xff] }
  0x41   : > { %s1038_s28 = scalar_lea.vmem %s4646_s5, %s4006_s0  ;;  %v4838_v13 = vld [vmem:[%s1041_s26] ss:$0 sm:$0xff]  ;;  %v2021_v55 = vld [vmem:[%s4696_s19 + $0x8] sm:$0xff]  ;;  %v2770_v60 = vld [vmem:[%s4746_s27 + $0x10] sm:$0xff]  ;;  %s5239_s0 = sld [smem:[#allocation5_spill]] }
  0x42   : > { %v1059_v14 = vld [vmem:[%s1038_s28] sm:$0xff]  ;;  %v1481_v15 = vmul.f32 %v4838_v13, %v1471_v11  ;;  %v1482_v16 = vmul.f32 %v4838_v13, %v1472_v12  ;;  %v1484_v20 = vmul.f32 %v4838_v13, %v1474_v17  ;;  %v1483_v23 = vmul.f32 %v4838_v13, %v1473_v22  ;;  %v2025_v56 = vld [vmem:[%s4701_s24 + $0x8] sm:$0xff]  ;;  %s5240_s26 = sld [smem:[#allocation7_spill]]  ;;  %s5241_s28 = sld [smem:[#allocation8_spill]] }
  0x43   : > { %4206 = vmatmul.mubr.msk.f32.vlgmr.msra.gmra.mrb[0].mxu1 %vm1069_vm1, %v1059_v14  ;;  %4223 = vmatmul.mubr.msk.f32.vlgmr.msra.gmra.mrb[0].mxu0 %vm1069_vm1, %v1059_v14  ;;  %v2769_v57 = vld [vmem:[%s4746_s27 + $0x8] sm:$0xff]  ;;  %v2776_v63 = vmul.f32 %v4838_v13, %v2770_v60  ;;  %v2772_v0 = vld [vmem:[%s4746_s27 + $0x20] sm:$0xff] }
  0x44   : > { %v1485_v18 = vsel %vm1143_vm2, %v1481_v15, 0.0  ;;  %4208 = vmatprep.subr.mxu1 %v1059_v14  ;;  %4440 = vmatpush3.bf16.msra.mxu0 %v4815_v5  ;;  %v1488_v19 = vsel %vm1143_vm2, %v1482_v16, 0.0  ;;  %v1494_v21 = vsel %vm1143_vm2, %v1484_v20, 0.0  ;;  %v1491_v25 = vsel %vm1143_vm2, %v1483_v23, 0.0  ;;  %v2136_v58 = vld [vmem:[%s4711_s6 + $0x8] sm:$0xff]  ;;  %v2768_v16 = vld [vmem:[%s4746_s27] sm:$0xff] }
  0x45   : > { %1486 = vadd.xlane.f32.xlu1 %v1485_v18  ;;  %4209 = vmatpush3.msra.mxu1 %v1059_v14  ;;  %v2775_v59 = vmul.f32 %v4838_v13, %v2769_v57  ;;  %v2322_v61 = vld [vmem:[%s4731_s4 + $0x8] sm:$0xff]  ;;  %v2786_v1 = vsel %vm1143_vm2, %v2776_v63, 0.0  ;;  %v2778_v2 = vmul.f32 %v4838_v13, %v2772_v0  ;;  %v1065_v14 = vld [vmem:[%s4666_s21 + $0x20] sm:$0xff]  ;;  %v2774_v18 = vmul.f32 %v4838_v13, %v2768_v16  ;;  %v3346_v20 = vld [vmem:[%s4741_s12 + $0x18] sm:$0xff] }
  0x46   : > { %4450 = vmatprep.subr.bf16.mxu0 %v4821_v9  ;;  %4210 = vmatprep.mubr.msk.f32.mxu1 %vm1143_vm2, %v1063_v28  ;;  %v1062_v7 = vld [vmem:[%s4666_s21 + $0x8] sm:$0xff]  ;;  %v3343_v17 = vld [vmem:[%s4741_s12] sm:$0xff] }
  0x47   : > { %4211 = vmatmul.mubr.msk.f32.vlgmr.msra.gmra.mrb[2].mxu1 %vm1143_vm2, %v1064_v29  ;;  %v2783_v62 = vsel %vm1143_vm2, %v2775_v59, 0.0  ;;  %v2792_v3 = vsel %vm1143_vm2, %v2778_v2, 0.0  ;;  %v1066_v15 = vld [vmem:[%s4666_s21 + $0x28] sm:$0xff]  ;;  %v3658_v57 = vld [vmem:[%s5234_s10] sm:$0xff]  ;;  %s5242_s10 = sld [smem:[#allocation12_spill]] }
  0x48   : > { %4215 = vmatprep.mubr.msk.f32.mxu1 %vm1143_vm2, %v1061_v30  ;;  %v2773_v23 = vld [vmem:[%s4746_s27 + $0x28] sm:$0xff]  ;;  %v1509_v59 = vld [vmem:[%s5235_s11 + $0x20] sm:$0xff] }
  0x49   : > { %1489 = vadd.xlane.f32.xlu1 %v1488_v19  ;;  %v2771_v19 = vld [vmem:[%s4746_s27 + $0x18] sm:$0xff]  ;;  %v2799_v16 = vld [vmem:[%s5231_s1 + $0x8] sm:$0xff] }
  0x4a   : > { %v2777_v22 = vmul.f32 %v4838_v13, %v2771_v19 }
  0x4d   : > { %1495 = vadd.xlane.f32.xlu1 %v1494_v21  ;;  %v2780_v21 = vsel %vm1143_vm2, %v2774_v18, 0.0  ;;  %v3345_v18 = vld [vmem:[%s4741_s12 + $0x10] sm:$0xff] }
  0x5c   : > { %1492 = vadd.xlane.f32.xlu0 %v1491_v25  ;;  %v2779_v25 = vmul.f32 %v4838_v13, %v2773_v23  ;;  %v2801_v23 = vld [vmem:[%s5231_s1 + $0x18] sm:$0xff] }
  0x5e   : > { %1974 = vperm.xlu1 %4570, %v1968_v24   ;;  %v2789_v24 = vsel %vm1143_vm2, %v2777_v22, 0.0 }
  0x62   : > { %1979 = vperm.xlu1 %4570, %v1969_v26   ;;  %v2795_v26 = vsel %vm1143_vm2, %v2779_v25, 0.0  ;;  %v2802_v25 = vld [vmem:[%s5231_s1 + $0x20] sm:$0xff] }
  0x66   : > { %1984 = vperm.xlu1 %4570, %v1970_v27  }
  0xb8   : > { %v4868_v40 = vpop.permute.xlu0 %1461 }
  0xbc   : > { %v4872_v43 = vpop.permute.xlu0 %1466 }
  0xd2   : > { %v1487_v32 = vpop.xlane.xlu1 %1486 }
  0xd3   : > { %v1501_v33 = vadd.f32 %v1497_v31, %v1487_v32 }
  0xd5   : > { %1998 = vperm.xlu1 %4570, %v1501_v33  }
  0xd6   : > { %v1490_v36 = vpop.xlane.xlu1 %1489 }
  0xd7   : > { %v1502_v37 = vadd.f32 %v1498_v34, %v1490_v36 }
  0xd9   : > { %1989 = vperm.xlu1 %4570, %v1971_v35   ;;  %2003 = vperm.xlu0 %4569, %v1502_v37  }
  0xda   : > { %v1496_v48 = vpop.xlane.xlu1 %1495 }
  0xdb   : > { %v1504_v51 = vadd.f32 %v1500_v47, %v1496_v48  ;;  %v3348_v47 = vld [vmem:[%s4741_s12 + $0x28] sm:$0xff] }
  0xdc   : > { %v2803_v48 = vld [vmem:[%s5231_s1 + $0x28] sm:$0xff] }
  0xdd   : > { %2107 = vperm.xlu0 %4569, %v2026_v38  }
  0xde   : > { %v4911_v27 = vpop.permute.xlu1 %1974 }
  0xe1   : > { %2073 = vperm.xlu0 %4569, %v2020_v39  }
  0xe2   : > { %v4913_v28 = vpop.permute.xlu1 %1979 }
  0xe5   : > { %2097 = vperm.xlu0 %4569, %v2024_v41   ;;  %v2798_v41 = vld [vmem:[%s5231_s1] sm:$0xff] }
  0xe6   : > { %v4915_v29 = vpop.permute.xlu1 %1984 }
  0xe9   : > { %2139 = vperm.xlu0 %4569, %v2135_v42   ;;  %v1493_v46 = vpop.xlane.xlu0 %1492 }
  0xea   : > { %v1503_v49 = vadd.f32 %v1499_v45, %v1493_v46  ;;  %v3347_v45 = vld [vmem:[%s4741_s12 + $0x20] sm:$0xff] }
  0xec   : > { %2008 = vperm.xlu1 %4570, %v1503_v49  }
  0xed   : > { %2752 = vperm.xlu0 %4569, %v2321_v44  }
  0xf0   : > { %2013 = vperm.xlu1 %4570, %v1504_v51   ;;  %v3425_v51 = vld [vmem:[%s5232_s2 + $0x20] sm:$0xff] }
  0xf1   : > { %2762 = vperm.xlu0 %4569, %v2323_v50  }
  0xf4   : > { %2083 = vperm.xlu1 %4570, %v2022_v52   ;;  %v3431_v52 = vld [vmem:[%s5233_s7 + $0x20] sm:$0xff] }
  0xf8   : > { %2088 = vperm.xlu1 %4570, %v2023_v53   ;;  %v3432_v53 = vld [vmem:[%s5233_s7 + $0x28] sm:$0xff] }
  0xfc   : > { %2112 = vperm.xlu1 %4570, %v2027_v54   ;;  %v3422_v54 = vld [vmem:[%s5232_s2 + $0x8] sm:$0xff] }
 0x100   : > { %2078 = vperm.xlu1 %4570, %v2021_v55   ;;  %v3428_v55 = vld [vmem:[%s5233_s7 + $0x8] sm:$0xff] }
 0x104   : > { %2102 = vperm.xlu1 %4570, %v2025_v56   ;;  %v3429_v56 = vld [vmem:[%s5233_s7 + $0x10] sm:$0xff] }
 0x108   : > { %2144 = vperm.xlu1 %4570, %v2136_v58   ;;  %v3751_v58 = vld [vmem:[%s4791_s30 + $0x8] sm:$0xf] }
 0x10c   : > { %2757 = vperm.xlu1 %4570, %v2322_v61  }
 0x110   : > { %2784 = vadd.xlane.f32.xlu0 %v2783_v62 }
 0x114   : > { %2787 = vadd.xlane.f32.xlu0 %v2786_v1 }
 0x116   : > { %v1139_v6 = vpop.f32.mrb[0].mxu1  ;;  %v1372_v10 = vpop.f32.mrb[0].mxu0 }
 0x117   : > { %v4207_v11 = vpop.f32.mrb[1].mxu1  ;;  %4213 = vmatprep.subr.mxu1 %v1139_v6  ;;  %v4224_v12 = vpop.f32.mrb[1].mxu0 }
 0x118   : > { %4214 = vmatpush3.msra.mxu1 %v1139_v6  ;;  %2793 = vadd.xlane.f32.xlu0 %v2792_v3  ;;  %v1510_v3 = vld [vmem:[%s5235_s11 + $0x28] sm:$0xff]  ;;  %v1511_v6 = vld [vmem:[%s5235_s11 + $0x30] sm:$0xff]  ;;  %v1505_v11 = vld [vmem:[%s5235_s11] sm:$0xff] }
 0x119   : > { %4216 = vmatmul.mubr.msk.f32.vlgmr.msra.gmra.mrb[2].mxu1 %vm1143_vm2, %v1062_v7  ;;  %4225 = vmatprep.subr.mxu1 %v1372_v10  ;;  %v1512_v7 = vld [vmem:[%s5235_s11 + $0x38] sm:$0xff] }
 0x11a   : > { %4226 = vmatpush3.msra.mxu1 %v1372_v10  ;;  %4227 = vmatprep.mubr.msk.f32.mxu1 %vm1143_vm2, %v1065_v14 }
 0x121   : > { %4228 = vmatmul.mubr.msk.f32.vlgmr.msra.gmra.mrb[2].mxu1 %vm1143_vm2, %v1066_v15  ;;  %v3344_v15 = vld [vmem:[%s4741_s12 + $0x8] sm:$0xff] }
 0x122   : > { %4241 = vmatprep.mubr.msk.f32.mxu1 %vm1069_vm1, %v1509_v59  ;;  %v1507_v59 = vld [vmem:[%s5235_s11 + $0x10] sm:$0xff] }
 0x12e   : > { %3351 = vperm.xlu0 %4569, %v3343_v17  }
 0x130   : > { %2781 = vadd.xlane.f32.xlu1 %v2780_v21 }
 0x132   : > { %3366 = vperm.xlu0 %4569, %v3346_v20   ;;  %v2800_v20 = vld [vmem:[%s5231_s1 + $0x10] sm:$0xff] }
 0x134   : > { %2790 = vadd.xlane.f32.xlu1 %v2789_v24 }
 0x138   : > { %2796 = vadd.xlane.f32.xlu1 %v2795_v26 }
 0x149   : > { %3356 = vperm.xlu1 %4570, %v3344_v15  }
 0x14d   : > { %3361 = vperm.xlu1 %4570, %v3345_v18  }
 0x154   : > { %v4917_v30 = vpop.permute.xlu1 %1998 }
 0x158   : > { %v4919_v31 = vpop.permute.xlu1 %1989 }
 0x16b   : > { %v4921_v32 = vpop.permute.xlu1 %2008 }
 0x16f   : > { %v4923_v13 = vpop.permute.xlu1 %2013 }
 0x173   : > { %v4925_v33 = vpop.permute.xlu1 %2083 }
 0x177   : > { %v4927_v34 = vpop.permute.xlu1 %2088 }
 0x17b   : > { %v4929_v35 = vpop.permute.xlu1 %2112 }
 0x17f   : > { %v4931_v36 = vpop.permute.xlu1 %2078 }
 0x183   : > { %v4933_v37 = vpop.permute.xlu1 %2102 }
 0x187   : > { %v4935_v38 = vpop.permute.xlu1 %2144 }
 0x18b   : > { %v4937_v39 = vpop.permute.xlu1 %2757 }
 0x1bd   : > { %v2782_v42 = vpop.xlane.xlu1 %2781 }
 0x1be   : > { %v2804_v44 = vadd.f32 %v2798_v41, %v2782_v42  ;;  %v3424_v42 = vld [vmem:[%s5232_s2 + $0x18] sm:$0xff] }
 0x1c0   : > { %3387 = vperm.xlu0 %4569, %v2804_v44   ;;  %v3430_v44 = vld [vmem:[%s5233_s7 + $0x18] sm:$0xff] }
 0x1c1   : > { %v4941_v46 = vpop.xlane.xlu1 %2790 }
 0x1c2   : > { %v2807_v24 = vadd.f32 %v2801_v23, %v4941_v46  ;;  %v3423_v46 = vld [vmem:[%s5232_s2 + $0x10] sm:$0xff] }
 0x1c4   : > { %3371 = vperm.xlu0 %4569, %v3347_v45   ;;  %v3426_v45 = vld [vmem:[%s5232_s2 + $0x28] sm:$0xff] }
 0x1c5   : > { %v2797_v49 = vpop.xlane.xlu1 %2796 }
 0x1c6   : > { %v2809_v50 = vadd.f32 %v2803_v48, %v2797_v49  ;;  %v3427_v48 = vld [vmem:[%s5233_s7] sm:$0xff] }
 0x1c7   : > { %v2233_v49 = vld [vmem:[%s5236_s15] sm:$0xff]  ;;  %s5243_s15 = sld [smem:[#allocation14_spill]] }
 0x1c8   : > { %3376 = vperm.xlu0 %4569, %v3348_v47   ;;  %v3421_v47 = vld [vmem:[%s5232_s2] sm:$0xff] }
 0x1cc   : > { %3412 = vperm.xlu0 %4569, %v2809_v50   ;;  %v3668_v50 = vld [vmem:[%s5237_s16] sm:$0xff]  ;;  %s5244_s16 = sld [smem:[#allocation2_spill]] }
 0x1d0   : > { %3512 = vperm.xlu0 %4569, %v3425_v51   ;;  %v3750_v51 = vld [vmem:[%s4791_s30] sm:$0xff] }
 0x1d4   : > { %3548 = vperm.xlu0 %4569, %v3431_v52  }
 0x1d8   : > { %3553 = vperm.xlu0 %4569, %v3432_v53  }
 0x1dc   : > { %3497 = vperm.xlu0 %4569, %v3422_v54  }
 0x1e0   : > { %3533 = vperm.xlu0 %4569, %v3428_v55  }
 0x1e4   : > { %3538 = vperm.xlu0 %4569, %v3429_v56  }
 0x1e8   : > { %3661 = vperm.xlu0 %4569, %v3658_v57   ;;  %v1506_v57 = vld [vmem:[%s5235_s11 + $0x8] sm:$0xff] }
 0x1ec   : > { %3759 = vperm.xlu0 %4569, %v3751_v58  }
 0x1f4   : > { %v4229_v60 = vpop.f32.mrb[2].mxu1 }
 0x1f5   : > { %v4956_v61 = vadd.f32 %v4229_v60, %v4872_v43  ;;  %v1448_v62 = vpop.f32.mrb[3].mxu1  ;;  %v1508_v60 = vld [vmem:[%s5235_s11 + $0x18] sm:$0xff] }
 0x1f6   : > { %v4959_v63 = vadd.f32 %v4868_v40, %v1448_v62  ;;  %v4972_v40 = vpop.permute.xlu0 %2003  ;;  %v1513_v62 = vld [vmem:[%s5235_s11 + $0x40] sm:$0xff] }
 0x1f8   : > { %4234 = vmatprep.mubr.msk.f32.mxu0 %vm1069_vm1, %v4959_v63  ;;  %v4441_v0 = vpack.c.bf16 %v4956_v61, %v4959_v63 }
 0x1f9   : > { %4235 = vmatmul.mubr.msk.f32.vlgmr.msra.gmra.mrb[2].mxu0 %vm1069_vm1, %v4956_v61 }
 0x1fa   : > { %4442 = vmatprep.subr.bf16.mxu1 %v4441_v0  ;;  %4452 = vmatpush3.bf16.msra.mxu0 %v4821_v9  ;;  %v4974_v43 = vpop.permute.xlu0 %2107 }
 0x1fb   : > { %4261 = vmatprep.mubr.msk.f32.mxu0 %vm1069_vm1, %v4959_v63  ;;  %4444 = vmatpush3.bf16.msra.mxu1 %v4441_v0  ;;  %v1514_v0 = vld [vmem:[%s5235_s11 + $0x48] sm:$0xff] }
 0x1fd   : > { %4262 = vmatmul.mubr.msk.f32.vlgmr.msra.gmra.mrb[4].mxu0 %vm1069_vm1, %v4956_v61 }
 0x1fe   : > { %v4976_v1 = vpop.permute.xlu0 %2073  ;;  %4242 = vmatmul.mubr.msk.f32.vlgmr.msra.gmra.mrb[4].mxu1 %vm1069_vm1, %v1510_v3  ;;  %v1515_v3 = vld [vmem:[%s5235_s11 + $0x50] sm:$0xff] }
 0x1ff   : > { %4244 = vmatprep.mubr.msk.f32.mxu1 %vm1069_vm1, %v1511_v6  ;;  %v1516_v6 = vld [vmem:[%s5235_s11 + $0x58] sm:$0xff] }
 0x202   : > { %v4978_v2 = vpop.permute.xlu0 %2097  ;;  %4245 = vmatmul.mubr.msk.f32.gmra.mrb[6].mxu1 %vm1069_vm1, %v1512_v7  ;;  %v2133_v7 = vld [vmem:[%s5238_s18] sm:$0xff] }
 0x203   : > { %4251 = vmatprep.mubr.msk.f32.mxu1 %vm1069_vm1, %v1505_v11  ;;  %4278 = vmatprep.mubr.msk.f32.mxu0 %vm1069_vm1, %v2133_v7 }
 0x206   : > { %v4985_v10 = vpop.permute.xlu0 %2139 }
 0x20a   : > { %v4990_v12 = vpop.permute.xlu0 %2752 }
 0x20e   : > { %v4992_v14 = vpop.permute.xlu0 %2762 }
 0x212   : > { %v2785_v17 = vpop.xlane.xlu0 %2784 }
 0x213   : > { %v2805_v19 = vadd.f32 %v2799_v16, %v2785_v17 }
 0x215   : > { %3392 = vperm.xlu1 %4570, %v2805_v19  }
 0x216   : > { %v2788_v21 = vpop.xlane.xlu0 %2787 }
 0x217   : > { %v2806_v22 = vadd.f32 %v2800_v20, %v2788_v21 }
 0x219   : > { %3397 = vperm.xlu1 %4570, %v2806_v22  }
 0x21a   : > { %v2794_v26 = vpop.xlane.xlu0 %2793 }
 0x21b   : > { %v2808_v41 = vadd.f32 %v2802_v25, %v2794_v26 }
 0x21d   : > { %3402 = vperm.xlu1 %4570, %v2807_v24  }
 0x221   : > { %3407 = vperm.xlu1 %4570, %v2808_v41  }
 0x225   : > { %3507 = vperm.xlu1 %4570, %v3424_v42  }
 0x229   : > { %3543 = vperm.xlu1 %4570, %v3430_v44  }
 0x22d   : > { %3517 = vperm.xlu1 %4570, %v3426_v45  }
 0x231   : > { %3492 = vperm.xlu1 %4570, %v3421_v47  }
 0x235   : > { %3528 = vperm.xlu1 %4570, %v3427_v48  }
 0x239   : > { %3502 = vperm.xlu1 %4570, %v3423_v46  }
 0x23d   : > { %2236 = vperm.xlu1 %4570, %v2233_v49  }
 0x241   : > { %3671 = vperm.xlu1 %4570, %v3668_v50  }
 0x245   : > { %3754 = vperm.xlu1 %4570, %v3750_v51  }
 0x2cc   : > { %v4236_v52 = vpop.f32.mrb[2].mxu0 }
 0x2cd   : > { %v1589_v53 = vpop.f32.mrb[3].mxu0 }
 0x2ce   : > { %v4445_v54 = vpack.c.bf16 %v4236_v52, %v1589_v53 }
 0x2d0   : > { %4446 = vmatprep.subr.bf16.mxu1 %v4445_v54  ;;  %v4263_v55 = vpop.f32.mrb[4].mxu0 }
 0x2d1   : > { %4448 = vmatpush3.bf16.msra.mxu1 %v4445_v54  ;;  %v1858_v56 = vpop.f32.mrb[5].mxu0 }
 0x2d2   : > { %v4453_v58 = vpack.c.bf16 %v4263_v55, %v1858_v56 }
 0x2d4   : > { %4252 = vmatmul.mubr.msk.f32.vlgmr.msra.gmra.mrb[4].mxu1 %vm1069_vm1, %v1506_v57  ;;  %4454 = vmatprep.subr.bf16.mxu1 %v4453_v58 }
 0x2d5   : > { %4456 = vmatpush3.bf16.msra.mxu1 %v4453_v58  ;;  %4254 = vmatprep.mubr.msk.f32.mxu1 %vm1069_vm1, %v1507_v59 }
 0x2d6   : > { %4471 = vmatprep.subr.bf16.mxu1 %v4635_v4 }
 0x2d8   : > { %4255 = vmatmul.mubr.msk.f32.gmra.mrb[6].mxu1 %vm1069_vm1, %v1508_v60 }
 0x2d9   : > { %4268 = vmatprep.mubr.msk.f32.mxu1 %vm1069_vm1, %v1513_v62 }
 0x2dc   : > { %4269 = vmatmul.mubr.msk.f32.vlgmr.msra.gmra.mrb[4].mxu1 %vm1069_vm1, %v1514_v0 }
 0x2dd   : > { %4271 = vmatprep.mubr.msk.f32.mxu1 %vm1069_vm1, %v1515_v3 }
 0x2e0   : > { %4272 = vmatmul.mubr.msk.f32.gmra.mrb[6].mxu1 %vm1069_vm1, %v1516_v6 }
 0x2e1   : > { %4312 = vmatprep.mubr.msk.f32.mxu1 %vm4636_vm0, %v4637_v8 }
 0x3af   : > { %v4270_v11 = vpop.f32.mrb[4].mxu1 }
 0x3b0   : > { %v1993_v15 = vadd.f32 %v4270_v11, %v4913_v28  ;;  %v1945_v16 = vpop.f32.mrb[5].mxu1 }
 0x3b1   : > { %v1992_v17 = vadd.f32 %v4911_v27, %v1945_v16 }
 0x3b2   : > { %v2017_v18 = vadd.f32 %v4972_v40, %v1993_v15 }
 0x3b3   : > { %v2016_v19 = vadd.f32 %v4917_v30, %v1992_v17  ;;  %v4273_v20 = vpop.f32.mrb[6].mxu1 }
 0x3b4   : > { %v2029_v21 = vsel %vm1069_vm1, %v2017_v18, 0.0  ;;  %v1995_v22 = vadd.f32 %v4273_v20, %v4919_v31  ;;  %v1955_v23 = vpop.f32.mrb[7].mxu1 }
 0x3b5   : > { %v2028_v24 = vsel %vm1069_vm1, %v2016_v19, 0.0  ;;  %v1994_v25 = vadd.f32 %v4915_v29, %v1955_v23 }
 0x3b6   : > { %v2030_v26 = vadd.f32 %v2029_v21, %v2028_v24  ;;  %v2019_v28 = vadd.f32 %v4923_v13, %v1995_v22 }
 0x3b7   : > { %v2018_v41 = vadd.f32 %v4921_v32, %v1994_v25 }
 0x3b8   : > { %v2033_v30 = vsel %vm1069_vm1, %v2019_v28, 0.0 }
 0x3b9   : > { %v2031_v27 = vsel %vm1069_vm1, %v2018_v41, 0.0 }
 0x3ba   : > { %v2032_v40 = vadd.f32 %v2031_v27, %v2030_v26 }
 0x3bc   : > { %v2034_v42 = vadd.f32 %v2033_v30, %v2032_v40 }
 0x3be   : > { %v2035_v44 = vrot.slane %v2034_v42, 4 }
 0x3c0   : > { %v2036_v45 = vadd.f32 %v2035_v44, %v2034_v42 }
 0x3c2   : > { %v2037_v47 = vrot.slane %v2036_v45, 2 }
 0x3c4   : > { %v2038_v31 = vadd.f32 %v2037_v47, %v2036_v45 }
 0x3c6   : > { %v2039_v48 = vrot.slane %v2038_v31, 1 }
 0x3c8   : > { %v2040_v46 = vadd.f32 %v2039_v48, %v2038_v31 }
 0x3ca   : > { %v2042_v49 = vmul.f32 0.03125, %v2040_v46 }
 0x3cc   : > { %v2043_v50 = vsub.f32 %v2016_v19, %v2042_v49  ;;  %v2044_v29 = vsub.f32 %v2017_v18, %v2042_v49  ;;  %v2045_v51 = vsub.f32 %v2018_v41, %v2042_v49  ;;  %v2046_v52 = vsub.f32 %v2019_v28, %v2042_v49 }
 0x3ce   : > { %v2047_v13 = vmul.f32 %v2043_v50, %v2043_v50  ;;  %v2048_v53 = vmul.f32 %v2044_v29, %v2044_v29  ;;  %v2049_v32 = vmul.f32 %v2045_v51, %v2045_v51  ;;  %v2050_v54 = vmul.f32 %v2046_v52, %v2046_v52 }
 0x3d0   : > { %v2051_v55 = vsel %vm1069_vm1, %v2047_v13, 0.0  ;;  %v2052_v56 = vsel %vm1069_vm1, %v2048_v53, 0.0  ;;  %v2054_v58 = vsel %vm1069_vm1, %v2049_v32, 0.0  ;;  %v2056_v60 = vsel %vm1069_vm1, %v2050_v54, 0.0 }
 0x3d1   : > { %v2053_v57 = vadd.f32 %v2052_v56, %v2051_v55 }
 0x3d3   : > { %v2055_v59 = vadd.f32 %v2054_v58, %v2053_v57 }
 0x3d5   : > { %v2057_v62 = vadd.f32 %v2056_v60, %v2055_v59  ;;  %v2312_v59 = vld [vmem:[%s5240_s26] sm:$0xff] }
 0x3d7   : > { %v2058_v0 = vrot.slane %v2057_v62, 4 }
 0x3d9   : > { %v2059_v3 = vadd.f32 %v2058_v0, %v2057_v62  ;;  %v2313_v0 = vld [vmem:[%s5240_s26 + $0x8] sm:$0xff] }
 0x3db   : > { %v2060_v6 = vrot.slane %v2059_v3, 2 }
 0x3dd   : > { %v2061_v7 = vadd.f32 %v2060_v6, %v2059_v3 }
 0x3df   : > { %v2062_v11 = vrot.slane %v2061_v7, 1 }
 0x3e1   : > { %v2063_v15 = vadd.f32 %v2062_v11, %v2061_v7  ;;  %v2314_v7 = vld [vmem:[%s5240_s26 + $0x10] sm:$0xff] }
 0x3e3   : > { %v2064_v16 = vmul.f32 0.03125, %v2063_v15 }
 0x3e5   : > { %v2065_v17 = vadd.f32 1e-05, %v2064_v16 }
 0x3e7   : > { %4571 = vrsqrt.f32 %v2065_v17  ;;  %v2318_v17 = vld [vmem:[%s5240_s26 + $0x30] sm:$0xff] }
 0x3f1   : > { %v4572_v18 = vpop.eup %4571 }
 0x3f2   : > { %v2069_v19 = vmul.f32 %v4572_v18, %v2045_v51  ;;  %v2070_v20 = vmul.f32 %v4572_v18, %v2046_v52  ;;  %v2067_v21 = vmul.f32 %v4572_v18, %v2043_v50  ;;  %v2068_v22 = vmul.f32 %v4572_v18, %v2044_v29  ;;  %v2134_v50 = vld [vmem:[%s5238_s18 + $0x8] sm:$0xff]  ;;  %v2319_v18 = vld [vmem:[%s5240_s26 + $0x38] sm:$0xff] }
 0x3f4   : > { %v2093_v23 = vmul.f32 %v4925_v33, %v2069_v19  ;;  %v2094_v24 = vmul.f32 %v4927_v34, %v2070_v20  ;;  %v2091_v33 = vmul.f32 %v4976_v1, %v2067_v21  ;;  %v2092_v34 = vmul.f32 %v4931_v36, %v2068_v22  ;;  %v2232_v36 = vld [vmem:[%s5239_s0] sm:$0xff]  ;;  %s4082_s0 = sshll.u32 %s5246_s23, 4 }
 0x3f5   : > { %v2320_v19 = vld [vmem:[%s5240_s26 + $0x40] sm:$0xff] }
 0x3f6   : > { %v2117_v25 = vadd.f32 %v4974_v43, %v2093_v23  ;;  %v2118_v26 = vadd.f32 %v4929_v35, %v2094_v24  ;;  %v2115_v35 = vadd.f32 %v4978_v2, %v2091_v33  ;;  %v2116_v47 = vadd.f32 %v4933_v37, %v2092_v34 }
 0x3f8   : > { %v2119_v28 = vsub.f32 0.0, %v2117_v25  ;;  %v2120_v41 = vsub.f32 0.0, %v2118_v26 }
 0x3fa   : > { %v2121_v27 = vmul.f32 1.442695, %v2119_v28  ;;  %v2123_v40 = vmul.f32 1.442695, %v2120_v41 }
 0x3fc   : > { %4573 = vpow2.f32 %v2121_v27 }
 0x3fd   : > { %4575 = vpow2.f32 %v2123_v40 }
 0x406   : > { %v4574_v30 = vpop.eup %4573 }
 0x407   : > { %v4576_v42 = vpop.eup %4575  ;;  %v2125_v44 = vadd.f32 1.0, %v4574_v30 }
 0x408   : > { %v2126_v45 = vadd.f32 1.0, %v4576_v42 }
 0x409   : > { %4577 = vrcp.f32 %v2125_v44 }
 0x40a   : > { %4579 = vrcp.f32 %v2126_v45 }
 0x413   : > { %v4578_v43 = vpop.eup %4577 }
 0x414   : > { %v4580_v31 = vpop.eup %4579  ;;  %v2131_v48 = vmul.f32 %v4578_v43, %v2115_v35 }
 0x415   : > { %v2132_v46 = vmul.f32 %v4580_v31, %v2116_v47 }
 0x417   : > { %v4457_v49 = vpack.c.bf16 %v2132_v46, %v2131_v48  ;;  %v2820_v48 = vld [vmem:[%s5241_s28 + $0x50] sm:$0xff]  ;;  %v2821_v46 = vld [vmem:[%s5241_s28 + $0x58] sm:$0xff] }
 0x419   : > { %4458 = vmatprep.subr.bf16.mxu0 %v4457_v49 }
 0x41a   : > { %4460 = vmatpush3.bf16.msra.mxu0 %v4457_v49 }
 0x41b   : > { %4461 = vmatprep.subr.bf16.mxu0 %v4635_v4 }
 0x41d   : > { %4279 = vmatmul.mubr.msk.f32.vlgmr.msra.gmra.mrb[6].mxu0 %vm1069_vm1, %v2134_v50 }
 0x41e   : > { %4463 = vmatpush3.bf16.msra.mxu0 %v4457_v49  ;;  %4285 = vmatprep.mubr.msk.f32.mxu0 %vm4636_vm0, %v4637_v8  ;;  %v2810_v49 = vld [vmem:[%s5241_s28] sm:$0xff] }
 0x41f   : > { %4465 = vmatprep.subr.bf16.mxu0 %v4815_v5 }
 0x421   : > { %4286 = vmatmul.mubr.msk.f32.vlgmr.msra.gmra.mrb[8].mxu0 %vm1069_vm1, %v2232_v36 }
 0x422   : > { %4467 = vmatpush3.bf16.msra.mxu0 %v4815_v5 }
 0x423   : > { %4468 = vmatprep.subr.bf16.mxu0 %v4635_v4 }
 0x4f0   : > { %v4280_v37 = vpop.f32.mrb[6].mxu0 }
 0x4f1   : > { %v2225_v1 = vadd.f32 %v4280_v37, %v4935_v38  ;;  %v2219_v2 = vpop.f32.mrb[7].mxu0  ;;  %v2315_v38 = vld [vmem:[%s5240_s26 + $0x18] sm:$0xff] }
 0x4f2   : > { %v2220_v29 = vadd.f32 %v2219_v2, %v4985_v10 }
 0x4f3   : > { %v2229_v51 = vadd.f32 %v2225_v1, %v4956_v61  ;;  %v2316_v61 = vld [vmem:[%s5240_s26 + $0x20] sm:$0xff] }
 0x4f4   : > { %v2228_v52 = vadd.f32 %v2220_v29, %v4959_v63  ;;  %v5067_v13 = vpop.f32.mrb[8].mxu0  ;;  %v2317_v63 = vld [vmem:[%s5240_s26 + $0x28] sm:$0xff] }
 0x4f5   : > { %v2231_v53 = vmul.f32 0.70710677, %v2229_v51  ;;  %v4287_v32 = vpop.f32.mrb[9].mxu0 }
 0x4f6   : > { %v2230_v54 = vmul.f32 0.70710677, %v2228_v52  ;;  %v2811_v52 = vld [vmem:[%s5241_s28 + $0x8] sm:$0xff] }
 0x4f8   : > { %4292 = vmatprep.mubr.msk.f32.mxu0 %vm1069_vm1, %v2230_v54  ;;  %v4469_v55 = vpack.c.bf16 %v2231_v53, %v2230_v54 }
 0x4f9   : > { %4293 = vmatmul.mubr.msk.f32.vlgmr.msra.gmra.mrb[10].mxu0 %vm1069_vm1, %v2231_v53 }
 0x4fa   : > { %4470 = vmatpush3.bf16.msra.mxu0 %v4469_v55  ;;  %4299 = vmatprep.mubr.msk.f32.mxu0 %vm4636_vm0, %v4637_v8  ;;  %v2813_v55 = vld [vmem:[%s5241_s28 + $0x18] sm:$0xff] }
 0x4fb   : > { %4475 = vmatprep.subr.bf16.mxu0 %v4821_v9 }
 0x4fd   : > { %4300 = vmatmul.mubr.msk.f32.vlgmr.msra.gmra.mrb[12].mxu0 %vm1069_vm1, %v2315_v38  ;;  %v2814_v38 = vld [vmem:[%s5241_s28 + $0x20] sm:$0xff] }
 0x4fe   : > { %4302 = vmatprep.mubr.msk.f32.mxu0 %vm4636_vm0, %v4637_v8  ;;  %4477 = vmatpush3.bf16.msra.mxu0 %v4821_v9 }
 0x4ff   : > { %4478 = vmatprep.subr.bf16.mxu0 %v4635_v4 }
 0x501   : > { %4303 = vmatmul.mubr.msk.f32.gmra.mrb[14].mxu0 %vm1069_vm1, %v2316_v61 }
 0x502   : > { %4305 = vmatprep.mubr.msk.f32.mxu0 %vm4636_vm0, %v4637_v8 }
 0x505   : > { %4306 = vmatmul.mubr.msk.f32.gmra.mrb[16].mxu0 %vm1069_vm1, %v2317_v63 }
 0x506   : > { %4325 = vmatprep.mubr.msk.f32.mxu0 %vm1069_vm1, %v2230_v54 }
 0x509   : > { %4326 = vmatmul.mubr.msk.f32.vlgmr.msra.gmra.mrb[18].mxu0 %vm1069_vm1, %v2231_v53  ;;  %v2812_v53 = vld [vmem:[%s5241_s28 + $0x10] sm:$0xff] }
 0x50a   : > { %4332 = vmatprep.mubr.msk.f32.mxu0 %vm4636_vm0, %v4637_v8 }
 0x5cc   : > { %v4294_v10 = vpop.f32.mrb[10].mxu0 }
 0x5cd   : > { %v2396_v56 = vpop.f32.mrb[11].mxu0 }
 0x5ce   : > { %v4472_v57 = vpack.c.bf16 %v4294_v10, %v2396_v56  ;;  %v2815_v56 = vld [vmem:[%s5241_s28 + $0x28] sm:$0xff] }
 0x5d0   : > { %v2480_v58 = vpop.f32.mrb[12].mxu0  ;;  %4473 = vmatpush3.bf16.msra.mxu1 %v4472_v57  ;;  %v2822_v57 = vld [vmem:[%s5241_s28 + $0x60] sm:$0xff] }
 0x5d1   : > { %v4301_v60 = vpop.f32.mrb[13].mxu0  ;;  %4481 = vmatprep.subr.bf16.mxu1 %v4635_v4 }
 0x5d2   : > { %v2823_v60 = vld [vmem:[%s5241_s28 + $0x68] sm:$0xff] }
 0x5d3   : > { %4313 = vmatmul.mubr.msk.f32.vlgmr.msra.gmra.mrb[8].mxu1 %vm1069_vm1, %v2312_v59 }
 0x5d4   : > { %v2485_v62 = vpop.f32.mrb[14].mxu0  ;;  %4315 = vmatprep.mubr.msk.f32.mxu1 %vm4636_vm0, %v4637_v8  ;;  %4483 = vmatpush3.bf16.msra.mxu1 %v4815_v5 }
 0x5d5   : > { %v4304_v3 = vpop.f32.mrb[15].mxu0  ;;  %4492 = vmatprep.subr.bf16.mxu1 %v4635_v4 }
 0x5d6   : > { %v2826_v3 = vld [vmem:[%s5241_s28 + $0x80] sm:$0xff] }
 0x5d7   : > { %4316 = vmatmul.mubr.msk.f32.gmra.mrb[10].mxu1 %vm1069_vm1, %v2313_v0  ;;  %v2825_v0 = vld [vmem:[%s5241_s28 + $0x78] sm:$0xff] }
 0x5d8   : > { %v2490_v6 = vpop.f32.mrb[16].mxu0  ;;  %4318 = vmatprep.mubr.msk.f32.mxu1 %vm4636_vm0, %v4637_v8 }
 0x5d9   : > { %v4307_v11 = vpop.f32.mrb[17].mxu0 }
 0x5da   : > { %v3352_v11 = vpop.permute.xlu0 %3351 }
 0x5db   : > { %4319 = vmatmul.mubr.msk.f32.gmra.mrb[12].mxu1 %vm1069_vm1, %v2314_v7  ;;  %v3357_v7 = vpop.permute.xlu1 %3356 }
 0x5dc   : > { %v4327_v15 = vpop.f32.mrb[18].mxu0  ;;  %4345 = vmatprep.mubr.msk.f32.mxu1 %vm4636_vm0, %v4637_v8 }
 0x5dd   : > { %v2649_v5 = vpop.f32.mrb[19].mxu0 }
 0x5de   : > { %v4479_v16 = vpack.c.bf16 %v4327_v15, %v2649_v5  ;;  %v3367_v5 = vpop.permute.xlu0 %3366 }
 0x5df   : > { %v3362_v15 = vpop.permute.xlu1 %3361 }
 0x5e0   : > { %4480 = vmatpush3.bf16.msra.mxu0 %v4479_v16 }
 0x5e2   : > { %v3388_v16 = vpop.permute.xlu0 %3387 }
 0x5e3   : > { %4333 = vmatmul.mubr.msk.f32.vlgmr.msra.gmra.mrb[20].mxu0 %vm1069_vm1, %v2318_v17  ;;  %v3393_v17 = vpop.permute.xlu1 %3392 }
 0x5e4   : > { %4335 = vmatprep.mubr.msk.f32.mxu0 %vm4636_vm0, %v4637_v8 }
 0x5e7   : > { %4336 = vmatmul.mubr.msk.f32.gmra.mrb[22].mxu0 %vm1069_vm1, %v2319_v18  ;;  %v3372_v18 = vpop.permute.xlu0 %3371 }
 0x5e8   : > { %4338 = vmatprep.mubr.msk.f32.mxu0 %vm4636_vm0, %v4637_v8 }
 0x5eb   : > { %4339 = vmatmul.mubr.msk.f32.gmra.mrb[24].mxu0 %vm1069_vm1, %v2320_v19  ;;  %v3398_v19 = vpop.permute.xlu1 %3397 }
 0x6a6   : > { %v2569_v20 = vpop.f32.mrb[8].mxu1 }
 0x6a7   : > { %v2570_v21 = vadd.f32 %v2569_v20, %v2480_v58  ;;  %v4314_v22 = vpop.f32.mrb[9].mxu1 }
 0x6aa   : > { %v2574_v23 = vpop.f32.mrb[10].mxu1 }
 0x6ab   : > { %v2575_v24 = vadd.f32 %v2574_v23, %v2485_v62  ;;  %v4317_v25 = vpop.f32.mrb[11].mxu1  ;;  %v2824_v62 = vld [vmem:[%s5241_s28 + $0x70] sm:$0xff] }
 0x6ac   : > { %v3377_v25 = vpop.permute.xlu0 %3376 }
 0x6ae   : > { %v2579_v26 = vpop.f32.mrb[12].mxu1 }
 0x6af   : > { %v2580_v28 = vadd.f32 %v2579_v26, %v2490_v6  ;;  %v4320_v41 = vpop.f32.mrb[13].mxu1  ;;  %v2827_v6 = vld [vmem:[%s5241_s28 + $0x88] sm:$0xff] }
 0x6b0   : > { %v3403_v41 = vpop.permute.xlu1 %3402 }
 0x6b6   : > { %v2733_v27 = vpop.f32.mrb[20].mxu0 }
 0x6b7   : > { %v2747_v40 = vadd.f32 %v2733_v27, %v2570_v21  ;;  %v4334_v30 = vpop.f32.mrb[21].mxu0 }
 0x6b9   : > { %v2765_v42 = vadd.f32 %v4990_v12, %v2747_v40 }
 0x6ba   : > { %v2738_v44 = vpop.f32.mrb[22].mxu0 }
 0x6bb   : > { %v2748_v45 = vadd.f32 %v2738_v44, %v2575_v24  ;;  %v4337_v33 = vpop.f32.mrb[23].mxu0  ;;  %4346 = vmatmul.mubr.msk.f32.vlgmr.msra.gmra.mrb[14].mxu1 %vm1069_vm1, %v2765_v42 }
 0x6bc   : > { %4348 = vmatprep.mubr.msk.f32.mxu1 %vm4636_vm0, %v4637_v8  ;;  %4494 = vmatpush3.bf16.msra.mxu1 %v4821_v9  ;;  %v2817_v9 = vld [vmem:[%s5241_s28 + $0x38] sm:$0xff] }
 0x6bd   : > { %v2766_v34 = vadd.f32 %v4937_v39, %v2748_v45  ;;  %4499 = vmatprep.subr.bf16.mxu1 %v4635_v4  ;;  %v2816_v4 = vld [vmem:[%s5241_s28 + $0x30] sm:$0xff]  ;;  %v2818_v39 = vld [vmem:[%s5241_s28 + $0x40] sm:$0xff] }
 0x6be   : > { %v2743_v35 = vpop.f32.mrb[24].mxu0  ;;  %4360 = vmatprep.mubr.msk.f32.mxu0 %vm2917_vm3, %v2816_v4  ;;  %v3413_v4 = vpop.permute.xlu0 %3412 }
 0x6bf   : > { %v2749_v43 = vadd.f32 %v2743_v35, %v2580_v28  ;;  %v4340_v47 = vpop.f32.mrb[25].mxu0  ;;  %4349 = vmatmul.mubr.msk.f32.gmra.mrb[16].mxu1 %vm1069_vm1, %v2766_v34  ;;  %v4484_v12 = vpack.c.bf16 %v2766_v34, %v2765_v42 }
 0x6c0   : > { %4351 = vmatprep.mubr.msk.f32.mxu1 %vm4636_vm0, %v4637_v8 }
 0x6c1   : > { %v2767_v31 = vadd.f32 %v4992_v14, %v2749_v43  ;;  %4485 = vmatprep.subr.bf16.mxu0 %v4484_v12  ;;  %v2819_v14 = vld [vmem:[%s5241_s28 + $0x48] sm:$0xff] }
 0x6c2   : > { %4487 = vmatpush3.bf16.msra.mxu0 %v4484_v12 }
 0x6c3   : > { %4352 = vmatmul.mubr.msk.f32.gmra.mrb[18].mxu1 %vm1069_vm1, %v2767_v31  ;;  %4358 = vmatprep.subr.mxu0 %v2767_v31 }
 0x6c4   : > { %4388 = vmatprep.mubr.msk.f32.mxu1 %vm4636_vm0, %v4637_v8 }
 0x6c6   : > { %4359 = vmatpush3.msra.mxu0 %v2767_v31 }
 0x6c7   : > { %4389 = vmatmul.mubr.msk.f32.vlgmr.msra.gmra.mrb[20].mxu1 %vm1069_vm1, %v2765_v42  ;;  %4361 = vmatmul.mubr.msk.f32.vlgmr.msra.gmra.mrb[26].mxu0 %vm2917_vm3, %v2817_v9  ;;  %v3408_v9 = vpop.permute.xlu1 %3407 }
 0x6c8   : > { %4391 = vmatprep.mubr.msk.f32.mxu1 %vm4636_vm0, %v4637_v8  ;;  %4363 = vmatprep.mubr.msk.f32.mxu0 %vm2917_vm3, %v2818_v39 }
 0x6cb   : > { %4392 = vmatmul.mubr.msk.f32.gmra.mrb[22].mxu1 %vm1069_vm1, %v2766_v34  ;;  %4364 = vmatmul.mubr.msk.f32.gmra.mrb[28].mxu0 %vm2917_vm3, %v2819_v14 }
 0x6cc   : > { %4394 = vmatprep.mubr.msk.f32.mxu1 %vm4636_vm0, %v4637_v8  ;;  %4366 = vmatprep.mubr.msk.f32.mxu0 %vm2917_vm3, %v2820_v48 }
 0x6cf   : > { %4395 = vmatmul.mubr.msk.f32.gmra.mrb[24].mxu1 %vm1069_vm1, %v2767_v31  ;;  %4367 = vmatmul.mubr.msk.f32.gmra.mrb[30].mxu0 %vm2917_vm3, %v2821_v46 }
 0x6d0   : > { %4418 = vmatprep.mubr.msk.f32.mxu1 %vm4636_vm0, %v4637_v8  ;;  %4375 = vmatprep.mubr.msk.f32.mxu0 %vm2917_vm3, %v2810_v49 }
 0x78e   : > { %v2903_v50 = vpop.f32.mrb[14].mxu1 }
 0x78f   : > { %v4347_v36 = vpop.f32.mrb[15].mxu1 }
 0x792   : > { %v2908_v37 = vpop.f32.mrb[16].mxu1 }
 0x793   : > { %v4488_v1 = vpack.c.bf16 %v2908_v37, %v2903_v50  ;;  %v4350_v2 = vpop.f32.mrb[17].mxu1 }
 0x795   : > { %4489 = vmatprep.subr.bf16.mxu0 %v4488_v1 }
 0x796   : > { %v2913_v29 = vpop.f32.mrb[18].mxu1  ;;  %4491 = vmatpush3.bf16.msra.mxu0 %v4488_v1 }
 0x797   : > { %v4353_v51 = vpop.f32.mrb[19].mxu1  ;;  %4373 = vmatprep.subr.mxu0 %v2913_v29 }
 0x79a   : > { %4374 = vmatpush3.msra.mxu0 %v2913_v29  ;;  %v3210_v32 = vpop.f32.mrb[20].mxu1 }
 0x79b   : > { %4376 = vmatmul.mubr.msk.f32.vlgmr.msra.gmra.mrb[26].mxu0 %vm2917_vm3, %v2811_v52  ;;  %v4390_v54 = vpop.f32.mrb[21].mxu1 }
 0x79c   : > { %4378 = vmatprep.mubr.msk.f32.mxu0 %vm2917_vm3, %v2812_v53 }
 0x79e   : > { %v3215_v61 = vpop.f32.mrb[22].mxu1 }
 0x79f   : > { %v4495_v63 = vpack.c.bf16 %v3215_v61, %v3210_v32  ;;  %4379 = vmatmul.mubr.msk.f32.gmra.mrb[28].mxu0 %vm2917_vm3, %v2813_v55  ;;  %v4393_v10 = vpop.f32.mrb[23].mxu1 }
 0x7a0   : > { %4381 = vmatprep.mubr.msk.f32.mxu0 %vm2917_vm3, %v2814_v38 }
 0x7a1   : > { %4496 = vmatprep.subr.bf16.mxu0 %v4495_v63 }
 0x7a2   : > { %v3220_v58 = vpop.f32.mrb[24].mxu1  ;;  %4498 = vmatpush3.bf16.msra.mxu0 %v4495_v63 }
 0x7a3   : > { %4382 = vmatmul.mubr.msk.f32.gmra.mrb[30].mxu0 %vm2917_vm3, %v2815_v56  ;;  %v4396_v59 = vpop.f32.mrb[25].mxu1  ;;  %4401 = vmatprep.subr.mxu0 %v3220_v58 }
 0x7a4   : > { %4403 = vmatprep.mubr.msk.f32.mxu0 %vm2917_vm3, %v2822_v57 }
 0x7a6   : > { %4402 = vmatpush3.msra.mxu0 %v3220_v58 }
 0x7a7   : > { %4404 = vmatmul.mubr.msk.f32.vlgmr.msra.gmra.mrb[26].mxu0 %vm2917_vm3, %v2823_v60 }
 0x7a8   : > { %4406 = vmatprep.mubr.msk.f32.mxu0 %vm2917_vm3, %v2824_v62 }
 0x7ab   : > { %4407 = vmatmul.mubr.msk.f32.gmra.mrb[28].mxu0 %vm2917_vm3, %v2825_v0 }
 0x7ac   : > { %4409 = vmatprep.mubr.msk.f32.mxu0 %vm2917_vm3, %v2826_v3 }
 0x7af   : > { %4410 = vmatmul.mubr.msk.f32.gmra.mrb[30].mxu0 %vm2917_vm3, %v2827_v6 }
 0x87a   : > { %v4405_v20 = vpop.f32.mrb[26].mxu0 }
 0x87b   : > { %v3380_v21 = vadd.f32 %v4405_v20, %v3357_v7  ;;  %v3308_v22 = vpop.f32.mrb[27].mxu0 }
 0x87c   : > { %v3379_v23 = vadd.f32 %v3352_v11, %v3308_v22 }
 0x87d   : > { %v3416_v24 = vadd.f32 %v3393_v17, %v3380_v21 }
 0x87e   : > { %v3415_v26 = vadd.f32 %v3388_v16, %v3379_v23  ;;  %v4408_v28 = vpop.f32.mrb[28].mxu0 }
 0x87f   : > { %v3434_v27 = vsel %vm1069_vm1, %v3416_v24, 0.0  ;;  %v3382_v40 = vadd.f32 %v4408_v28, %v3367_v5  ;;  %v3318_v30 = vpop.f32.mrb[29].mxu0 }
 0x880   : > { %v3433_v42 = vsel %vm1069_vm1, %v3415_v26, 0.0  ;;  %v3381_v44 = vadd.f32 %v3362_v15, %v3318_v30 }
 0x881   : > { %v3435_v45 = vadd.f32 %v3434_v27, %v3433_v42  ;;  %v3418_v33 = vadd.f32 %v3403_v41, %v3382_v40  ;;  %v3508_v27 = vpop.permute.xlu1 %3507  ;;  %v3513_v40 = vpop.permute.xlu0 %3512 }
 0x882   : > { %v3417_v34 = vadd.f32 %v3398_v19, %v3381_v44  ;;  %v4411_v35 = vpop.f32.mrb[30].mxu0 }
 0x883   : > { %v3384_v43 = vadd.f32 %v4411_v35, %v3377_v25  ;;  %v3328_v47 = vpop.f32.mrb[31].mxu0  ;;  %v3438_v14 = vsel %vm1069_vm1, %v3418_v33, 0.0 }
 0x884   : > { %v3436_v12 = vsel %vm1069_vm1, %v3417_v34, 0.0  ;;  %v3383_v31 = vadd.f32 %v3372_v18, %v3328_v47 }
 0x885   : > { %v3437_v39 = vadd.f32 %v3436_v12, %v3435_v45  ;;  %v3420_v48 = vadd.f32 %v3413_v4, %v3384_v43  ;;  %v3544_v30 = vpop.permute.xlu1 %3543  ;;  %v3549_v42 = vpop.permute.xlu0 %3548 }
 0x886   : > { %v3419_v46 = vadd.f32 %v3408_v9, %v3383_v31 }
 0x887   : > { %v3439_v49 = vadd.f32 %v3438_v14, %v3437_v39  ;;  %v3442_v37 = vsel %vm1069_vm1, %v3420_v48, 0.0 }
 0x888   : > { %v3440_v50 = vsel %vm1069_vm1, %v3419_v46, 0.0 }
 0x889   : > { %v3441_v36 = vadd.f32 %v3440_v50, %v3439_v49  ;;  %v3518_v43 = vpop.permute.xlu1 %3517  ;;  %v3554_v39 = vpop.permute.xlu0 %3553 }
 0x88b   : > { %v3443_v1 = vadd.f32 %v3442_v37, %v3441_v36 }
 0x88d   : > { %v3444_v2 = vrot.slane %v3443_v1, 4 }
 0x88f   : > { %v3445_v29 = vadd.f32 %v3444_v2, %v3443_v1 }
 0x891   : > { %v3446_v51 = vrot.slane %v3445_v29, 2 }
 0x893   : > { %v3447_v52 = vadd.f32 %v3446_v51, %v3445_v29  ;;  %v3493_v29 = vpop.permute.xlu1 %3492 }
 0x895   : > { %v3448_v53 = vrot.slane %v3447_v52, 1 }
 0x897   : > { %v3449_v32 = vadd.f32 %v3448_v53, %v3447_v52  ;;  %v3498_v53 = vpop.permute.xlu0 %3497 }
 0x899   : > { %v3451_v54 = vmul.f32 0.020833334, %v3449_v32 }
 0x89b   : > { %v3452_v55 = vsub.f32 %v3415_v26, %v3451_v54  ;;  %v3453_v38 = vsub.f32 %v3416_v24, %v3451_v54  ;;  %v3454_v61 = vsub.f32 %v3417_v34, %v3451_v54  ;;  %v3455_v63 = vsub.f32 %v3418_v33, %v3451_v54 }
 0x89c   : > { %v3456_v10 = vsub.f32 %v3419_v46, %v3451_v54  ;;  %v3457_v56 = vsub.f32 %v3420_v48, %v3451_v54 }
 0x89d   : > { %v3458_v57 = vmul.f32 %v3452_v55, %v3452_v55  ;;  %v3459_v58 = vmul.f32 %v3453_v38, %v3453_v38  ;;  %v3460_v59 = vmul.f32 %v3454_v61, %v3454_v61  ;;  %v3461_v60 = vmul.f32 %v3455_v63, %v3455_v63 }
 0x89e   : > { %v3462_v6 = vmul.f32 %v3456_v10, %v3456_v10  ;;  %v3463_v15 = vmul.f32 %v3457_v56, %v3457_v56 }
 0x89f   : > { %v3464_v62 = vsel %vm1069_vm1, %v3458_v57, 0.0  ;;  %v3465_v0 = vsel %vm1069_vm1, %v3459_v58, 0.0  ;;  %v3467_v7 = vsel %vm1069_vm1, %v3460_v59, 0.0  ;;  %v3469_v5 = vsel %vm1069_vm1, %v3461_v60, 0.0 }
 0x8a0   : > { %v3466_v3 = vadd.f32 %v3465_v0, %v3464_v62  ;;  %v3471_v17 = vsel %vm1069_vm1, %v3462_v6, 0.0  ;;  %v3473_v19 = vsel %vm1069_vm1, %v3463_v15, 0.0 }
 0x8a2   : > { %v3468_v11 = vadd.f32 %v3467_v7, %v3466_v3 }
 0x8a4   : > { %v3470_v16 = vadd.f32 %v3469_v5, %v3468_v11 }
 0x8a6   : > { %v3472_v18 = vadd.f32 %v3471_v17, %v3470_v16  ;;  %v3583_v17 = vld [vmem:[%s5242_s10] sm:$0xff]  ;;  %s1046_s10 = scalar_lea.vmem %s5244_s16, %s4082_s0  ;;  %s1054_s16 = scalar_lea.vmem %s4801_s20, %s5246_s23 }
 0x8a8   : > { %v3474_v20 = vadd.f32 %v3473_v19, %v3472_v18 }
 0x8aa   : > { %v3475_v21 = vrot.slane %v3474_v20, 4 }
 0x8ac   : > { %v3476_v22 = vadd.f32 %v3475_v21, %v3474_v20 }
 0x8ae   : > { %v3477_v23 = vrot.slane %v3476_v22, 2 }
 0x8b0   : > { %v3478_v24 = vadd.f32 %v3477_v23, %v3476_v22 }
 0x8b2   : > { %v3479_v25 = vrot.slane %v3478_v24, 1 }
 0x8b4   : > { %v3480_v26 = vadd.f32 %v3479_v25, %v3478_v24 }
 0x8b6   : > { %v3481_v28 = vmul.f32 0.020833334, %v3480_v26 }
 0x8b8   : > { %v3482_v41 = vadd.f32 1e-05, %v3481_v28  ;;  %v3667_v28 = vld [vmem:[%s5243_s15] sm:$0xff]  ;;  %s1051_s15 = scalar_lea.vmem %s4796_s13, %s4082_s0 }
 0x8ba   : > { %4581 = vrsqrt.f32 %v3482_v41  ;;  %v3748_v41 = vld [vmem:[%s4786_s29] sm:$0xff] }
 0x8c4   : > { %v4582_v44 = vpop.eup %4581 }
 0x8c5   : > { %v3487_v45 = vmul.f32 %v4582_v44, %v3455_v63  ;;  %v3488_v33 = vmul.f32 %v4582_v44, %v3456_v10  ;;  %v3489_v34 = vmul.f32 %v4582_v44, %v3457_v56  ;;  %v3484_v35 = vmul.f32 %v4582_v44, %v3452_v55  ;;  %v3534_v63 = vpop.permute.xlu0 %3533 }
 0x8c6   : > { %v3485_v47 = vmul.f32 %v4582_v44, %v3453_v38  ;;  %v3486_v12 = vmul.f32 %v4582_v44, %v3454_v61  ;;  %v3529_v38 = vpop.permute.xlu1 %3528 }
 0x8c7   : > { %v3523_v31 = vmul.f32 %v3508_v27, %v3487_v45  ;;  %v3524_v4 = vmul.f32 %v3513_v40, %v3488_v33  ;;  %v3525_v9 = vmul.f32 %v3518_v43, %v3489_v34  ;;  %v3520_v57 = vmul.f32 %v3493_v29, %v3484_v35  ;;  %v3847_v33 = vld [vmem:[%s1046_s10 + $0x8] sm:$0xf] }
 0x8c8   : > { %v3521_v10 = vmul.f32 %v3498_v53, %v3485_v47  ;;  %v3846_v47 = vld [vmem:[%s1046_s10] sm:$0xff] }
 0x8c9   : > { %v3559_v14 = vadd.f32 %v3544_v30, %v3523_v31  ;;  %v3560_v48 = vadd.f32 %v3549_v42, %v3524_v4  ;;  %v3561_v46 = vadd.f32 %v3554_v39, %v3525_v9  ;;  %v3539_v62 = vpop.permute.xlu0 %3538  ;;  %v3556_v0 = vadd.f32 %v3529_v38, %v3520_v57  ;;  %v3749_v42 = vld [vmem:[%s4786_s29 + $0x8] sm:$0xf] }
 0x8ca   : > { %v3503_v56 = vpop.permute.xlu1 %3502  ;;  %v3557_v59 = vadd.f32 %v3534_v63, %v3521_v10 }
 0x8cb   : > { %v3562_v49 = vsub.f32 0.0, %v3559_v14  ;;  %v3563_v50 = vsub.f32 0.0, %v3560_v48  ;;  %v3564_v36 = vsub.f32 0.0, %v3561_v46  ;;  %v3522_v58 = vmul.f32 %v3503_v56, %v3486_v12 }
 0x8cd   : > { %v3565_v37 = vmul.f32 1.442695, %v3562_v49  ;;  %v3567_v1 = vmul.f32 1.442695, %v3563_v50  ;;  %v3569_v2 = vmul.f32 1.442695, %v3564_v36  ;;  %v3558_v7 = vadd.f32 %v3539_v62, %v3522_v58  ;;  %v3662_v23 = vpop.permute.xlu0 %3661 }
 0x8ce   : > { %v2237_v18 = vpop.permute.xlu1 %2236 }
 0x8cf   : > { %4583 = vpow2.f32 %v3567_v1  ;;  %v2309_v19 = vadd.f32 %v5067_v13, %v2237_v18 }
 0x8d0   : > { %4585 = vpow2.f32 %v3565_v37 }
 0x8d1   : > { %4587 = vpow2.f32 %v3569_v2  ;;  %v3760_v44 = vpop.permute.xlu0 %3759 }
 0x8d9   : > { %v4584_v51 = vpop.eup %4583 }
 0x8da   : > { %v4586_v52 = vpop.eup %4585  ;;  %v3572_v32 = vadd.f32 1.0, %v4584_v51 }
 0x8db   : > { %v4588_v54 = vpop.eup %4587  ;;  %v3571_v55 = vadd.f32 1.0, %v4586_v52 }
 0x8dc   : > { %4589 = vrcp.f32 %v3572_v32  ;;  %v3573_v61 = vadd.f32 1.0, %v4588_v54 }
 0x8dd   : > { %4591 = vrcp.f32 %v3571_v55 }
 0x8de   : > { %4593 = vrcp.f32 %v3573_v61 }
 0x8e6   : > { %v4590_v60 = vpop.eup %4589 }
 0x8e7   : > { %v4592_v3 = vpop.eup %4591  ;;  %v3581_v6 = vmul.f32 %v4590_v60, %v3557_v59 }
 0x8e8   : > { %v4594_v11 = vpop.eup %4593  ;;  %v3580_v15 = vmul.f32 %v4592_v3, %v3556_v0 }
 0x8e9   : > { %v3582_v5 = vmul.f32 %v4594_v11, %v3558_v7 }
 0x8ea   : > { %v4500_v16 = vpack.c.bf16 %v3581_v6, %v3580_v15 }
 0x8ec   : > { %4501 = vmatpush3.bf16.msra.mxu1 %v4500_v16 }
 0x8ed   : > { %4416 = vmatprep.subr.mxu1 %v4637_v8 }
 0x8f0   : > { %4417 = vmatpush3.msra.mxu1 %v3582_v5 }
 0x8f1   : > { %4419 = vmatmul.mubr.msk.f32.vlgmr.msra.gmra.mrb[26].mxu1 %vm2917_vm3, %v3583_v17  ;;  %4421 = vmatprep.subr.mxu1 %v4637_v8 }
 0x8f2   : > { %4423 = vmatprep.mubr.msk.f32.mxu1 %vm4636_vm0, %v4637_v8  ;;  %v3672_v8 = vpop.permute.xlu1 %3671 }
 0x8f6   : > { %v3755_v34 = vpop.permute.xlu1 %3754 }
 0x9c4   : > { %v3653_v20 = vpop.f32.mrb[26].mxu1 }
 0x9c5   : > { %v3657_v21 = vadd.f32 %v3653_v20, %v2309_v19  ;;  %v4420_v22 = vpop.f32.mrb[27].mxu1 }
 0x9c7   : > { %v3664_v24 = vadd.f32 %v3662_v23, %v3657_v21 }
 0x9c9   : > { %v3665_v25 = vmul.f32 0.5, %v3664_v24 }
 0x9cb   : > { %v3666_v26 = vmax.f32 %v3665_v25, 0.0 }
 0x9cd   : > { %4422 = vmatpush3.msra.mxu1 %v3666_v26 }
 0x9ce   : > { %4424 = vmatmul.mubr.msk.f32.vlgmr.msra.gmra.mrb[28].mxu1 %vm1143_vm2, %v3667_v28 }
 0x9cf   : > { %4428 = vmatprep.mubr.msk.f32.mxu1 %vm1143_vm2, %v3748_v41 }
 0xaa1   : > { %v3743_v13 = vpop.f32.mrb[28].mxu1 }
 0xaa2   : > { %v3744_v27 = vadd.f32 %v3743_v13, %v3672_v8  ;;  %v4425_v40 = vpop.f32.mrb[29].mxu1 }
 0xaa4   : > { %v3747_v30 = vmax.f32 %v3744_v27, 0.0 }
 0xaa6   : > { %4426 = vmatprep.subr.mxu1 %v3747_v30 }
 0xaa7   : > { %4427 = vmatpush3.msra.mxu1 %v3747_v30 }
 0xaa8   : > { %4429 = vmatmul.mubr.msk.f32.vlgmr.msra.gmra.mrb[30].mxu1 %vm1143_vm2, %v3749_v42 }
 0xb7b   : > { %v4430_v45 = vpop.f32.mrb[30].mxu1 }
 0xb7c   : > { %v3840_v35 = vadd.f32 %v4430_v45, %v3760_v44  ;;  %v3834_v43 = vpop.f32.mrb[31].mxu1 }
 0xb7d   : > { %v3835_v12 = vadd.f32 %v3834_v43, %v3755_v34 }
 0xb7e   : > { %v3849_v31 = vsub.f32 %v3840_v35, %v3847_v33  ;;  %3845 = vst.msk [vmem:[%s1051_s15 + $0x8] sm:$0xf] %vm3844_vm4, %v3840_v35 }
 0xb7f   : > { %3843 = vst.msk [vmem:[%s1051_s15] sm:$0xff] %vm1069_vm1, %v3835_v12  ;;  %v3848_v4 = vsub.f32 %v3835_v12, %v3846_v47 }
 0xb80   : > { %v3851_v9 = vmul.f32 %v3849_v31, %v3849_v31 }
 0xb81   : > { %v3850_v39 = vmul.f32 %v3848_v4, %v3848_v4 }
 0xb82   : > { %v3855_v14 = vsel %vm3844_vm4, %v3851_v9, 0.0 }
 0xb83   : > { %3856 = vadd.xlane.f32.xlu0 %v3855_v14  ;;  %v3852_v48 = vsel %vm1069_vm1, %v3850_v39, 0.0 }
 0xb84   : > { %3853 = vadd.xlane.f32.xlu1 %v3852_v48 }
 0xc10   : > { %v3857_v46 = vpop.xlane.xlu0 %3856 }
 0xc11   : > { %v3859_v49 = vsel %vm3858_vm5, %v3857_v46, 0.0  ;;  %v3854_v50 = vpop.xlane.xlu1 %3853 }
 0xc12   : > { %v3860_v36 = vadd.f32 %v3859_v49, %v3854_v50 }
 0xc14   : > { %v3861_v37 = vrot.slane %v3860_v36, 4 }
 0xc16   : > { %v3862_v1 = vadd.f32 %v3861_v37, %v3860_v36 }
 0xc18   : > { %v3863_v2 = vrot.slane %v3862_v1, 2 }
 0xc1a   : > { %v3864_v29 = vadd.f32 %v3863_v2, %v3862_v1 }
 0xc1c   : > { %v3865_v51 = vrot.slane %v3864_v29, 1 }
 0xc1e   : > { %v3866_v52 = vadd.f32 %v3865_v51, %v3864_v29 }
 0xc20   : > { %3868 = vst.msk [vmem:[%s1054_s16] sm:$0x1] %vm3867_vm6, %v3866_v52 }
 0xc21 PF: > { %s78_s22 = sadd.s32 1, %s4601_s22  }
 0xc22   : > { %p75_p4 = scmp.ge.s32.totalorder %s78_s22, 4  }
 0xc24   :  { %77 = sbr.rel (!%p75_p4) target bundleno = 51 (0x33), region = 229 }

// kernel: _lambda_.2
= control target key start
LH: loop header
LB: loop body
LE: loop exit
PB: predicated region body
PF: predicated region fallthrough
CT: control target
= control target key end

     0   :  { %s7656_s0 = inlined_call_operand.vmem [shape: f32[2,12,16], index: 0, kind: input, shape index: {}]   ;;  %s7657_s1 = inlined_call_operand.vmem [shape: f32[5,16,16], index: 1, kind: input, shape index: {}]   ;;  %s7658_s2 = inlined_call_operand.vmem [shape: f32[16,8], index: 2, kind: input, shape index: {}]   ;;  %s7659_s3 = inlined_call_operand.hbm [shape: f32[3,24,12], index: 3, kind: input, shape index: {}]   ;;  %s7660_s4 = inlined_call_operand.vmem [shape: f32[24,1], index: 4, kind: input, shape index: {}]   ;;  %s7661_s5 = inlined_call_operand.vmem [shape: f32[2,3,24,24], index: 5, kind: input, shape index: {}]   ;;  %s7662_s6 = inlined_call_operand.vmem [shape: f32[2,24,1], index: 6, kind: input, shape index: {}, may-alias: {6,8,10,12}]   ;;  %s7663_s7 = inlined_call_operand.vmem [shape: f32[2,24,1], index: 7, kind: input, shape index: {}, may-alias: {7,11}]   ;;  %s7664_s8 = inlined_call_operand.vmem [shape: f32[2,24,1], index: 8, kind: input, shape index: {}, may-alias: {6,8,10,12}]   ;;  %s7665_s9 = inlined_call_operand.hbm [shape: f32[2,3,24,24], index: 9, kind: input, shape index: {}]   ;;  %s7666_s10 = inlined_call_operand.vmem [shape: f32[2,24,1], index: 10, kind: input, shape index: {}, may-alias: {6,8,10,12}]   ;;  %s7667_s11 = inlined_call_operand.vmem [shape: f32[2,24,1], index: 11, kind: input, shape index: {}, may-alias: {7,11}]   ;;  %s7668_s12 = inlined_call_operand.vmem [shape: f32[2,24,1], index: 12, kind: input, shape index: {}, may-alias: {6,8,10,12}]   ;;  %s7669_s13 = inlined_call_operand.hbm [shape: f32[3,16,24], index: 13, kind: input, shape index: {}]   ;;  %s7670_s14 = inlined_call_operand.vmem [shape: f32[16,1], index: 14, kind: input, shape index: {}]   ;;  %s7671_s15 = inlined_call_operand.vmem [shape: f32[2,3,16,16], index: 15, kind: input, shape index: {}]   ;;  %s7672_s16 = inlined_call_operand.vmem [shape: f32[2,16,1], index: 16, kind: input, shape index: {}, may-alias: {16,18}]   ;;  %s7673_s17 = inlined_call_operand.vmem [shape: f32[2,16,1], index: 17, kind: input, shape index: {}]   ;;  %s7674_s18 = inlined_call_operand.vmem [shape: f32[2,16,1], index: 18, kind: input, shape index: {}, may-alias: {16,18}]   ;;  %s7675_s19 = inlined_call_operand.hbm [shape: f32[1,8,16], index: 19, kind: input, shape index: {}]   ;;  %s7676_s20 = inlined_call_operand.vmem [shape: f32[8,1], index: 20, kind: input, shape index: {}]   ;;  %s7677_s21 = inlined_call_operand.vmem [shape: f32[2,8,16], index: 21, kind: output, shape index: {0}]   ;;  %s7678_s22 = inlined_call_operand.vmem [shape: f32[2,1,1], index: 22, kind: output, shape index: {1}]   ;;  %s7679_s23 = inlined_call_operand.vmem [shape: f32[2,16,1], index: 23, kind: output, shape index: {2}]  }
   0x1   :  { %7691 = sst [smem:[#allocation13_spill]] %s7656_s0 }
   0x2   :  { %7692 = sst [smem:[#allocation14_spill]] %s7657_s1 }
   0x3   :  { %7693 = sst [smem:[#allocation15_spill]] %s7658_s2 }
   0x4   :  { %7694 = sst [smem:[#allocation16_spill]] %s7659_s3 }
   0x5   :  { %7695 = sst [smem:[#allocation17_spill]] %s7660_s4 }
   0x6   :  { %7696 = sst [smem:[#allocation18_spill]] %s7661_s5 }
   0x7   :  { %7697 = sst [smem:[#allocation19_spill]] %s7662_s6 }
   0x8   :  { %7698 = sst [smem:[#allocation20_spill]] %s7663_s7 }
   0x9   :  { %7699 = sst [smem:[#allocation21_spill]] %s7671_s15 }
   0xa   :  { %7700 = sst [smem:[#allocation22_spill]] %s7676_s20 }
   0xb   :  { %7701 = sst [smem:[#allocation23_spill]] %s7677_s21 }
   0xc   :  { %7702 = sst [smem:[#allocation24_spill]] %s7678_s22 }
   0xd   :  { %7703 = sst [smem:[#allocation25_spill]] %s7679_s23 }
   0xe   :  { %29 = vsyncpa [#allocation3], 0 }
   0xf   :  { %30 = vsyncpa [#allocation5], 0 }
  0x10   :  { %31 = vsyncpa [#allocation8], 0  ;;  %s6739_s4 = smov 0  }
  0x11 LB: > { %7704 = sst [smem:[#allocation12_spill]] %s6605_s4  ;;  %s6745_s30 = sadd.s32 4294967295, %s6605_s4   ;;  %s6605_s4 = sphi %s6739_s4, %s37_s4  }
  0x12   : > { %p5418_p0 = scmp.ge.s32.totalorder %s6605_s4, 1  ;;  %p566_p1 = scmp.lt.s32.totalorder %s6605_s4, 3 }
  0x13   : > { %p7689_p2 = scmp.eq.s32.totalorder %s6745_s30, 0  ;;  %s6607_s25 = smov [#allocation4]  }
  0x14   : > { %p6750_p3 = pnand %p5418_p0, %p566_p1  ;;  %s612_s5 = sshll.u32 %s6607_s25, 4  ;;  %s6754_s5 = int_to_ptr.vmem [resolvable:$true] %s612_s5 }
  0x15   : > { %s6608_s1 = smov [#allocation2]   ;;  %s6609_s6 = smov [#allocation6]  }
  0x16   : > { %s7705_s24 = scalar_select %p6750_p3, 1, 0 }
  0x17   : > { %p6414_p4 = pneg %p6750_p3  ;;  %s584_s26 = sshll.u32 %s6608_s1, 4  ;;  %s6758_s26 = int_to_ptr.vmem [resolvable:$true] %s584_s26 }
  0x18   : > { %s634_s27 = sshll.u32 %s6609_s6, 4  ;;  %s6610_s7 = smov [#allocation7]   ;;  %s6766_s27 = int_to_ptr.vmem [resolvable:$true] %s634_s27 }
  0x19   : > { %p6762_p5 = pnand %p7689_p2, %p6414_p4  ;;  %s6768_s28 = sshll.u32 %s6610_s7, 4  ;;  %s664_s28 = int_to_ptr.vmem [resolvable:$true] %s6768_s28 }
  0x1a   : > { %s6475_s0 = scalar_lea.hbm %s7665_s9, 2304 }
  0x1b   : > { %p6476_p6 = scmp.ne.s32.totalorder %s7665_s9, %s6475_s0  ;;  %p6778_p7 = pneg %p6762_p5 }
  0x1c   : > { %p6482_p10 = scmp.lt.u32.totalorder %s6475_s0, %s7665_s9 }
  0x1d   : > { %p6478_p8 = pnand %p6778_p7, %p6476_p6 }
  0x1f   : > { %p6479_p9 = pneg %p6478_p8 }
  0x21   : > { %p6484_p11 = pnand %p6482_p10, %p6479_p9 }
  0x23   : > { %6487 = shalt.err (!%p6484_p11)
}
  0x24   : > { %s6488_s29 = scalar_lea.vmem %s6754_s5, 2304  ;;  %p6496_p1 = scmp.lt.s32.totalorder %s6754_s5, %s6754_s5 }
  0x25   : > { %p6489_p12 = scmp.ne.s32.totalorder %s6754_s5, %s6488_s29  ;;  %p6497_p4 = scmp.lt.s32.totalorder %s6488_s29, %s6488_s29 }
  0x27   : > { %p6491_p13 = pnand %p6489_p12, %p6778_p7  ;;  %p6498_p6 = por %p6497_p4, %p6496_p1 }
  0x29   : > { %p6492_p0 = pneg %p6491_p13 }
  0x2b   : > { %p6499_p8 = pnand %p6498_p6, %p6492_p0 }
  0x2d   : > { %6502 = shalt.err (!%p6499_p8)
}
  0x2e   : > { %s6611_s3 = smov 128   ;;  %s6612_s0 = smov 8  }
  0x2f   : > { %6420 = dma.hbm_to_vmem [thread:$0]  (!%p6762_p5), %s7665_s9, 2304, %s6754_s5, [#allocation5], %s6611_s3, %s6611_s3, %s6612_s0  }
  0x30   : > { %s7708_s22 = sld [smem:[#allocation16_spill]] }
  0x36   : > { %s6503_s29 = scalar_lea.hbm %s7708_s22, 1152 }
  0x37   : > { %p6504_p9 = scmp.ne.s32.totalorder %s7708_s22, %s6503_s29  ;;  %p6510_p12 = scmp.lt.u32.totalorder %s6503_s29, %s7708_s22 }
  0x39   : > { %p6506_p10 = pnand %p6504_p9, %p6778_p7 }
  0x3b   : > { %p6507_p11 = pneg %p6506_p10 }
  0x3d   : > { %p6512_p13 = pnand %p6510_p12, %p6507_p11 }
  0x3f   : > { %6515 = shalt.err (!%p6512_p13)
}
  0x40   : > { %s6516_s5 = scalar_lea.vmem %s6758_s26, 1152  ;;  %p6524_p6 = scmp.lt.s32.totalorder %s6758_s26, %s6758_s26 }
  0x41   : > { %p6517_p0 = scmp.ne.s32.totalorder %s6758_s26, %s6516_s5  ;;  %p6525_p8 = scmp.lt.s32.totalorder %s6516_s5, %s6516_s5 }
  0x43   : > { %p6519_p1 = pnand %p6517_p0, %p6778_p7  ;;  %p6526_p9 = por %p6525_p8, %p6524_p6 }
  0x45   : > { %p6520_p4 = pneg %p6519_p1 }
  0x47   : > { %p6527_p10 = pnand %p6526_p9, %p6520_p4 }
  0x49   : > { %6530 = shalt.err (!%p6527_p10)
}
  0x4a   : > { %6417 = dma.hbm_to_vmem [thread:$0]  (!%p6762_p5), %s7708_s22, 1152, %s6758_s26, [#allocation3], %s6611_s3, %s6611_s3, %s6612_s0  }
  0x4b   : > { %s6531_s25 = scalar_lea.hbm %s7669_s13, 768 }
  0x4c   : > { %p6532_p11 = scmp.ne.s32.totalorder %s7669_s13, %s6531_s25  ;;  %p6538_p0 = scmp.lt.u32.totalorder %s6531_s25, %s7669_s13 }
  0x4e   : > { %p6534_p12 = pnand %p6532_p11, %p6778_p7 }
  0x50   : > { %p6535_p13 = pneg %p6534_p12 }
  0x52   : > { %p6540_p1 = pnand %p6538_p0, %p6535_p13 }
  0x54   : > { %6543 = shalt.err (!%p6540_p1)
}
  0x55   : > { %s6544_s26 = scalar_lea.vmem %s6766_s27, 768  ;;  %p6552_p9 = scmp.lt.s32.totalorder %s6766_s27, %s6766_s27 }
  0x56   : > { %p6545_p4 = scmp.ne.s32.totalorder %s6766_s27, %s6544_s26  ;;  %p6553_p10 = scmp.lt.s32.totalorder %s6544_s26, %s6544_s26 }
  0x58   : > { %p6547_p6 = pnand %p6545_p4, %p6778_p7  ;;  %p6554_p11 = por %p6553_p10, %p6552_p9 }
  0x5a   : > { %p6548_p8 = pneg %p6547_p6 }
  0x5c   : > { %p6555_p12 = pnand %p6554_p11, %p6548_p8 }
  0x5e   : > { %6558 = shalt.err (!%p6555_p12)
}
  0x5f   : > { %6423 = dma.hbm_to_vmem [thread:$0]  (!%p6762_p5), %s7669_s13, 768, %s6766_s27, [#allocation5], %s6611_s3, %s6611_s3, %s6612_s0  }
  0x60   : > { %s6559_s23 = scalar_lea.hbm %s7675_s19, 128 }
  0x61   : > { %p6560_p13 = scmp.ne.s32.totalorder %s7675_s19, %s6559_s23  ;;  %p6566_p4 = scmp.lt.u32.totalorder %s6559_s23, %s7675_s19 }
  0x63   : > { %p6562_p0 = pnand %p6560_p13, %p6778_p7 }
  0x65   : > { %p6563_p1 = pneg %p6562_p0 }
  0x67   : > { %p6568_p6 = pnand %p6566_p4, %p6563_p1 }
  0x69   : > { %6571 = shalt.err (!%p6568_p6)
}
  0x6a   : > { %s6572_s29 = scalar_lea.vmem %s664_s28, 128  ;;  %p6580_p11 = scmp.lt.s32.totalorder %s664_s28, %s664_s28 }
  0x6b   : > { %p6573_p8 = scmp.ne.s32.totalorder %s664_s28, %s6572_s29  ;;  %p6581_p12 = scmp.lt.s32.totalorder %s6572_s29, %s6572_s29 }
  0x6d   : > { %p6575_p9 = pnand %p6573_p8, %p6778_p7  ;;  %p6582_p2 = por %p6581_p12, %p6580_p11 }
  0x6f   : > { %p6576_p10 = pneg %p6575_p9 }
  0x71   : > { %p6583_p3 = pnand %p6582_p2, %p6576_p10 }
  0x73   : > { %6586 = shalt.err (!%p6583_p3)
}
  0x74   : > { %6426 = dma.hbm_to_vmem [thread:$0]  (!%p6762_p5), %s7675_s19, 128, %s664_s28, [#allocation8]  }
  0x75   : > { %p7709_p13 = scmp.ne.s32.totalorder %s7705_s24, 0 }
  0x76   : > { %p7710_p0 = scmp.eq.s32.totalorder (!%p7709_p13), %s6745_s30, 0 }
  0x77   : > { %687 = sbr.rel (%p7709_p13) target bundleno = 5055 (0x13bf), region = 104 }
  0x7e   : > { %6592 = dma.done.wait (%p7710_p0), [#allocation3], 1152   ;;  %p7711_p7 = pmov %p7710_p0 }
  0x7f   : > { %p7712_p1 = pmov %p7710_p0 }
  0x80   : > { %6594 = vsyncadd (%p7711_p7), [#allocation3], 4294966144 }
  0x81   : > { %6596 = dma.done.wait (%p7712_p1), [#allocation5], 3072   ;;  %p7713_p2 = pmov %p7710_p0 }
  0x82   : > { %p7714_p3 = pmov %p7710_p0 }
  0x83   : > { %6598 = vsyncadd (%p7713_p2), [#allocation5], 4294964224 }
  0x84   : > { %6600 = dma.done.wait (%p7714_p3), [#allocation8], 128   ;;  %p7715_p5 = pmov %p7710_p0 }
  0x85   : > { %p770_p4 = scmp.lt.s32.totalorder %s6745_s30, 1  ;;  %v6613_v0 = vmov 0.0|0.0   ;;  %vm6614_vm0 = vmmov 0   ;;  %v6615_v1 = vmov 0.0   ;;  %s7716_s28 = sld [smem:[#allocation13_spill]]  ;;  %vm901_vm1 = vcmask 1043456  }
  0x86   : > { %6602 = vsyncadd (%p7715_p5), [#allocation8], 4294967168  ;;  %6246 = vmatprep.subr.bf16.mxu1 %v6613_v0  ;;  %5774 = vmatprep.mubr.msk.f32.mxu1 %vm6614_vm0, %v6615_v1  ;;  %vm809_vm2 = vcmask 130048   ;;  %s7717_s15 = sld [smem:[#allocation14_spill]]  ;;  %vm6616_vm3 = vmmov 1   ;;  %v800_v12 = vld [vmem:[#allocation2 + $0x18] sm:$0xff] }
  0x87   : > { %s7736_s30 = smov (!%p770_p4, %s6745_s30), 1  ;;  %vm6908_vm4 = vmpackc.low %vm901_vm1, %vm6616_vm3  ;;  %vm891_vm5 = vcmask 97280   ;;  %v801_v13 = vld [vmem:[#allocation2 + $0x20] sm:$0xff]  ;;  %v802_v14 = vld [vmem:[#allocation2 + $0x28] sm:$0xff]  ;;  %v6617_v15 = vmov 0   ;;  %s7720_s27 = sld [smem:[#allocation17_spill]] }
  0x88   : > { %s5552_s4 = sshll.u32 %s7736_s30, 4  ;;  %6455 = vset.pattern.permute.xlu0 %v6617_v15  ;;  %6456 = vset.pattern.permute.xlu1 %v6617_v15  ;;  %s7722_s23 = sld [smem:[#allocation20_spill]]  ;;  %v1294_v22 = vld [vmem:[%s7664_s8] sm:$0xff]  ;;  %v1295_v27 = vld [vmem:[%s7664_s8 + $0x8] sm:$0xff]  ;;  %v1296_v29 = vld [vmem:[%s7664_s8 + $0x10] sm:$0xff]  ;;  %vm1389_vm6 = vcmask 195584  }
  0x89   : > { %v1298_v32 = vld [vmem:[%s7664_s8 + $0x20] sm:$0xff]  ;;  %v1299_v34 = vld [vmem:[%s7664_s8 + $0x28] sm:$0xff]  ;;  %v1297_v35 = vld [vmem:[%s7664_s8 + $0x18] sm:$0xff]  ;;  %s7723_s2 = sld [smem:[#allocation22_spill]]  ;;  %s7724_s5 = sld [smem:[#allocation18_spill]] }
  0x8a   : > { %v2398_v36 = vld [vmem:[%s7666_s10 + $0x8] sm:$0xff]  ;;  %v2403_v38 = vld [vmem:[%s7667_s11] sm:$0xff]  ;;  %v2399_v41 = vld [vmem:[%s7666_s10 + $0x10] sm:$0xff]  ;;  %s7725_s24 = sld [smem:[#allocation21_spill]]  ;;  %s7726_s26 = sld [smem:[#allocation15_spill]] }
  0x8b   : > { %s774_s0 = scalar_lea.vmem %s7716_s28, %s5552_s4  ;;  %v2397_v39 = vld [vmem:[%s7666_s10] sm:$0xff]  ;;  %v2405_v42 = vld [vmem:[%s7667_s11 + $0x10] sm:$0xff]  ;;  %v2404_v43 = vld [vmem:[%s7667_s11 + $0x8] sm:$0xff]  ;;  %s5431_s25 = sshll.u32 %s7736_s30, 3 }
  0x8c   : > { %v789_v2 = vld [vmem:[%s7717_s15 + $0x10] sm:$0xff]  ;;  %v790_v3 = vld [vmem:[%s7717_s15 + $0x18] sm:$0xff]  ;;  %v795_v4 = vld [vmem:[%s774_s0] sm:$0xff]  ;;  %s7731_s7 = sld [smem:[#allocation23_spill]]  ;;  %s7732_s28 = sld [smem:[#allocation25_spill]] }
  0x8d   : > { %v6906_v5 = vpack.c.bf16 %v790_v3, %v789_v2  ;;  %v796_v6 = vld [vmem:[%s774_s0 + $0x8] sm:$0xf]  ;;  %5767 = vmatprep.mubr.msk.f32.mxu0 %vm809_vm2, %v795_v4  ;;  %v791_v9 = vld [vmem:[%s7717_s15 + $0x30] sm:$0xff]  ;;  %v792_v10 = vld [vmem:[%s7717_s15 + $0x38] sm:$0xff]  ;;  %s7721_s0 = sld [smem:[#allocation19_spill]]  ;;  %s7733_s1 = sld [smem:[#allocation24_spill]] }
  0x8e   : > { %v6247_v8 = vpack.c.bf16 %v796_v6, %v795_v4  ;;  %v6920_v11 = vpack.c.bf16 %v792_v10, %v791_v9  ;;  %v806_v16 = vld [vmem:[%s7720_s27] sm:$0xff]  ;;  %v807_v17 = vld [vmem:[%s7720_s27 + $0x8] sm:$0xff]  ;;  %v808_v19 = vld [vmem:[%s7720_s27 + $0x10] sm:$0xff] }
  0x8f   : > { %6243 = vmatprep.subr.bf16.mxu0 %v6906_v5  ;;  %1248 = vperm.xlu0 %6455, %v806_v16   ;;  %v1288_v20 = vld [vmem:[%s7722_s23] sm:$0xff]  ;;  %v1290_v24 = vld [vmem:[%s7722_s23 + $0x10] sm:$0xff]  ;;  %v1289_v25 = vld [vmem:[%s7722_s23 + $0x8] sm:$0xff] }
  0x90   : > { %6249 = vmatpush3.bf16.msk.msra.mxu1 %vm6908_vm4, %v6247_v8  ;;  %6245 = vmatpush3.bf16.msra.mxu0 %v6906_v5  ;;  %v1292_v30 = vld [vmem:[%s7722_s23 + $0x20] sm:$0xff]  ;;  %v1291_v33 = vld [vmem:[%s7722_s23 + $0x18] sm:$0xff]  ;;  %v1293_v37 = vld [vmem:[%s7722_s23 + $0x28] sm:$0xff] }
  0x91   : > { %6255 = vmatprep.subr.bf16.mxu1 %v6920_v11  ;;  %6250 = vmatprep.subr.bf16.mxu0 %v6613_v0  ;;  %v2409_v40 = vld [vmem:[%s7668_s12] sm:$0xff]  ;;  %v2400_v44 = vld [vmem:[%s7666_s10 + $0x18] sm:$0xff]  ;;  %v2410_v45 = vld [vmem:[%s7668_s12 + $0x8] sm:$0xff] }
  0x92   : > { %1258 = vperm.xlu1 %6456, %v808_v19   ;;  %v2402_v46 = vld [vmem:[%s7666_s10 + $0x28] sm:$0xff]  ;;  %v2411_v47 = vld [vmem:[%s7668_s12 + $0x10] sm:$0xff]  ;;  %v2412_v48 = vld [vmem:[%s7668_s12 + $0x18] sm:$0xff]  ;;  %s778_s29 = scalar_lea.vmem %s7731_s7, %s5431_s25  ;;  %s786_s20 = scalar_lea.vmem %s7732_s28, %s5552_s4 }
  0x93   : > { %5775 = vmatmul.mubr.msk.f32.vlgmr.msra.gmra.mrb[0].mxu1 %vm891_vm5, %v800_v12  ;;  %5768 = vmatmul.mubr.msk.f32.vlgmr.msra.gmra.mrb[0].mxu0 %vm809_vm2, %v796_v6  ;;  %v1283_v18 = vld [vmem:[%s7721_s0 + $0x8] sm:$0xff]  ;;  %v1282_v21 = vld [vmem:[%s7721_s0] sm:$0xff]  ;;  %v1284_v23 = vld [vmem:[%s7721_s0 + $0x10] sm:$0xff]  ;;  %s781_s6 = scalar_lea.vmem %s7733_s1, %s7736_s30 }
  0x94   : > { %5777 = vmatprep.mubr.msk.f32.mxu1 %vm6614_vm0, %v6615_v1  ;;  %6257 = vmatpush3.bf16.msra.mxu1 %v6920_v11  ;;  %v1285_v26 = vld [vmem:[%s7721_s0 + $0x18] sm:$0xff]  ;;  %v1287_v28 = vld [vmem:[%s7721_s0 + $0x28] sm:$0xff]  ;;  %v1286_v31 = vld [vmem:[%s7721_s0 + $0x20] sm:$0xff] }
  0x95   : > { %5787 = vmatprep.mubr.msk.f32.mxu0 %vm6614_vm0, %v6615_v1  ;;  %6262 = vmatprep.subr.bf16.mxu1 %v6613_v0  ;;  %v2401_v49 = vld [vmem:[%s7666_s10 + $0x20] sm:$0xff]  ;;  %v2406_v51 = vld [vmem:[%s7667_s11 + $0x18] sm:$0xff]  ;;  %v2414_v52 = vld [vmem:[%s7668_s12 + $0x28] sm:$0xff] }
  0x96   : > { %1253 = vperm.xlu0 %6455, %v807_v17   ;;  %1742 = vperm.xlu1 %6456, %v1282_v21   ;;  %v2413_v50 = vld [vmem:[%s7668_s12 + $0x20] sm:$0xff]  ;;  %v3508_v54 = vld [vmem:[%s7670_s14 + $0x8] sm:$0xff]  ;;  %v3950_v62 = vld [vmem:[%s7672_s16 + $0x18] sm:$0xff] }
  0x97   : > { %5778 = vmatmul.mubr.msk.f32.gmra.mrb[2].mxu1 %vm891_vm5, %v801_v13  ;;  %v2407_v53 = vld [vmem:[%s7667_s11 + $0x20] sm:$0xff]  ;;  %v2408_v55 = vld [vmem:[%s7667_s11 + $0x28] sm:$0xff]  ;;  %v3954_v2 = vld [vmem:[%s7673_s17 + $0x18] sm:$0xff] }
  0x98   : > { %5780 = vmatprep.mubr.msk.f32.mxu1 %vm6614_vm0, %v6615_v1  ;;  %v3948_v56 = vld [vmem:[%s7672_s16 + $0x8] sm:$0xff]  ;;  %v3507_v57 = vld [vmem:[%s7670_s14] sm:$0xff]  ;;  %v3949_v3 = vld [vmem:[%s7672_s16 + $0x10] sm:$0xff] }
  0x99   : > { %v3952_v58 = vld [vmem:[%s7673_s17 + $0x8] sm:$0xff]  ;;  %v3947_v59 = vld [vmem:[%s7672_s16] sm:$0xff]  ;;  %v3957_v8 = vld [vmem:[%s7674_s18 + $0x10] sm:$0xff] }
  0x9a   : > { %1747 = vperm.xlu0 %6455, %v1283_v18   ;;  %1752 = vperm.xlu1 %6456, %v1284_v23   ;;  %v3956_v60 = vld [vmem:[%s7674_s18 + $0x8] sm:$0xff]  ;;  %v3951_v61 = vld [vmem:[%s7673_s17] sm:$0xff]  ;;  %v799_v23 = vld [vmem:[#allocation2 + $0x10] sm:$0xff] }
  0x9b   : > { %5781 = vmatmul.mubr.msk.f32.gmra.mrb[4].mxu1 %vm891_vm5, %v802_v14  ;;  %v3955_v63 = vld [vmem:[%s7674_s18] sm:$0xff] }
  0x9c   : > { %5800 = vmatprep.mubr.msk.f32.mxu1 %vm809_vm2, %v795_v4  ;;  %v3958_v4 = vld [vmem:[%s7674_s18 + $0x18] sm:$0xff]  ;;  %v4911_v9 = vld [vmem:[%s7723_s2] sm:$0xff] }
  0x9d   : > { %v797_v17 = vld [vmem:[#allocation2] sm:$0xff] }
  0x9e   : > { %1796 = vperm.xlu0 %6455, %v1288_v20   ;;  %1801 = vperm.xlu1 %6456, %v1289_v25   ;;  %v798_v20 = vld [vmem:[#allocation2 + $0x8] sm:$0xff] }
  0x9f   : > { %5801 = vmatmul.mubr.msk.f32.vlgmr.msra.gmra.mrb[6].mxu1 %vm809_vm2, %v796_v6  ;;  %v3953_v6 = vld [vmem:[%s7673_s17 + $0x10] sm:$0xff] }
  0xa0   : > { %6264 = vmatpush3.bf16.msra.mxu1 %v6906_v5  ;;  %5820 = vmatprep.mubr.msk.f32.mxu1 %vm6614_vm0, %v6615_v1 }
  0xa1   : > { %6268 = vmatprep.subr.bf16.mxu1 %v6613_v0 }
  0xa2   : > { %1814 = vperm.xlu0 %6455, %v1294_v22   ;;  %1819 = vperm.xlu1 %6456, %v1295_v27   ;;  %v804_v27 = vld [vmem:[#allocation2 + $0x38] sm:$0xff] }
  0xa6   : > { %1806 = vperm.xlu0 %6455, %v1290_v24   ;;  %1824 = vperm.xlu1 %6456, %v1296_v29  }
  0xaa   : > { %2280 = vperm.xlu0 %6455, %v1285_v26   ;;  %2285 = vperm.xlu1 %6456, %v1286_v31   ;;  %v803_v26 = vld [vmem:[#allocation2 + $0x30] sm:$0xff] }
  0xae   : > { %2290 = vperm.xlu0 %6455, %v1287_v28   ;;  %2333 = vperm.xlu1 %6456, %v1291_v33   ;;  %v805_v28 = vld [vmem:[#allocation2 + $0x40] sm:$0xff] }
  0xb2   : > { %2338 = vperm.xlu0 %6455, %v1292_v30   ;;  %2351 = vperm.xlu1 %6456, %v1297_v35  }
  0xb6   : > { %2356 = vperm.xlu0 %6455, %v1298_v32   ;;  %2343 = vperm.xlu1 %6456, %v1293_v37  }
  0xba   : > { %2361 = vperm.xlu0 %6455, %v1299_v34   ;;  %2856 = vperm.xlu1 %6456, %v2397_v39  }
  0xbe   : > { %2861 = vperm.xlu0 %6455, %v2398_v36   ;;  %2866 = vperm.xlu1 %6456, %v2399_v41  }
  0xc2   : > { %2909 = vperm.xlu0 %6455, %v2403_v38   ;;  %2914 = vperm.xlu1 %6456, %v2404_v43  }
  0xc6   : > { %2927 = vperm.xlu0 %6455, %v2409_v40   ;;  %2932 = vperm.xlu1 %6456, %v2410_v45  }
  0xca   : > { %2919 = vperm.xlu0 %6455, %v2405_v42   ;;  %2937 = vperm.xlu1 %6456, %v2411_v47  }
  0xce   : > { %3393 = vperm.xlu0 %6455, %v2400_v44   ;;  %3398 = vperm.xlu1 %6456, %v2401_v49  }
  0xd2   : > { %3403 = vperm.xlu0 %6455, %v2402_v46   ;;  %3446 = vperm.xlu1 %6456, %v2406_v51  }
  0xd6   : > { %3464 = vperm.xlu0 %6455, %v2412_v48   ;;  %3451 = vperm.xlu1 %6456, %v2407_v53   ;;  %v1267_v53 = vld [vmem:[%s7724_s5 + $0x18] sm:$0xff] }
  0xda   : > { %3469 = vperm.xlu0 %6455, %v2413_v50   ;;  %3456 = vperm.xlu1 %6456, %v2408_v55   ;;  %v1269_v55 = vld [vmem:[%s7724_s5 + $0x28] sm:$0xff] }
  0xde   : > { %3474 = vperm.xlu0 %6455, %v2414_v52   ;;  %3925 = vperm.xlu1 %6456, %v3507_v57  }
  0xe2   : > { %3930 = vperm.xlu0 %6455, %v3508_v54   ;;  %4362 = vperm.xlu1 %6456, %v3947_v59   ;;  %v1268_v54 = vld [vmem:[%s7724_s5 + $0x20] sm:$0xff] }
  0xe6   : > { %4367 = vperm.xlu0 %6455, %v3948_v56   ;;  %4403 = vperm.xlu1 %6456, %v3951_v61  }
  0xea   : > { %4408 = vperm.xlu0 %6455, %v3952_v58   ;;  %4415 = vperm.xlu1 %6456, %v3955_v63   ;;  %v1264_v63 = vld [vmem:[%s7724_s5] sm:$0xff] }
  0xee   : > { %4420 = vperm.xlu0 %6455, %v3956_v60   ;;  %4834 = vperm.xlu1 %6456, %v3949_v3  }
  0xf2   : > { %4839 = vperm.xlu0 %6455, %v3950_v62   ;;  %4874 = vperm.xlu1 %6456, %v3953_v6  }
  0xf6   : > { %4879 = vperm.xlu0 %6455, %v3954_v2   ;;  %4886 = vperm.xlu1 %6456, %v3957_v8  }
  0xfa   : > { %4891 = vperm.xlu0 %6455, %v3958_v4   ;;  %4914 = vperm.xlu1 %6456, %v4911_v9   ;;  %v1265_v4 = vld [vmem:[%s7724_s5 + $0x8] sm:$0xff]  ;;  %v1266_v9 = vld [vmem:[%s7724_s5 + $0x10] sm:$0xff] }
 0x10e   : > { %v1249_v37 = vpop.permute.xlu0 %1248 }
 0x111   : > { %v1259_v51 = vpop.permute.xlu1 %1258 }
 0x115   : > { %v1254_v45 = vpop.permute.xlu0 %1253 }
 0x166   : > { %v970_v10 = vpop.f32.mrb[0].mxu1  ;;  %v5769_v12 = vpop.f32.mrb[0].mxu0 }
 0x167   : > { %v5776_v13 = vpop.f32.mrb[1].mxu1  ;;  %v882_v14 = vpop.f32.mrb[1].mxu0 }
 0x168   : > { %v6251_v15 = vpack.c.bf16 %v5769_v12, %v882_v14 }
 0x16a   : > { %v975_v16 = vpop.f32.mrb[2].mxu1  ;;  %6253 = vmatpush3.bf16.msk.msra.mxu0 %vm6908_vm4, %v6251_v15 }
 0x16b   : > { %v5779_v18 = vpop.f32.mrb[3].mxu1  ;;  %6258 = vmatprep.subr.bf16.mxu0 %v6613_v0 }
 0x16d   : > { %5788 = vmatmul.mubr.msk.f32.vlgmr.msra.gmra.mrb[2].mxu0 %vm891_vm5, %v797_v17 }
 0x16e   : > { %v980_v19 = vpop.f32.mrb[4].mxu1  ;;  %5790 = vmatprep.mubr.msk.f32.mxu0 %vm6614_vm0, %v6615_v1 }
 0x16f   : > { %v5782_v21 = vpop.f32.mrb[5].mxu1 }
 0x170   : > { %v1271_v21 = vld [vmem:[%s7724_s5 + $0x38] sm:$0xff] }
 0x171   : > { %5791 = vmatmul.mubr.msk.f32.gmra.mrb[4].mxu0 %vm891_vm5, %v798_v20  ;;  %v1270_v20 = vld [vmem:[%s7724_s5 + $0x30] sm:$0xff] }
 0x172   : > { %v5802_v22 = vpop.f32.mrb[6].mxu1  ;;  %5793 = vmatprep.mubr.msk.f32.mxu0 %vm6614_vm0, %v6615_v1 }
 0x173   : > { %v1142_v24 = vpop.f32.mrb[7].mxu1 }
 0x174   : > { %v6259_v25 = vpack.c.bf16 %v5802_v22, %v1142_v24  ;;  %v1272_v22 = vld [vmem:[%s7724_s5 + $0x40] sm:$0xff] }
 0x175   : > { %5794 = vmatmul.mubr.msk.f32.gmra.mrb[6].mxu0 %vm891_vm5, %v799_v23 }
 0x176   : > { %6261 = vmatpush3.bf16.msk.msra.mxu0 %vm6908_vm4, %v6259_v25  ;;  %5807 = vmatprep.mubr.msk.f32.mxu0 %vm6614_vm0, %v6615_v1 }
 0x177   : > { %6265 = vmatprep.subr.bf16.mxu0 %v6613_v0 }
 0x179   : > { %5808 = vmatmul.mubr.msk.f32.vlgmr.msra.gmra.mrb[8].mxu0 %vm891_vm5, %v803_v26 }
 0x17a   : > { %5810 = vmatprep.mubr.msk.f32.mxu0 %vm6614_vm0, %v6615_v1 }
 0x17d   : > { %5811 = vmatmul.mubr.msk.f32.gmra.mrb[10].mxu0 %vm891_vm5, %v804_v27 }
 0x17e   : > { %5813 = vmatprep.mubr.msk.f32.mxu0 %vm6614_vm0, %v6615_v1 }
 0x181   : > { %5814 = vmatmul.mubr.msk.f32.gmra.mrb[12].mxu0 %vm891_vm5, %v805_v28 }
 0x182   : > { %5835 = vmatprep.mubr.msk.f32.mxu0 %vm6614_vm0, %v6615_v1 }
 0x240   : > { %v1062_v7 = vpop.f32.mrb[2].mxu0 }
 0x241   : > { %v1063_v29 = vadd.f32 %v1062_v7, %v970_v10  ;;  %v5789_v30 = vpop.f32.mrb[3].mxu0 }
 0x244   : > { %v1067_v31 = vpop.f32.mrb[4].mxu0 }
 0x245   : > { %v1068_v32 = vadd.f32 %v1067_v31, %v975_v16  ;;  %v5792_v33 = vpop.f32.mrb[5].mxu0 }
 0x248   : > { %v1072_v34 = vpop.f32.mrb[6].mxu0 }
 0x249   : > { %v1073_v35 = vadd.f32 %v1072_v34, %v980_v19  ;;  %v5795_v36 = vpop.f32.mrb[7].mxu0  ;;  %v1743_v34 = vpop.permute.xlu1 %1742 }
 0x24c   : > { %v1229_v38 = vpop.f32.mrb[8].mxu0 }
 0x24d   : > { %v1243_v39 = vadd.f32 %v1229_v38, %v1063_v29  ;;  %v5809_v40 = vpop.f32.mrb[9].mxu0 }
 0x24f   : > { %v7131_v41 = vadd.f32 %v1249_v37, %v1243_v39  ;;  %v1748_v39 = vpop.permute.xlu0 %1747 }
 0x250   : > { %v1234_v42 = vpop.f32.mrb[10].mxu0 }
 0x251   : > { %v1244_v43 = vadd.f32 %v1234_v42, %v1068_v32  ;;  %v5812_v44 = vpop.f32.mrb[11].mxu0  ;;  %5821 = vmatmul.mubr.msk.f32.vlgmr.msra.gmra.mrb[8].mxu1 %vm809_vm2, %v7131_v41 }
 0x252   : > { %5823 = vmatprep.mubr.msk.f32.mxu1 %vm6614_vm0, %v6615_v1 }
 0x253   : > { %v7137_v46 = vadd.f32 %v1254_v45, %v1244_v43 }
 0x254   : > { %v1239_v47 = vpop.f32.mrb[12].mxu0 }
 0x255   : > { %v1245_v48 = vadd.f32 %v1239_v47, %v1073_v35  ;;  %5824 = vmatmul.mubr.msk.f32.gmra.mrb[10].mxu1 %vm809_vm2, %v7137_v46  ;;  %v5815_v49 = vpop.f32.mrb[13].mxu0  ;;  %v6266_v50 = vpack.c.bf16 %v7137_v46, %v7131_v41 }
 0x256   : > { %5826 = vmatprep.mubr.msk.f32.mxu1 %vm6614_vm0, %v6615_v1 }
 0x257   : > { %v7145_v52 = vadd.f32 %v1259_v51, %v1245_v48  ;;  %6267 = vmatpush3.bf16.msra.mxu0 %v6266_v50  ;;  %v1753_v48 = vpop.permute.xlu1 %1752 }
 0x258   : > { %5833 = vmatprep.subr.mxu0 %v6615_v1 }
 0x259   : > { %5827 = vmatmul.mubr.msk.f32.gmra.mrb[12].mxu1 %vm809_vm2, %v7145_v52 }
 0x25a   : > { %5850 = vmatprep.mubr.msk.f32.mxu1 %vm6614_vm0, %v6615_v1 }
 0x25b   : > { %5834 = vmatpush3.msra.mxu0 %v7145_v52 }
 0x25c   : > { %5836 = vmatmul.mubr.msk.f32.vlgmr.msra.gmra.mrb[14].mxu0 %vm1389_vm6, %v1267_v53  ;;  %6271 = vmatprep.subr.bf16.mxu0 %v6613_v0 }
 0x25d   : > { %5838 = vmatprep.mubr.msk.f32.mxu0 %vm6614_vm0, %v6615_v1  ;;  %6273 = vmatpush3.bf16.msra.mxu0 %v6920_v11 }
 0x25e   : > { %6277 = vmatprep.subr.bf16.mxu0 %v6613_v0 }
 0x260   : > { %5839 = vmatmul.mubr.msk.f32.gmra.mrb[16].mxu0 %vm1389_vm6, %v1268_v54 }
 0x261   : > { %5841 = vmatprep.mubr.msk.f32.mxu0 %vm6614_vm0, %v6615_v1 }
 0x264   : > { %5842 = vmatmul.mubr.msk.f32.gmra.mrb[18].mxu0 %vm1389_vm6, %v1269_v55 }
 0x265   : > { %5863 = vmatprep.mubr.msk.f32.mxu0 %vm6614_vm0, %v6615_v1 }
 0x268   : > { %5864 = vmatmul.mubr.msk.f32.vlgmr.msra.gmra.mrb[20].mxu0 %vm809_vm2, %v7131_v41 }
 0x269   : > { %5866 = vmatprep.mubr.msk.f32.mxu0 %vm6614_vm0, %v6615_v1  ;;  %6279 = vmatpush3.bf16.msra.mxu0 %v6906_v5 }
 0x26a   : > { %6283 = vmatprep.subr.bf16.mxu0 %v6613_v0 }
 0x26c   : > { %5867 = vmatmul.mubr.msk.f32.gmra.mrb[22].mxu0 %vm809_vm2, %v7137_v46 }
 0x26d   : > { %5869 = vmatprep.mubr.msk.f32.mxu0 %vm6614_vm0, %v6615_v1 }
 0x270   : > { %5870 = vmatmul.mubr.msk.f32.gmra.mrb[24].mxu0 %vm809_vm2, %v7145_v52 }
 0x271   : > { %5891 = vmatprep.mubr.msk.f32.mxu0 %vm6614_vm0, %v6615_v1 }
 0x324   : > { %v1375_v56 = vpop.f32.mrb[8].mxu1 }
 0x325   : > { %v5822_v57 = vpop.f32.mrb[9].mxu1 }
 0x328   : > { %v1380_v58 = vpop.f32.mrb[10].mxu1 }
 0x329   : > { %v6269_v59 = vpack.c.bf16 %v1380_v58, %v1375_v56  ;;  %v5825_v60 = vpop.f32.mrb[11].mxu1 }
 0x32b   : > { %6270 = vmatpush3.bf16.msra.mxu1 %v6269_v59 }
 0x32c   : > { %v1385_v61 = vpop.f32.mrb[12].mxu1  ;;  %5848 = vmatprep.subr.mxu1 %v6615_v1 }
 0x32d   : > { %v5828_v62 = vpop.f32.mrb[13].mxu1 }
 0x32f   : > { %v1465_v2 = vpop.f32.mrb[14].mxu0  ;;  %5849 = vmatpush3.msra.mxu1 %v1385_v61 }
 0x330   : > { %v5837_v3 = vpop.f32.mrb[15].mxu0  ;;  %5851 = vmatmul.mubr.msk.f32.vlgmr.msra.gmra.mrb[14].mxu1 %vm1389_vm6, %v1264_v63  ;;  %6274 = vmatprep.subr.bf16.mxu1 %v6613_v0 }
 0x331   : > { %5853 = vmatprep.mubr.msk.f32.mxu1 %vm6614_vm0, %v6615_v1 }
 0x333   : > { %v1470_v6 = vpop.f32.mrb[16].mxu0 }
 0x334   : > { %v5840_v8 = vpop.f32.mrb[17].mxu0  ;;  %5854 = vmatmul.mubr.msk.f32.gmra.mrb[16].mxu1 %vm1389_vm6, %v1265_v4 }
 0x335   : > { %5856 = vmatprep.mubr.msk.f32.mxu1 %vm6614_vm0, %v6615_v1 }
 0x337   : > { %v1475_v10 = vpop.f32.mrb[18].mxu0 }
 0x338   : > { %v5843_v12 = vpop.f32.mrb[19].mxu0  ;;  %5857 = vmatmul.mubr.msk.f32.gmra.mrb[18].mxu1 %vm1389_vm6, %v1266_v9 }
 0x339   : > { %5878 = vmatprep.mubr.msk.f32.mxu1 %vm6614_vm0, %v6615_v1 }
 0x33b   : > { %v1634_v13 = vpop.f32.mrb[20].mxu0 }
 0x33c   : > { %v5865_v14 = vpop.f32.mrb[21].mxu0 }
 0x33f   : > { %v1639_v15 = vpop.f32.mrb[22].mxu0 }
 0x340   : > { %v6275_v16 = vpack.c.bf16 %v1639_v15, %v1634_v13  ;;  %v5868_v17 = vpop.f32.mrb[23].mxu0 }
 0x342   : > { %6276 = vmatpush3.bf16.msra.mxu1 %v6275_v16 }
 0x343   : > { %v1644_v18 = vpop.f32.mrb[24].mxu0  ;;  %5876 = vmatprep.subr.mxu1 %v6615_v1 }
 0x344   : > { %v5871_v19 = vpop.f32.mrb[25].mxu0 }
 0x346   : > { %5877 = vmatpush3.msra.mxu1 %v1644_v18 }
 0x347   : > { %5879 = vmatmul.mubr.msk.f32.vlgmr.msra.gmra.mrb[20].mxu1 %vm1389_vm6, %v1270_v20  ;;  %6280 = vmatprep.subr.bf16.mxu1 %v6613_v0 }
 0x348   : > { %5881 = vmatprep.mubr.msk.f32.mxu1 %vm6614_vm0, %v6615_v1 }
 0x34b   : > { %5882 = vmatmul.mubr.msk.f32.gmra.mrb[22].mxu1 %vm1389_vm6, %v1271_v21  ;;  %v1797_v21 = vpop.permute.xlu0 %1796 }
 0x34c   : > { %5884 = vmatprep.mubr.msk.f32.mxu1 %vm6614_vm0, %v6615_v1 }
 0x34f   : > { %5885 = vmatmul.mubr.msk.f32.gmra.mrb[24].mxu1 %vm1389_vm6, %v1272_v22  ;;  %v1802_v22 = vpop.permute.xlu1 %1801 }
 0x350   : > { %5906 = vmatprep.mubr.msk.f32.mxu1 %vm6614_vm0, %v6615_v1 }
 0x403   : > { %v1554_v23 = vpop.f32.mrb[14].mxu1 }
 0x404   : > { %v1555_v24 = vadd.f32 %v1554_v23, %v1465_v2  ;;  %v5852_v25 = vpop.f32.mrb[15].mxu1  ;;  %v1815_v23 = vpop.permute.xlu0 %1814 }
 0x407   : > { %v1559_v26 = vpop.f32.mrb[16].mxu1 }
 0x408   : > { %v1560_v27 = vadd.f32 %v1559_v26, %v1470_v6  ;;  %v5855_v28 = vpop.f32.mrb[17].mxu1 }
 0x40b   : > { %v1564_v7 = vpop.f32.mrb[18].mxu1 }
 0x40c   : > { %v1565_v29 = vadd.f32 %v1564_v7, %v1475_v10  ;;  %v5858_v30 = vpop.f32.mrb[19].mxu1  ;;  %v1807_v7 = vpop.permute.xlu0 %1806 }
 0x41a   : > { %v1723_v31 = vpop.f32.mrb[20].mxu1 }
 0x41b   : > { %v1737_v32 = vadd.f32 %v1723_v31, %v1555_v24  ;;  %v5880_v33 = vpop.f32.mrb[21].mxu1  ;;  %v1820_v24 = vpop.permute.xlu1 %1819 }
 0x41d   : > { %v1755_v36 = vadd.f32 %v1743_v34, %v1737_v32 }
 0x41e   : > { %v1728_v35 = vpop.f32.mrb[22].mxu1 }
 0x41f   : > { %v1738_v37 = vadd.f32 %v1728_v35, %v1560_v27  ;;  %v5883_v38 = vpop.f32.mrb[23].mxu1  ;;  %v1758_v43 = vsel %vm809_vm2, %v1755_v36, 0.0  ;;  %v1825_v32 = vpop.permute.xlu1 %1824 }
 0x421   : > { %v1756_v40 = vadd.f32 %v1748_v39, %v1738_v37 }
 0x422   : > { %v1733_v42 = vpop.f32.mrb[24].mxu1 }
 0x423   : > { %v1759_v44 = vsel %vm809_vm2, %v1756_v40, 0.0  ;;  %v1739_v45 = vadd.f32 %v1733_v42, %v1565_v29  ;;  %v5886_v47 = vpop.f32.mrb[25].mxu1 }
 0x424   : > { %v1760_v49 = vadd.f32 %v1759_v44, %v1758_v43  ;;  %v1276_v43 = vld [vmem:[%s7724_s5 + $0x60] sm:$0xff]  ;;  %v1278_v47 = vld [vmem:[%s7724_s5 + $0x70] sm:$0xff] }
 0x425   : > { %v1757_v50 = vadd.f32 %v1753_v48, %v1739_v45  ;;  %v1277_v45 = vld [vmem:[%s7724_s5 + $0x68] sm:$0xff] }
 0x427   : > { %v1761_v51 = vsel %vm809_vm2, %v1757_v50, 0.0 }
 0x428   : > { %v1762_v53 = vadd.f32 %v1761_v51, %v1760_v49 }
 0x42a   : > { %v1763_v54 = vrot.slane %v1762_v53, 4 }
 0x42c   : > { %v1764_v55 = vadd.f32 %v1763_v54, %v1762_v53 }
 0x42e   : > { %v1765_v56 = vrot.slane %v1764_v55, 2 }
 0x430   : > { %v1766_v57 = vadd.f32 %v1765_v56, %v1764_v55 }
 0x432   : > { %v1767_v58 = vrot.slane %v1766_v57, 1 }
 0x434   : > { %v1768_v59 = vadd.f32 %v1767_v58, %v1766_v57  ;;  %v1273_v58 = vld [vmem:[%s7724_s5 + $0x48] sm:$0xff] }
 0x436   : > { %v1770_v60 = vmul.f32 0.041666668, %v1768_v59 }
 0x438   : > { %v1771_v61 = vsub.f32 %v1755_v36, %v1770_v60  ;;  %v1772_v62 = vsub.f32 %v1756_v40, %v1770_v60  ;;  %v1773_v63 = vsub.f32 %v1757_v50, %v1770_v60 }
 0x43a   : > { %v1774_v2 = vmul.f32 %v1771_v61, %v1771_v61  ;;  %v1775_v3 = vmul.f32 %v1772_v62, %v1772_v62  ;;  %v1776_v4 = vmul.f32 %v1773_v63, %v1773_v63 }
 0x43c   : > { %v1777_v6 = vsel %vm809_vm2, %v1774_v2, 0.0  ;;  %v1778_v8 = vsel %vm809_vm2, %v1775_v3, 0.0  ;;  %v1780_v10 = vsel %vm809_vm2, %v1776_v4, 0.0  ;;  %v1275_v2 = vld [vmem:[%s7724_s5 + $0x58] sm:$0xff] }
 0x43d   : > { %v1779_v9 = vadd.f32 %v1778_v8, %v1777_v6 }
 0x43f   : > { %v1781_v12 = vadd.f32 %v1780_v10, %v1779_v9 }
 0x441   : > { %v1782_v13 = vrot.slane %v1781_v12, 4 }
 0x443   : > { %v1783_v14 = vadd.f32 %v1782_v13, %v1781_v12  ;;  %v1279_v13 = vld [vmem:[%s7724_s5 + $0x78] sm:$0xff] }
 0x445   : > { %v1784_v15 = vrot.slane %v1783_v14, 2 }
 0x447   : > { %v1785_v16 = vadd.f32 %v1784_v15, %v1783_v14  ;;  %v1280_v14 = vld [vmem:[%s7724_s5 + $0x80] sm:$0xff]  ;;  %v1281_v15 = vld [vmem:[%s7724_s5 + $0x88] sm:$0xff] }
 0x449   : > { %v1786_v17 = vrot.slane %v1785_v16, 1 }
 0x44b   : > { %v1787_v18 = vadd.f32 %v1786_v17, %v1785_v16  ;;  %v787_v16 = vld [vmem:[%s7717_s15] sm:$0xff]  ;;  %v788_v17 = vld [vmem:[%s7717_s15 + $0x8] sm:$0xff] }
 0x44d   : > { %v1788_v19 = vmul.f32 0.041666668, %v1787_v18  ;;  %v7320_v18 = vpack.c.bf16 %v788_v17, %v787_v16 }
 0x44f   : > { %v1789_v20 = vadd.f32 1e-05, %v1788_v19 }
 0x451   : > { %6457 = vrsqrt.f32 %v1789_v20 }
 0x45b   : > { %v6458_v25 = vpop.eup %6457 }
 0x45c   : > { %v1791_v26 = vmul.f32 %v6458_v25, %v1771_v61  ;;  %v1792_v27 = vmul.f32 %v6458_v25, %v1772_v62  ;;  %v1793_v28 = vmul.f32 %v6458_v25, %v1773_v63  ;;  %v1274_v61 = vld [vmem:[%s7724_s5 + $0x50] sm:$0xff] }
 0x45e   : > { %v1811_v29 = vmul.f32 %v1807_v7, %v1793_v28  ;;  %v1809_v30 = vmul.f32 %v1797_v21, %v1791_v26  ;;  %v1810_v31 = vmul.f32 %v1802_v22, %v1792_v27 }
 0x460   : > { %v1827_v33 = vadd.f32 %v1815_v23, %v1809_v30  ;;  %v1828_v34 = vadd.f32 %v1820_v24, %v1810_v31  ;;  %v1829_v35 = vadd.f32 %v1825_v32, %v1811_v29  ;;  %v2281_v30 = vpop.permute.xlu0 %2280 }
 0x462   : > { %vm1830_vm7 = vcmp.ge.f32.partialorder %v1827_v33, 0.0  ;;  %v1833_v36 = vmul.f32 0.2, %v1827_v33  ;;  %vm1831_vm8 = vcmp.ge.f32.partialorder %v1828_v34, 0.0  ;;  %v1834_v37 = vmul.f32 0.2, %v1828_v34 }
 0x463   : > { %v1835_v42 = vmul.f32 0.2, %v1829_v35  ;;  %vm1832_vm9 = vcmp.ge.f32.partialorder %v1829_v35, 0.0 }
 0x464   : > { %v1836_v38 = vsel %vm1830_vm7, %v1827_v33, %v1833_v36  ;;  %v1837_v39 = vsel %vm1831_vm8, %v1828_v34, %v1834_v37 }
 0x465   : > { %5892 = vmatmul.mubr.msk.f32.vlgmr.msra.gmra.mrb[26].mxu0 %vm809_vm2, %v1836_v38  ;;  %v6281_v40 = vpack.c.bf16 %v1837_v39, %v1836_v38  ;;  %v1838_v44 = vsel %vm1832_vm9, %v1829_v35, %v1835_v42  ;;  %v2286_v35 = vpop.permute.xlu1 %2285 }
 0x466   : > { %5894 = vmatprep.mubr.msk.f32.mxu0 %vm6614_vm0, %v6615_v1 }
 0x467   : > { %6282 = vmatpush3.bf16.msra.mxu1 %v6281_v40 }
 0x468   : > { %5904 = vmatprep.subr.mxu1 %v6615_v1 }
 0x469   : > { %5895 = vmatmul.mubr.msk.f32.gmra.mrb[28].mxu0 %vm809_vm2, %v1837_v39  ;;  %v2334_v17 = vpop.permute.xlu1 %2333 }
 0x46a   : > { %5897 = vmatprep.mubr.msk.f32.mxu0 %vm6614_vm0, %v6615_v1 }
 0x46b   : > { %5905 = vmatpush3.msra.mxu1 %v1838_v44 }
 0x46c   : > { %5907 = vmatmul.mubr.msk.f32.vlgmr.msra.gmra.mrb[26].mxu1 %vm1389_vm6, %v1276_v43  ;;  %6286 = vmatprep.subr.bf16.mxu1 %v6613_v0  ;;  %v2291_v43 = vpop.permute.xlu0 %2290 }
 0x46d   : > { %5898 = vmatmul.mubr.msk.f32.gmra.mrb[30].mxu0 %vm809_vm2, %v1838_v44  ;;  %5909 = vmatprep.mubr.msk.f32.mxu1 %vm6614_vm0, %v6615_v1 }
 0x46e   : > { %6288 = vmatpush3.bf16.msra.mxu1 %v6920_v11  ;;  %5921 = vmatprep.mubr.msk.f32.mxu0 %vm6614_vm0, %v6615_v1 }
 0x46f   : > { %6292 = vmatprep.subr.bf16.mxu1 %v6613_v0 }
 0x470   : > { %5910 = vmatmul.mubr.msk.f32.gmra.mrb[28].mxu1 %vm1389_vm6, %v1277_v45 }
 0x471   : > { %5912 = vmatprep.mubr.msk.f32.mxu1 %vm6614_vm0, %v6615_v1 }
 0x474   : > { %5913 = vmatmul.mubr.msk.f32.gmra.mrb[30].mxu1 %vm1389_vm6, %v1278_v47 }
 0x475   : > { %5934 = vmatprep.mubr.msk.f32.mxu1 %vm6614_vm0, %v6615_v1 }
 0x478   : > { %5935 = vmatmul.mubr.msk.f32.vlgmr.msra.gmra.mrb[32].mxu1 %vm809_vm2, %v1836_v38 }
 0x479   : > { %5937 = vmatprep.mubr.msk.f32.mxu1 %vm6614_vm0, %v6615_v1  ;;  %6294 = vmatpush3.bf16.msra.mxu1 %v7320_v18 }
 0x47a   : > { %6298 = vmatprep.subr.bf16.mxu1 %v6613_v0 }
 0x47c   : > { %5938 = vmatmul.mubr.msk.f32.gmra.mrb[34].mxu1 %vm809_vm2, %v1837_v39 }
 0x47d   : > { %5940 = vmatprep.mubr.msk.f32.mxu1 %vm6614_vm0, %v6615_v1 }
 0x480   : > { %5941 = vmatmul.mubr.msk.f32.gmra.mrb[36].mxu1 %vm809_vm2, %v1838_v44 }
 0x481   : > { %5962 = vmatprep.mubr.msk.f32.mxu1 %vm6614_vm0, %v6615_v1 }
 0x538   : > { %v1914_v48 = vpop.f32.mrb[26].mxu0 }
 0x539   : > { %v5893_v49 = vpop.f32.mrb[27].mxu0 }
 0x53c   : > { %v1919_v50 = vpop.f32.mrb[28].mxu0 }
 0x53d   : > { %v6284_v51 = vpack.c.bf16 %v1919_v50, %v1914_v48  ;;  %v5896_v53 = vpop.f32.mrb[29].mxu0 }
 0x53f   : > { %v2003_v54 = vpop.f32.mrb[26].mxu1  ;;  %6285 = vmatpush3.bf16.msra.mxu0 %v6284_v51 }
 0x540   : > { %v1924_v55 = vpop.f32.mrb[30].mxu0  ;;  %v5908_v56 = vpop.f32.mrb[27].mxu1  ;;  %5919 = vmatprep.subr.mxu0 %v6615_v1 }
 0x541   : > { %v5899_v57 = vpop.f32.mrb[31].mxu0 }
 0x543   : > { %v2008_v59 = vpop.f32.mrb[28].mxu1  ;;  %5920 = vmatpush3.msra.mxu0 %v1924_v55 }
 0x544   : > { %v5911_v60 = vpop.f32.mrb[29].mxu1  ;;  %5922 = vmatmul.mubr.msk.f32.vlgmr.msra.gmra.mrb[32].mxu0 %vm1389_vm6, %v1273_v58  ;;  %6289 = vmatprep.subr.bf16.mxu0 %v6613_v0 }
 0x545   : > { %5924 = vmatprep.mubr.msk.f32.mxu0 %vm6614_vm0, %v6615_v1 }
 0x547   : > { %v2013_v62 = vpop.f32.mrb[30].mxu1 }
 0x548   : > { %v5914_v63 = vpop.f32.mrb[31].mxu1  ;;  %5925 = vmatmul.mubr.msk.f32.gmra.mrb[34].mxu0 %vm1389_vm6, %v1274_v61 }
 0x549   : > { %5927 = vmatprep.mubr.msk.f32.mxu0 %vm6614_vm0, %v6615_v1 }
 0x54b   : > { %v2172_v3 = vpop.f32.mrb[32].mxu1 }
 0x54c   : > { %5928 = vmatmul.mubr.msk.f32.gmra.mrb[36].mxu0 %vm1389_vm6, %v1275_v2  ;;  %v5936_v4 = vpop.f32.mrb[33].mxu1 }
 0x54d   : > { %5949 = vmatprep.mubr.msk.f32.mxu0 %vm6614_vm0, %v6615_v1 }
 0x54f   : > { %v2177_v6 = vpop.f32.mrb[34].mxu1 }
 0x550   : > { %v6290_v8 = vpack.c.bf16 %v2177_v6, %v2172_v3  ;;  %v5939_v9 = vpop.f32.mrb[35].mxu1 }
 0x552   : > { %6291 = vmatpush3.bf16.msra.mxu0 %v6290_v8 }
 0x553   : > { %v2182_v10 = vpop.f32.mrb[36].mxu1  ;;  %5947 = vmatprep.subr.mxu0 %v6615_v1 }
 0x554   : > { %v5942_v12 = vpop.f32.mrb[37].mxu1 }
 0x556   : > { %5948 = vmatpush3.msra.mxu0 %v2182_v10 }
 0x557   : > { %5950 = vmatmul.mubr.msk.f32.vlgmr.msra.gmra.mrb[38].mxu0 %vm1389_vm6, %v1279_v13  ;;  %6295 = vmatprep.subr.bf16.mxu0 %v6613_v0 }
 0x558   : > { %5952 = vmatprep.mubr.msk.f32.mxu0 %vm6614_vm0, %v6615_v1 }
 0x55b   : > { %5953 = vmatmul.mubr.msk.f32.gmra.mrb[40].mxu0 %vm1389_vm6, %v1280_v14 }
 0x55c   : > { %5955 = vmatprep.mubr.msk.f32.mxu0 %vm6614_vm0, %v6615_v1 }
 0x55f   : > { %5956 = vmatmul.mubr.msk.f32.gmra.mrb[42].mxu0 %vm1389_vm6, %v1281_v15 }
 0x560   : > { %5977 = vmatprep.mubr.msk.f32.mxu0 %vm6614_vm0, %v6615_v1 }
 0x617   : > { %v2092_v19 = vpop.f32.mrb[32].mxu0 }
 0x618   : > { %v2093_v20 = vadd.f32 %v2092_v19, %v2003_v54  ;;  %v5923_v21 = vpop.f32.mrb[33].mxu0  ;;  %v2339_v19 = vpop.permute.xlu0 %2338 }
 0x61b   : > { %v2097_v22 = vpop.f32.mrb[34].mxu0 }
 0x61c   : > { %v2098_v23 = vadd.f32 %v2097_v22, %v2008_v59  ;;  %v5926_v24 = vpop.f32.mrb[35].mxu0  ;;  %v2357_v21 = vpop.permute.xlu0 %2356 }
 0x61f   : > { %v2102_v25 = vpop.f32.mrb[36].mxu0 }
 0x620   : > { %v2103_v26 = vadd.f32 %v2102_v25, %v2013_v62  ;;  %v5929_v27 = vpop.f32.mrb[37].mxu0 }
 0x62a   : > { %v2261_v28 = vpop.f32.mrb[38].mxu0 }
 0x62b   : > { %v2275_v7 = vadd.f32 %v2261_v28, %v2093_v20  ;;  %v5951_v29 = vpop.f32.mrb[39].mxu0  ;;  %v2352_v20 = vpop.permute.xlu1 %2351 }
 0x62c   : > { %v2362_v29 = vpop.permute.xlu0 %2361 }
 0x62d   : > { %v2293_v32 = vadd.f32 %v2281_v30, %v2275_v7 }
 0x62e   : > { %v2266_v31 = vpop.f32.mrb[40].mxu0 }
 0x62f   : > { %v2276_v33 = vadd.f32 %v2266_v31, %v2098_v23  ;;  %v5954_v34 = vpop.f32.mrb[41].mxu0  ;;  %v2296_v38 = vsel %vm809_vm2, %v2293_v32, 0.0 }
 0x631   : > { %v2294_v36 = vadd.f32 %v2286_v35, %v2276_v33 }
 0x632   : > { %v2271_v37 = vpop.f32.mrb[42].mxu0 }
 0x633   : > { %v2297_v39 = vsel %vm809_vm2, %v2294_v36, 0.0  ;;  %v2277_v40 = vadd.f32 %v2271_v37, %v2103_v26  ;;  %v5957_v42 = vpop.f32.mrb[43].mxu0  ;;  %v2344_v26 = vpop.permute.xlu1 %2343 }
 0x634   : > { %v2298_v44 = vadd.f32 %v2297_v39, %v2296_v38 }
 0x635   : > { %v2295_v45 = vadd.f32 %v2291_v43, %v2277_v40 }
 0x637   : > { %v2299_v47 = vsel %vm809_vm2, %v2295_v45, 0.0 }
 0x638   : > { %v2300_v48 = vadd.f32 %v2299_v47, %v2298_v44  ;;  %v2382_v44 = vld [vmem:[#allocation4 + $0x18] sm:$0xff]  ;;  %v2384_v47 = vld [vmem:[#allocation4 + $0x28] sm:$0xff] }
 0x63a   : > { %v2301_v49 = vrot.slane %v2300_v48, 4 }
 0x63c   : > { %v2302_v50 = vadd.f32 %v2301_v49, %v2300_v48 }
 0x63e   : > { %v2303_v51 = vrot.slane %v2302_v50, 2 }
 0x640   : > { %v2304_v53 = vadd.f32 %v2303_v51, %v2302_v50 }
 0x642   : > { %v2305_v54 = vrot.slane %v2304_v53, 1 }
 0x644   : > { %v2306_v55 = vadd.f32 %v2305_v54, %v2304_v53 }
 0x646   : > { %v2307_v56 = vmul.f32 0.041666668, %v2306_v55 }
 0x648   : > { %v2308_v57 = vsub.f32 %v2293_v32, %v2307_v56  ;;  %v2309_v58 = vsub.f32 %v2294_v36, %v2307_v56  ;;  %v2310_v59 = vsub.f32 %v2295_v45, %v2307_v56 }
 0x64a   : > { %v2311_v60 = vmul.f32 %v2308_v57, %v2308_v57  ;;  %v2312_v61 = vmul.f32 %v2309_v58, %v2309_v58  ;;  %v2313_v62 = vmul.f32 %v2310_v59, %v2310_v59 }
 0x64c   : > { %v2314_v63 = vsel %vm809_vm2, %v2311_v60, 0.0  ;;  %v2315_v2 = vsel %vm809_vm2, %v2312_v61, 0.0  ;;  %v2317_v4 = vsel %vm809_vm2, %v2313_v62, 0.0  ;;  %v2380_v60 = vld [vmem:[#allocation4 + $0x8] sm:$0xff] }
 0x64d   : > { %v2316_v3 = vadd.f32 %v2315_v2, %v2314_v63  ;;  %v2381_v63 = vld [vmem:[#allocation4 + $0x10] sm:$0xff] }
 0x64f   : > { %v2318_v6 = vadd.f32 %v2317_v4, %v2316_v3 }
 0x651   : > { %v2319_v8 = vrot.slane %v2318_v6, 4 }
 0x653   : > { %v2320_v9 = vadd.f32 %v2319_v8, %v2318_v6 }
 0x655   : > { %v2321_v10 = vrot.slane %v2320_v9, 2 }
 0x657   : > { %v2322_v12 = vadd.f32 %v2321_v10, %v2320_v9 }
 0x659   : > { %v2323_v13 = vrot.slane %v2322_v12, 1 }
 0x65b   : > { %v2324_v14 = vadd.f32 %v2323_v13, %v2322_v12  ;;  %v2385_v12 = vld [vmem:[#allocation4 + $0x30] sm:$0xff]  ;;  %v2386_v13 = vld [vmem:[#allocation4 + $0x38] sm:$0xff] }
 0x65d   : > { %v2325_v15 = vmul.f32 0.041666668, %v2324_v14  ;;  %v2387_v14 = vld [vmem:[#allocation4 + $0x40] sm:$0xff] }
 0x65f   : > { %v2326_v16 = vadd.f32 1e-05, %v2325_v15 }
 0x661   : > { %6459 = vrsqrt.f32 %v2326_v16 }
 0x66b   : > { %v6460_v22 = vpop.eup %6459 }
 0x66c   : > { %v2328_v23 = vmul.f32 %v6460_v22, %v2308_v57  ;;  %v2329_v24 = vmul.f32 %v6460_v22, %v2309_v58  ;;  %v2330_v25 = vmul.f32 %v6460_v22, %v2310_v59  ;;  %v2379_v57 = vld [vmem:[#allocation4] sm:$0xff] }
 0x66e   : > { %v2346_v27 = vmul.f32 %v2334_v17, %v2328_v23  ;;  %v2347_v28 = vmul.f32 %v2339_v19, %v2329_v24  ;;  %v2348_v7 = vmul.f32 %v2344_v26, %v2330_v25 }
 0x670   : > { %v2364_v30 = vadd.f32 %v2352_v20, %v2346_v27  ;;  %v2365_v31 = vadd.f32 %v2357_v21, %v2347_v28  ;;  %v2366_v32 = vadd.f32 %v2362_v29, %v2348_v7  ;;  %v2857_v28 = vpop.permute.xlu1 %2856 }
 0x672   : > { %vm2367_vm10 = vcmp.ge.f32.partialorder %v2364_v30, 0.0  ;;  %v2370_v33 = vmul.f32 0.2, %v2364_v30  ;;  %vm2368_vm11 = vcmp.ge.f32.partialorder %v2365_v31, 0.0  ;;  %v2371_v34 = vmul.f32 0.2, %v2365_v31 }
 0x673   : > { %v2372_v37 = vmul.f32 0.2, %v2366_v32  ;;  %vm2369_vm12 = vcmp.ge.f32.partialorder %v2366_v32, 0.0 }
 0x674   : > { %v2373_v35 = vsel %vm2367_vm10, %v2364_v30, %v2370_v33  ;;  %v2374_v36 = vsel %vm2368_vm11, %v2365_v31, %v2371_v34  ;;  %vm4994_vm10 = vcmask 64512  }
 0x675   : > { %v7331_v38 = vadd.f32 %v2373_v35, %v7131_v41  ;;  %v7334_v39 = vadd.f32 %v2374_v36, %v7137_v46  ;;  %v2375_v42 = vsel %vm2369_vm12, %v2366_v32, %v2372_v37  ;;  %v793_v41 = vld [vmem:[%s7717_s15 + $0x40] sm:$0xff]  ;;  %v794_v46 = vld [vmem:[%s7717_s15 + $0x48] sm:$0xff]  ;;  %v2862_v32 = vpop.permute.xlu0 %2861 }
 0x676   : > { %v7352_v43 = vadd.f32 %v2375_v42, %v7145_v52  ;;  %v7356_v45 = vpack.c.bf16 %v794_v46, %v793_v41  ;;  %v2383_v52 = vld [vmem:[#allocation4 + $0x20] sm:$0xff]  ;;  %v2867_v42 = vpop.permute.xlu1 %2866 }
 0x677   : > { %5963 = vmatmul.mubr.msk.f32.vlgmr.msra.gmra.mrb[38].mxu1 %vm809_vm2, %v7331_v38  ;;  %v6296_v40 = vpack.c.bf16 %v7334_v39, %v7331_v38 }
 0x678   : > { %5965 = vmatprep.mubr.msk.f32.mxu1 %vm6614_vm0, %v6615_v1 }
 0x679   : > { %6297 = vmatpush3.bf16.msra.mxu0 %v6296_v40 }
 0x67a   : > { %5975 = vmatprep.subr.mxu0 %v6615_v1 }
 0x67b   : > { %5966 = vmatmul.mubr.msk.f32.gmra.mrb[40].mxu1 %vm809_vm2, %v7334_v39 }
 0x67c   : > { %5968 = vmatprep.mubr.msk.f32.mxu1 %vm6614_vm0, %v6615_v1 }
 0x67d   : > { %5976 = vmatpush3.msra.mxu0 %v7352_v43 }
 0x67e   : > { %5978 = vmatmul.mubr.msk.f32.vlgmr.msra.gmra.mrb[44].mxu0 %vm1389_vm6, %v2382_v44  ;;  %6301 = vmatprep.subr.bf16.mxu0 %v6613_v0 }
 0x67f   : > { %5969 = vmatmul.mubr.msk.f32.gmra.mrb[42].mxu1 %vm809_vm2, %v7352_v43  ;;  %5980 = vmatprep.mubr.msk.f32.mxu0 %vm6614_vm0, %v6615_v1 }
 0x680   : > { %6303 = vmatpush3.bf16.msra.mxu0 %v7356_v45  ;;  %5992 = vmatprep.mubr.msk.f32.mxu1 %vm6614_vm0, %v6615_v1 }
 0x681   : > { %6307 = vmatprep.subr.bf16.mxu0 %v6613_v0 }
 0x682   : > { %5981 = vmatmul.mubr.msk.f32.gmra.mrb[46].mxu0 %vm1389_vm6, %v2383_v52 }
 0x683   : > { %5983 = vmatprep.mubr.msk.f32.mxu0 %vm6614_vm0, %v6615_v1 }
 0x686   : > { %5984 = vmatmul.mubr.msk.f32.gmra.mrb[48].mxu0 %vm1389_vm6, %v2384_v47 }
 0x687   : > { %6005 = vmatprep.mubr.msk.f32.mxu0 %vm6614_vm0, %v6615_v1 }
 0x68a   : > { %6006 = vmatmul.mubr.msk.f32.vlgmr.msra.gmra.mrb[50].mxu0 %vm809_vm2, %v7331_v38 }
 0x68b   : > { %6008 = vmatprep.mubr.msk.f32.mxu0 %vm6614_vm0, %v6615_v1  ;;  %6309 = vmatpush3.bf16.msra.mxu0 %v7320_v18 }
 0x68c   : > { %6313 = vmatprep.subr.bf16.mxu0 %v6613_v0 }
 0x68e   : > { %6009 = vmatmul.mubr.msk.f32.gmra.mrb[52].mxu0 %vm809_vm2, %v7334_v39 }
 0x68f   : > { %6011 = vmatprep.mubr.msk.f32.mxu0 %vm6614_vm0, %v6615_v1 }
 0x692   : > { %6012 = vmatmul.mubr.msk.f32.gmra.mrb[54].mxu0 %vm809_vm2, %v7352_v43 }
 0x693   : > { %6033 = vmatprep.mubr.msk.f32.mxu0 %vm6614_vm0, %v6615_v1 }
 0x74a   : > { %v2490_v48 = vpop.f32.mrb[38].mxu1 }
 0x74b   : > { %v5964_v49 = vpop.f32.mrb[39].mxu1 }
 0x74e   : > { %v2495_v50 = vpop.f32.mrb[40].mxu1 }
 0x74f   : > { %v6299_v51 = vpack.c.bf16 %v2495_v50, %v2490_v48  ;;  %v5967_v53 = vpop.f32.mrb[41].mxu1 }
 0x751   : > { %v2579_v18 = vpop.f32.mrb[44].mxu0  ;;  %6300 = vmatpush3.bf16.msra.mxu1 %v6299_v51 }
 0x752   : > { %v2500_v54 = vpop.f32.mrb[42].mxu1  ;;  %v5979_v55 = vpop.f32.mrb[45].mxu0  ;;  %5990 = vmatprep.subr.mxu1 %v6615_v1 }
 0x753   : > { %v5970_v56 = vpop.f32.mrb[43].mxu1 }
 0x755   : > { %v2584_v58 = vpop.f32.mrb[46].mxu0  ;;  %5991 = vmatpush3.msra.mxu1 %v2500_v54 }
 0x756   : > { %v5982_v59 = vpop.f32.mrb[47].mxu0  ;;  %5993 = vmatmul.mubr.msk.f32.vlgmr.msra.gmra.mrb[44].mxu1 %vm1389_vm6, %v2379_v57  ;;  %6304 = vmatprep.subr.bf16.mxu1 %v6613_v0 }
 0x757   : > { %5995 = vmatprep.mubr.msk.f32.mxu1 %vm6614_vm0, %v6615_v1 }
 0x759   : > { %v2589_v61 = vpop.f32.mrb[48].mxu0 }
 0x75a   : > { %v5985_v62 = vpop.f32.mrb[49].mxu0  ;;  %5996 = vmatmul.mubr.msk.f32.gmra.mrb[46].mxu1 %vm1389_vm6, %v2380_v60 }
 0x75b   : > { %5998 = vmatprep.mubr.msk.f32.mxu1 %vm6614_vm0, %v6615_v1 }
 0x75d   : > { %v2748_v2 = vpop.f32.mrb[50].mxu0 }
 0x75e   : > { %5999 = vmatmul.mubr.msk.f32.gmra.mrb[48].mxu1 %vm1389_vm6, %v2381_v63  ;;  %v6007_v3 = vpop.f32.mrb[51].mxu0 }
 0x75f   : > { %6020 = vmatprep.mubr.msk.f32.mxu1 %vm6614_vm0, %v6615_v1 }
 0x761   : > { %v2753_v4 = vpop.f32.mrb[52].mxu0 }
 0x762   : > { %v6305_v6 = vpack.c.bf16 %v2753_v4, %v2748_v2  ;;  %v6010_v8 = vpop.f32.mrb[53].mxu0 }
 0x764   : > { %6306 = vmatpush3.bf16.msra.mxu1 %v6305_v6 }
 0x765   : > { %v2758_v9 = vpop.f32.mrb[54].mxu0  ;;  %6018 = vmatprep.subr.mxu1 %v6615_v1 }
 0x766   : > { %v6013_v10 = vpop.f32.mrb[55].mxu0 }
 0x768   : > { %6019 = vmatpush3.msra.mxu1 %v2758_v9 }
 0x769   : > { %6021 = vmatmul.mubr.msk.f32.vlgmr.msra.gmra.mrb[50].mxu1 %vm1389_vm6, %v2385_v12  ;;  %6310 = vmatprep.subr.bf16.mxu1 %v6613_v0 }
 0x76a   : > { %6023 = vmatprep.mubr.msk.f32.mxu1 %vm6614_vm0, %v6615_v1 }
 0x76d   : > { %6024 = vmatmul.mubr.msk.f32.gmra.mrb[52].mxu1 %vm1389_vm6, %v2386_v13 }
 0x76e   : > { %6026 = vmatprep.mubr.msk.f32.mxu1 %vm6614_vm0, %v6615_v1 }
 0x771   : > { %6027 = vmatmul.mubr.msk.f32.gmra.mrb[54].mxu1 %vm1389_vm6, %v2387_v14  ;;  %v2910_v14 = vpop.permute.xlu0 %2909 }
 0x772   : > { %6048 = vmatprep.mubr.msk.f32.mxu1 %vm6614_vm0, %v6615_v1 }
 0x829   : > { %v2668_v15 = vpop.f32.mrb[44].mxu1 }
 0x82a   : > { %v2669_v16 = vadd.f32 %v2668_v15, %v2579_v18  ;;  %v5994_v17 = vpop.f32.mrb[45].mxu1  ;;  %v2915_v15 = vpop.permute.xlu1 %2914 }
 0x82d   : > { %v2673_v19 = vpop.f32.mrb[46].mxu1 }
 0x82e   : > { %v2674_v20 = vadd.f32 %v2673_v19, %v2584_v58  ;;  %v5997_v21 = vpop.f32.mrb[47].mxu1  ;;  %v2933_v17 = vpop.permute.xlu1 %2932 }
 0x831   : > { %v2678_v22 = vpop.f32.mrb[48].mxu1 }
 0x832   : > { %v2679_v23 = vadd.f32 %v2678_v22, %v2589_v61  ;;  %v6000_v24 = vpop.f32.mrb[49].mxu1 }
 0x83c   : > { %v2837_v25 = vpop.f32.mrb[50].mxu1 }
 0x83d   : > { %v2851_v26 = vadd.f32 %v2837_v25, %v2669_v16  ;;  %v6022_v27 = vpop.f32.mrb[51].mxu1  ;;  %v2928_v16 = vpop.permute.xlu0 %2927 }
 0x83e   : > { %v2938_v27 = vpop.permute.xlu1 %2937 }
 0x83f   : > { %v2869_v29 = vadd.f32 %v2857_v28, %v2851_v26 }
 0x840   : > { %v2842_v7 = vpop.f32.mrb[52].mxu1 }
 0x841   : > { %v2852_v30 = vadd.f32 %v2842_v7, %v2674_v20  ;;  %v6025_v31 = vpop.f32.mrb[53].mxu1  ;;  %v2872_v35 = vsel %vm809_vm2, %v2869_v29, 0.0 }
 0x843   : > { %v2870_v33 = vadd.f32 %v2862_v32, %v2852_v30 }
 0x844   : > { %v2847_v34 = vpop.f32.mrb[54].mxu1 }
 0x845   : > { %v2873_v36 = vsel %vm809_vm2, %v2870_v33, 0.0  ;;  %v2853_v37 = vadd.f32 %v2847_v34, %v2679_v23  ;;  %v6028_v40 = vpop.f32.mrb[55].mxu1  ;;  %v2920_v23 = vpop.permute.xlu0 %2919 }
 0x846   : > { %v2874_v41 = vadd.f32 %v2873_v36, %v2872_v35  ;;  %v2391_v36 = vld [vmem:[#allocation4 + $0x60] sm:$0xff]  ;;  %v2392_v40 = vld [vmem:[#allocation4 + $0x68] sm:$0xff] }
 0x847   : > { %v2871_v46 = vadd.f32 %v2867_v42, %v2853_v37  ;;  %v2393_v42 = vld [vmem:[#allocation4 + $0x70] sm:$0xff] }
 0x849   : > { %v2875_v44 = vsel %vm809_vm2, %v2871_v46, 0.0 }
 0x84a   : > { %v2876_v52 = vadd.f32 %v2875_v44, %v2874_v41 }
 0x84c   : > { %v2877_v47 = vrot.slane %v2876_v52, 4 }
 0x84e   : > { %v2878_v48 = vadd.f32 %v2877_v47, %v2876_v52 }
 0x850   : > { %v2879_v49 = vrot.slane %v2878_v48, 2 }
 0x852   : > { %v2880_v50 = vadd.f32 %v2879_v49, %v2878_v48 }
 0x854   : > { %v2881_v51 = vrot.slane %v2880_v50, 1 }
 0x856   : > { %v2882_v53 = vadd.f32 %v2881_v51, %v2880_v50  ;;  %v2388_v51 = vld [vmem:[#allocation4 + $0x48] sm:$0xff] }
 0x858   : > { %v2883_v18 = vmul.f32 0.041666668, %v2882_v53 }
 0x85a   : > { %v2884_v54 = vsub.f32 %v2869_v29, %v2883_v18  ;;  %v2885_v55 = vsub.f32 %v2870_v33, %v2883_v18  ;;  %v2886_v56 = vsub.f32 %v2871_v46, %v2883_v18 }
 0x85c   : > { %v2887_v57 = vmul.f32 %v2884_v54, %v2884_v54  ;;  %v2888_v58 = vmul.f32 %v2885_v55, %v2885_v55  ;;  %v2889_v59 = vmul.f32 %v2886_v56, %v2886_v56 }
 0x85e   : > { %v2890_v60 = vsel %vm809_vm2, %v2887_v57, 0.0  ;;  %v2891_v61 = vsel %vm809_vm2, %v2888_v58, 0.0  ;;  %v2893_v63 = vsel %vm809_vm2, %v2889_v59, 0.0  ;;  %v2390_v57 = vld [vmem:[#allocation4 + $0x58] sm:$0xff] }
 0x85f   : > { %v2892_v62 = vadd.f32 %v2891_v61, %v2890_v60 }
 0x861   : > { %v2894_v2 = vadd.f32 %v2893_v63, %v2892_v62 }
 0x863   : > { %v2895_v3 = vrot.slane %v2894_v2, 4 }
 0x865   : > { %v2896_v4 = vadd.f32 %v2895_v3, %v2894_v2  ;;  %v2394_v3 = vld [vmem:[#allocation4 + $0x78] sm:$0xff] }
 0x867   : > { %v2897_v6 = vrot.slane %v2896_v4, 2 }
 0x869   : > { %v2898_v8 = vadd.f32 %v2897_v6, %v2896_v4  ;;  %v2395_v4 = vld [vmem:[#allocation4 + $0x80] sm:$0xff]  ;;  %v2396_v6 = vld [vmem:[#allocation4 + $0x88] sm:$0xff] }
 0x86b   : > { %v2899_v9 = vrot.slane %v2898_v8, 1 }
 0x86d   : > { %v2900_v10 = vadd.f32 %v2899_v9, %v2898_v8 }
 0x86f   : > { %v2901_v12 = vmul.f32 0.041666668, %v2900_v10 }
 0x871   : > { %v2902_v13 = vadd.f32 1e-05, %v2901_v12 }
 0x873   : > { %6461 = vrsqrt.f32 %v2902_v13 }
 0x87d   : > { %v6462_v19 = vpop.eup %6461 }
 0x87e   : > { %v2904_v20 = vmul.f32 %v6462_v19, %v2884_v54  ;;  %v2905_v21 = vmul.f32 %v6462_v19, %v2885_v55  ;;  %v2906_v22 = vmul.f32 %v6462_v19, %v2886_v56  ;;  %v2389_v54 = vld [vmem:[#allocation4 + $0x50] sm:$0xff] }
 0x880   : > { %v2924_v24 = vmul.f32 %v2920_v23, %v2906_v22  ;;  %v2922_v25 = vmul.f32 %v2910_v14, %v2904_v20  ;;  %v2923_v26 = vmul.f32 %v2915_v15, %v2905_v21  ;;  %v3394_v22 = vpop.permute.xlu0 %3393 }
 0x882   : > { %v2940_v28 = vadd.f32 %v2928_v16, %v2922_v25  ;;  %v2941_v7 = vadd.f32 %v2933_v17, %v2923_v26  ;;  %v2942_v29 = vadd.f32 %v2938_v27, %v2924_v24  ;;  %v3399_v27 = vpop.permute.xlu1 %3398 }
 0x884   : > { %vm2943_vm13 = vcmp.ge.f32.partialorder %v2940_v28, 0.0  ;;  %v2946_v30 = vmul.f32 0.2, %v2940_v28  ;;  %vm2944_vm14 = vcmp.ge.f32.partialorder %v2941_v7, 0.0  ;;  %v2947_v31 = vmul.f32 0.2, %v2941_v7 }
 0x885   : > { %v2948_v35 = vmul.f32 0.2, %v2942_v29  ;;  %vm2945_vm15 = vcmp.ge.f32.partialorder %v2942_v29, 0.0 }
 0x886   : > { %v2949_v32 = vsel %vm2943_vm13, %v2940_v28, %v2946_v30  ;;  %v2950_v33 = vsel %vm2944_vm14, %v2941_v7, %v2947_v31 }
 0x887   : > { %6034 = vmatmul.mubr.msk.f32.vlgmr.msra.gmra.mrb[56].mxu0 %vm809_vm2, %v2949_v32  ;;  %v6311_v34 = vpack.c.bf16 %v2950_v33, %v2949_v32  ;;  %v2951_v37 = vsel %vm2945_vm15, %v2942_v29, %v2948_v35 }
 0x888   : > { %6036 = vmatprep.mubr.msk.f32.mxu0 %vm6614_vm0, %v6615_v1 }
 0x889   : > { %6312 = vmatpush3.bf16.msra.mxu1 %v6311_v34 }
 0x88a   : > { %6046 = vmatprep.subr.mxu1 %v6615_v1 }
 0x88b   : > { %6037 = vmatmul.mubr.msk.f32.gmra.mrb[58].mxu0 %vm809_vm2, %v2950_v33 }
 0x88c   : > { %6039 = vmatprep.mubr.msk.f32.mxu0 %vm6614_vm0, %v6615_v1 }
 0x88d   : > { %6047 = vmatpush3.msra.mxu1 %v2951_v37 }
 0x88e   : > { %6049 = vmatmul.mubr.msk.f32.vlgmr.msra.gmra.mrb[56].mxu1 %vm1389_vm6, %v2391_v36  ;;  %6316 = vmatprep.subr.bf16.mxu1 %v6613_v0 }
 0x88f   : > { %6040 = vmatmul.mubr.msk.f32.gmra.mrb[60].mxu0 %vm809_vm2, %v2951_v37  ;;  %6051 = vmatprep.mubr.msk.f32.mxu1 %vm6614_vm0, %v6615_v1 }
 0x890   : > { %6318 = vmatpush3.bf16.msra.mxu1 %v7356_v45  ;;  %6063 = vmatprep.mubr.msk.f32.mxu0 %vm6614_vm0, %v6615_v1 }
 0x891   : > { %6322 = vmatprep.subr.bf16.mxu1 %v6613_v0 }
 0x892   : > { %6052 = vmatmul.mubr.msk.f32.gmra.mrb[58].mxu1 %vm1389_vm6, %v2392_v40 }
 0x893   : > { %6054 = vmatprep.mubr.msk.f32.mxu1 %vm6614_vm0, %v6615_v1 }
 0x896   : > { %6055 = vmatmul.mubr.msk.f32.gmra.mrb[60].mxu1 %vm1389_vm6, %v2393_v42 }
 0x897   : > { %6076 = vmatprep.mubr.msk.f32.mxu1 %vm6614_vm0, %v6615_v1 }
 0x89a   : > { %6077 = vmatmul.mubr.msk.f32.vlgmr.msra.gmra.mrb[62].mxu1 %vm809_vm2, %v2949_v32 }
 0x89b   : > { %6079 = vmatprep.mubr.msk.f32.mxu1 %vm6614_vm0, %v6615_v1  ;;  %6324 = vmatpush3.bf16.msra.mxu1 %v6906_v5 }
 0x89c   : > { %6333 = vmatprep.subr.bf16.mxu1 %v6613_v0 }
 0x89e   : > { %6080 = vmatmul.mubr.msk.f32.gmra.mrb[64].mxu1 %vm809_vm2, %v2950_v33  ;;  %v3404_v33 = vpop.permute.xlu0 %3403 }
 0x89f   : > { %6082 = vmatprep.mubr.msk.f32.mxu1 %vm6614_vm0, %v6615_v1 }
 0x8a2   : > { %6083 = vmatmul.mubr.msk.f32.gmra.mrb[66].mxu1 %vm809_vm2, %v2951_v37 }
 0x8a3   : > { %6104 = vmatprep.mubr.msk.f32.mxu1 %vm6614_vm0, %v6615_v1 }
 0x95a   : > { %v3027_v45 = vpop.f32.mrb[56].mxu0 }
 0x95b   : > { %v6035_v41 = vpop.f32.mrb[57].mxu0 }
 0x95e   : > { %v3032_v46 = vpop.f32.mrb[58].mxu0 }
 0x95f   : > { %v6314_v44 = vpack.c.bf16 %v3032_v46, %v3027_v45  ;;  %v6038_v52 = vpop.f32.mrb[59].mxu0 }
 0x961   : > { %v3116_v47 = vpop.f32.mrb[56].mxu1  ;;  %6315 = vmatpush3.bf16.msra.mxu0 %v6314_v44 }
 0x962   : > { %v3037_v48 = vpop.f32.mrb[60].mxu0  ;;  %v6050_v49 = vpop.f32.mrb[57].mxu1  ;;  %6061 = vmatprep.subr.mxu0 %v6615_v1 }
 0x963   : > { %v6041_v50 = vpop.f32.mrb[61].mxu0 }
 0x965   : > { %v3121_v53 = vpop.f32.mrb[58].mxu1  ;;  %6062 = vmatpush3.msra.mxu0 %v3037_v48 }
 0x966   : > { %v6053_v18 = vpop.f32.mrb[59].mxu1  ;;  %6064 = vmatmul.mubr.msk.f32.vlgmr.msra.gmra.mrb[62].mxu0 %vm1389_vm6, %v2388_v51  ;;  %6319 = vmatprep.subr.bf16.mxu0 %v6613_v0 }
 0x967   : > { %6066 = vmatprep.mubr.msk.f32.mxu0 %vm6614_vm0, %v6615_v1 }
 0x969   : > { %v3126_v55 = vpop.f32.mrb[60].mxu1 }
 0x96a   : > { %v6056_v56 = vpop.f32.mrb[61].mxu1  ;;  %6067 = vmatmul.mubr.msk.f32.gmra.mrb[64].mxu0 %vm1389_vm6, %v2389_v54 }
 0x96b   : > { %6069 = vmatprep.mubr.msk.f32.mxu0 %vm6614_vm0, %v6615_v1 }
 0x96d   : > { %v3285_v58 = vpop.f32.mrb[62].mxu1 }
 0x96e   : > { %6070 = vmatmul.mubr.msk.f32.gmra.mrb[66].mxu0 %vm1389_vm6, %v2390_v57  ;;  %v6078_v59 = vpop.f32.mrb[63].mxu1 }
 0x96f   : > { %6091 = vmatprep.mubr.msk.f32.mxu0 %vm6614_vm0, %v6615_v1 }
 0x971   : > { %v3290_v60 = vpop.f32.mrb[64].mxu1 }
 0x972   : > { %v6320_v61 = vpack.c.bf16 %v3290_v60, %v3285_v58  ;;  %v6081_v62 = vpop.f32.mrb[65].mxu1 }
 0x974   : > { %6321 = vmatpush3.bf16.msra.mxu0 %v6320_v61 }
 0x975   : > { %v3295_v63 = vpop.f32.mrb[66].mxu1  ;;  %6089 = vmatprep.subr.mxu0 %v6615_v1 }
 0x976   : > { %v6084_v2 = vpop.f32.mrb[67].mxu1 }
 0x978   : > { %6090 = vmatpush3.msra.mxu0 %v3295_v63 }
 0x979   : > { %6092 = vmatmul.mubr.msk.f32.vlgmr.msra.gmra.mrb[68].mxu0 %vm1389_vm6, %v2394_v3 }
 0x97a   : > { %6094 = vmatprep.mubr.msk.f32.mxu0 %vm6614_vm0, %v6615_v1 }
 0x97d   : > { %6095 = vmatmul.mubr.msk.f32.gmra.mrb[70].mxu0 %vm1389_vm6, %v2395_v4  ;;  %v3447_v4 = vpop.permute.xlu1 %3446 }
 0x97e   : > { %6097 = vmatprep.mubr.msk.f32.mxu0 %vm6614_vm0, %v6615_v1 }
 0x981   : > { %6098 = vmatmul.mubr.msk.f32.gmra.mrb[72].mxu0 %vm1389_vm6, %v2396_v6  ;;  %v3465_v6 = vpop.permute.xlu0 %3464 }
 0xa39   : > { %v3205_v8 = vpop.f32.mrb[62].mxu0 }
 0xa3a   : > { %v3206_v9 = vadd.f32 %v3205_v8, %v3116_v47  ;;  %v6065_v10 = vpop.f32.mrb[63].mxu0  ;;  %v3452_v8 = vpop.permute.xlu1 %3451 }
 0xa3d   : > { %v3210_v12 = vpop.f32.mrb[64].mxu0 }
 0xa3e   : > { %v3211_v13 = vadd.f32 %v3210_v12, %v3121_v53  ;;  %v6068_v14 = vpop.f32.mrb[65].mxu0 }
 0xa41   : > { %v3215_v15 = vpop.f32.mrb[66].mxu0 }
 0xa42   : > { %v3216_v16 = vadd.f32 %v3215_v15, %v3126_v55  ;;  %v6071_v17 = vpop.f32.mrb[67].mxu0  ;;  %v3457_v15 = vpop.permute.xlu1 %3456 }
 0xa4c   : > { %v3374_v19 = vpop.f32.mrb[68].mxu0 }
 0xa4d   : > { %v3388_v20 = vadd.f32 %v3374_v19, %v3206_v9  ;;  %v6093_v21 = vpop.f32.mrb[69].mxu0  ;;  %v3470_v9 = vpop.permute.xlu0 %3469 }
 0xa4f   : > { %v3406_v24 = vadd.f32 %v3394_v22, %v3388_v20 }
 0xa50   : > { %v3379_v23 = vpop.f32.mrb[70].mxu0 }
 0xa51   : > { %v3389_v25 = vadd.f32 %v3379_v23, %v3211_v13  ;;  %v6096_v26 = vpop.f32.mrb[71].mxu0  ;;  %v3409_v29 = vsel %vm809_vm2, %v3406_v24, 0.0  ;;  %v3475_v20 = vpop.permute.xlu0 %3474 }
 0xa53   : > { %v3407_v28 = vadd.f32 %v3399_v27, %v3389_v25 }
 0xa54   : > { %v3384_v7 = vpop.f32.mrb[72].mxu0 }
 0xa55   : > { %v3410_v30 = vsel %vm809_vm2, %v3407_v28, 0.0  ;;  %v3390_v31 = vadd.f32 %v3384_v7, %v3216_v16  ;;  %v6099_v32 = vpop.f32.mrb[73].mxu0 }
 0xa56   : > { %v3411_v34 = vadd.f32 %v3410_v30, %v3409_v29 }
 0xa57   : > { %v3408_v35 = vadd.f32 %v3404_v33, %v3390_v31 }
 0xa59   : > { %v3412_v36 = vsel %vm809_vm2, %v3408_v35, 0.0 }
 0xa5a   : > { %v3413_v37 = vadd.f32 %v3412_v36, %v3411_v34 }
 0xa5c   : > { %v3414_v40 = vrot.slane %v3413_v37, 4 }
 0xa5e   : > { %v3415_v42 = vadd.f32 %v3414_v40, %v3413_v37  ;;  %v3501_v40 = vld [vmem:[#allocation6] sm:$0xff] }
 0xa60   : > { %v3416_v45 = vrot.slane %v3415_v42, 2 }
 0xa62   : > { %v3417_v41 = vadd.f32 %v3416_v45, %v3415_v42 }
 0xa64   : > { %v3418_v46 = vrot.slane %v3417_v41, 1 }
 0xa66   : > { %v3419_v44 = vadd.f32 %v3418_v46, %v3417_v41 }
 0xa68   : > { %v3420_v52 = vmul.f32 0.041666668, %v3419_v44 }
 0xa6a   : > { %v3421_v47 = vsub.f32 %v3406_v24, %v3420_v52  ;;  %v3422_v48 = vsub.f32 %v3407_v28, %v3420_v52  ;;  %v3423_v49 = vsub.f32 %v3408_v35, %v3420_v52 }
 0xa6c   : > { %v3424_v50 = vmul.f32 %v3421_v47, %v3421_v47  ;;  %v3425_v51 = vmul.f32 %v3422_v48, %v3422_v48  ;;  %v3426_v53 = vmul.f32 %v3423_v49, %v3423_v49 }
 0xa6e   : > { %v3427_v18 = vsel %vm809_vm2, %v3424_v50, 0.0  ;;  %v3428_v54 = vsel %vm809_vm2, %v3425_v51, 0.0  ;;  %v3430_v56 = vsel %vm809_vm2, %v3426_v53, 0.0 }
 0xa6f   : > { %v3429_v55 = vadd.f32 %v3428_v54, %v3427_v18 }
 0xa71   : > { %v3431_v57 = vadd.f32 %v3430_v56, %v3429_v55 }
 0xa73   : > { %v3432_v58 = vrot.slane %v3431_v57, 4 }
 0xa75   : > { %v3433_v59 = vadd.f32 %v3432_v58, %v3431_v57  ;;  %v3506_v57 = vld [vmem:[#allocation6 + $0x28] sm:$0xff]  ;;  %v3937_v58 = vld [vmem:[%s7725_s24 + $0x10] sm:$0xff] }
 0xa77   : > { %v3434_v60 = vrot.slane %v3433_v59, 2 }
 0xa79   : > { %v3435_v61 = vadd.f32 %v3434_v60, %v3433_v59  ;;  %v3931_v59 = vpop.permute.xlu0 %3930 }
 0xa7b   : > { %v3436_v62 = vrot.slane %v3435_v61, 1 }
 0xa7d   : > { %v3437_v63 = vadd.f32 %v3436_v62, %v3435_v61  ;;  %v3926_v61 = vpop.permute.xlu1 %3925 }
 0xa7f   : > { %v3438_v2 = vmul.f32 0.041666668, %v3437_v63 }
 0xa81   : > { %v3439_v3 = vadd.f32 1e-05, %v3438_v2 }
 0xa83   : > { %6463 = vrsqrt.f32 %v3439_v3 }
 0xa8d   : > { %v6464_v10 = vpop.eup %6463 }
 0xa8e   : > { %v3441_v12 = vmul.f32 %v6464_v10, %v3421_v47  ;;  %v3442_v13 = vmul.f32 %v6464_v10, %v3422_v48  ;;  %v3443_v14 = vmul.f32 %v6464_v10, %v3423_v49  ;;  %v3502_v48 = vld [vmem:[#allocation6 + $0x8] sm:$0xff]  ;;  %v3505_v49 = vld [vmem:[#allocation6 + $0x20] sm:$0xff] }
 0xa90   : > { %v3459_v16 = vmul.f32 %v3447_v4, %v3441_v12  ;;  %v3460_v17 = vmul.f32 %v3452_v8, %v3442_v13  ;;  %v3461_v19 = vmul.f32 %v3457_v15, %v3443_v14  ;;  %v3938_v4 = vld [vmem:[%s7725_s24 + $0x18] sm:$0xff]  ;;  %v3939_v15 = vld [vmem:[%s7725_s24 + $0x20] sm:$0xff] }
 0xa92   : > { %v3479_v21 = vadd.f32 %v3475_v20, %v3461_v19  ;;  %v3477_v22 = vadd.f32 %v3465_v6, %v3459_v16  ;;  %v3478_v23 = vadd.f32 %v3470_v9, %v3460_v17  ;;  %v3935_v6 = vld [vmem:[%s7725_s24] sm:$0xff]  ;;  %v3940_v16 = vld [vmem:[%s7725_s24 + $0x28] sm:$0xff]  ;;  %v4368_v17 = vpop.permute.xlu0 %4367  ;;  %v4363_v20 = vpop.permute.xlu1 %4362 }
 0xa94   : > { %vm3480_vm1 = vcmp.ge.f32.partialorder %v3477_v22, 0.0  ;;  %v3483_v24 = vmul.f32 0.2, %v3477_v22  ;;  %vm3481_vm3 = vcmp.ge.f32.partialorder %v3478_v23, 0.0  ;;  %v3484_v25 = vmul.f32 0.2, %v3478_v23 }
 0xa95   : > { %vm3482_vm4 = vcmp.ge.f32.partialorder %v3479_v21, 0.0  ;;  %v3485_v26 = vmul.f32 0.2, %v3479_v21 }
 0xa96   : > { %v3486_v27 = vsel %vm3480_vm1, %v3477_v22, %v3483_v24  ;;  %v3487_v28 = vsel %vm3481_vm3, %v3478_v23, %v3484_v25 }
 0xa97   : > { %v3489_v7 = vadd.f32 %v3486_v27, %v7331_v38  ;;  %v3490_v29 = vadd.f32 %v3487_v28, %v7334_v39  ;;  %v3488_v30 = vsel %vm3482_vm4, %v3479_v21, %v3485_v26  ;;  %v3503_v39 = vld [vmem:[#allocation6 + $0x10] sm:$0xff] }
 0xa98   : > { %v3491_v31 = vadd.f32 %v3488_v30, %v7352_v43  ;;  %6119 = vmatprep.mubr.msk.f32.mxu0 %vm1389_vm6, %v3503_v39  ;;  %v3504_v43 = vld [vmem:[#allocation6 + $0x18] sm:$0xff] }
 0xa99   : > { %vm3492_vm5 = vcmp.ge.f32.partialorder %v3489_v7, 0.0  ;;  %v3495_v32 = vmul.f32 0.2, %v3489_v7  ;;  %vm3493_vm7 = vcmp.ge.f32.partialorder %v3490_v29, 0.0  ;;  %v3496_v33 = vmul.f32 0.2, %v3490_v29 }
 0xa9a   : > { %v3497_v36 = vmul.f32 0.2, %v3491_v31  ;;  %vm3494_vm8 = vcmp.ge.f32.partialorder %v3491_v31, 0.0 }
 0xa9b   : > { %v3498_v34 = vsel %vm3492_vm5, %v3489_v7, %v3495_v32  ;;  %v3499_v35 = vsel %vm3493_vm7, %v3490_v29, %v3496_v33  ;;  %vm5261_vm5 = vcmask 7168  }
 0xa9c   : > { %6105 = vmatmul.mubr.msk.f32.vlgmr.msra.gmra.mrb[68].mxu1 %vm809_vm2, %v3498_v34  ;;  %v6325_v37 = vpack.c.bf16 %v3499_v35, %v3498_v34  ;;  %v3500_v38 = vsel %vm3494_vm8, %v3491_v31, %v3497_v36 }
 0xa9d   : > { %6107 = vmatprep.mubr.msk.f32.mxu1 %vm6614_vm0, %v6615_v1  ;;  %6335 = vmatpush3.bf16.msra.mxu1 %v6920_v11 }
 0xa9e   : > { %6326 = vmatprep.subr.bf16.mxu0 %v6325_v37  ;;  %6341 = vmatprep.subr.bf16.mxu1 %v6906_v5 }
 0xa9f   : > { %6328 = vmatpush3.bf16.msra.mxu0 %v6325_v37 }
 0xaa0   : > { %6108 = vmatmul.mubr.msk.f32.gmra.mrb[70].mxu1 %vm809_vm2, %v3499_v35  ;;  %6117 = vmatprep.subr.mxu0 %v3500_v38 }
 0xaa1   : > { %6110 = vmatprep.mubr.msk.f32.mxu1 %vm6614_vm0, %v6615_v1 }
 0xaa3   : > { %6118 = vmatpush3.msra.mxu0 %v3500_v38 }
 0xaa4   : > { %6111 = vmatmul.mubr.msk.f32.gmra.mrb[72].mxu1 %vm809_vm2, %v3500_v38  ;;  %6120 = vmatmul.mubr.msk.f32.vlgmr.msra.gmra.mrb[74].mxu0 %vm1389_vm6, %v3504_v43 }
 0xaa5   : > { %6135 = vmatprep.mubr.msk.f32.mxu1 %vm6614_vm0, %v6615_v1  ;;  %6128 = vmatprep.mubr.msk.f32.mxu0 %vm1389_vm6, %v3501_v40 }
 0xaa8   : > { %6136 = vmatmul.mubr.msk.f32.vlgmr.msra.gmra.mrb[74].mxu1 %vm809_vm2, %v3498_v34 }
 0xaa9   : > { %6138 = vmatprep.mubr.msk.f32.mxu1 %vm6614_vm0, %v6615_v1  ;;  %6343 = vmatpush3.bf16.msra.mxu1 %v6906_v5 }
 0xaaa   : > { %6353 = vmatprep.subr.bf16.mxu1 %v6920_v11 }
 0xaac   : > { %6139 = vmatmul.mubr.msk.f32.gmra.mrb[76].mxu1 %vm809_vm2, %v3499_v35 }
 0xaad   : > { %6141 = vmatprep.mubr.msk.f32.mxu1 %vm6614_vm0, %v6615_v1 }
 0xab0   : > { %6142 = vmatmul.mubr.msk.f32.gmra.mrb[78].mxu1 %vm809_vm2, %v3500_v38 }
 0xb6f   : > { %v3584_v42 = vpop.f32.mrb[68].mxu1 }
 0xb70   : > { %v6106_v45 = vpop.f32.mrb[69].mxu1 }
 0xb73   : > { %v3589_v41 = vpop.f32.mrb[70].mxu1 }
 0xb74   : > { %v6329_v46 = vpack.c.bf16 %v3589_v41, %v3584_v42  ;;  %v6109_v44 = vpop.f32.mrb[71].mxu1 }
 0xb76   : > { %6330 = vmatprep.subr.bf16.mxu0 %v6329_v46 }
 0xb77   : > { %v3594_v52 = vpop.f32.mrb[72].mxu1  ;;  %6332 = vmatpush3.bf16.msra.mxu0 %v6329_v46 }
 0xb78   : > { %v6112_v47 = vpop.f32.mrb[73].mxu1  ;;  %6126 = vmatprep.subr.mxu0 %v3594_v52 }
 0xb79   : > { %v4404_v47 = vpop.permute.xlu1 %4403 }
 0xb7b   : > { %6127 = vmatpush3.msra.mxu0 %v3594_v52  ;;  %v3826_v50 = vpop.f32.mrb[74].mxu1  ;;  %v4409_v52 = vpop.permute.xlu0 %4408 }
 0xb7c   : > { %v6137_v51 = vpop.f32.mrb[75].mxu1  ;;  %6129 = vmatmul.mubr.msk.f32.vlgmr.msra.gmra.mrb[74].mxu0 %vm1389_vm6, %v3502_v48 }
 0xb7d   : > { %6150 = vmatprep.mubr.msk.f32.mxu0 %vm1389_vm6, %v3505_v49 }
 0xb7f   : > { %v3831_v53 = vpop.f32.mrb[76].mxu1 }
 0xb80   : > { %v6336_v18 = vpack.c.bf16 %v3831_v53, %v3826_v50  ;;  %v6140_v54 = vpop.f32.mrb[77].mxu1 }
 0xb81   : > { %v4416_v54 = vpop.permute.xlu1 %4415 }
 0xb82   : > { %6337 = vmatprep.subr.bf16.mxu0 %v6336_v18 }
 0xb83   : > { %v3836_v55 = vpop.f32.mrb[78].mxu1  ;;  %6339 = vmatpush3.bf16.msra.mxu0 %v6336_v18  ;;  %v4421_v18 = vpop.permute.xlu0 %4420 }
 0xb84   : > { %v6143_v56 = vpop.f32.mrb[79].mxu1  ;;  %6148 = vmatprep.subr.mxu0 %v3836_v55 }
 0xb87   : > { %6149 = vmatpush3.msra.mxu0 %v3836_v55 }
 0xb88   : > { %6151 = vmatmul.mubr.msk.f32.vlgmr.msra.gmra.mrb[74].mxu0 %vm1389_vm6, %v3506_v57 }
 0xb89   : > { %6164 = vmatprep.mubr.msk.f32.mxu0 %vm809_vm2, %v3937_v58 }
 0xc5b   : > { %v6152_v60 = vpop.f32.mrb[74].mxu0 }
 0xc5c   : > { %v7508_v62 = vadd.f32 %v6152_v60, %v3931_v59  ;;  %v3912_v63 = vpop.f32.mrb[75].mxu0 }
 0xc5d   : > { %v7510_v2 = vadd.f32 %v3926_v61, %v3912_v63  ;;  %v3943_v61 = vld [vmem:[%s7725_s24 + $0x40] sm:$0xff] }
 0xc5f   : > { %6157 = vmatprep.mubr.msk.f32.mxu1 %vm809_vm2, %v7510_v2  ;;  %v6344_v3 = vpack.c.bf16 %v7508_v62, %v7510_v2 }
 0xc60   : > { %6158 = vmatmul.mubr.msk.f32.vlgmr.msra.gmra.mrb[80].mxu1 %vm809_vm2, %v7508_v62 }
 0xc61   : > { %6345 = vmatprep.subr.bf16.mxu0 %v6344_v3  ;;  %6355 = vmatpush3.bf16.msra.mxu1 %v6920_v11 }
 0xc62   : > { %6178 = vmatprep.mubr.msk.f32.mxu1 %vm809_vm2, %v7510_v2  ;;  %6347 = vmatpush3.bf16.msra.mxu0 %v6344_v3  ;;  %v3944_v3 = vld [vmem:[%s7725_s24 + $0x48] sm:$0xff] }
 0xc63   : > { %6361 = vmatprep.subr.bf16.mxu1 %v6906_v5 }
 0xc64   : > { %6179 = vmatmul.mubr.msk.f32.vlgmr.msra.gmra.mrb[82].mxu1 %vm809_vm2, %v7508_v62 }
 0xc65   : > { %6363 = vmatpush3.bf16.msra.mxu1 %v6906_v5  ;;  %6165 = vmatmul.mubr.msk.f32.vlgmr.msra.gmra.mrb[76].mxu0 %vm809_vm2, %v3938_v4  ;;  %v3936_v5 = vld [vmem:[%s7725_s24 + $0x8] sm:$0xff]  ;;  %v3941_v4 = vld [vmem:[%s7725_s24 + $0x30] sm:$0xff] }
 0xc66   : > { %6171 = vmatprep.mubr.msk.f32.mxu0 %vm809_vm2, %v3935_v6 }
 0xd33   : > { %v6159_v8 = vpop.f32.mrb[80].mxu1 }
 0xd34   : > { %v4031_v9 = vpop.f32.mrb[81].mxu1 }
 0xd35   : > { %v6348_v10 = vpack.c.bf16 %v6159_v8, %v4031_v9 }
 0xd37   : > { %6349 = vmatprep.subr.bf16.mxu0 %v6348_v10  ;;  %v6180_v12 = vpop.f32.mrb[82].mxu1 }
 0xd38   : > { %6351 = vmatpush3.bf16.msra.mxu0 %v6348_v10  ;;  %v4268_v13 = vpop.f32.mrb[83].mxu1 }
 0xd39   : > { %v6356_v14 = vpack.c.bf16 %v6180_v12, %v4268_v13 }
 0xd3b   : > { %6172 = vmatmul.mubr.msk.f32.vlgmr.msra.gmra.mrb[76].mxu0 %vm809_vm2, %v3936_v5  ;;  %6357 = vmatprep.subr.bf16.mxu0 %v6356_v14  ;;  %v3942_v5 = vld [vmem:[%s7725_s24 + $0x38] sm:$0xff] }
 0xd3c   : > { %6359 = vmatpush3.bf16.msra.mxu0 %v6356_v14  ;;  %6185 = vmatprep.mubr.msk.f32.mxu0 %vm809_vm2, %v3939_v15  ;;  %v3945_v14 = vld [vmem:[%s7725_s24 + $0x50] sm:$0xff]  ;;  %v3946_v15 = vld [vmem:[%s7725_s24 + $0x58] sm:$0xff] }
 0xd3d   : > { %6373 = vmatprep.subr.bf16.mxu0 %v6920_v11 }
 0xd43   : > { %6186 = vmatmul.mubr.msk.f32.vlgmr.msra.gmra.mrb[76].mxu0 %vm809_vm2, %v3940_v16  ;;  %v7588_v16 = vld [vmem:[%s7726_s26] sm:$0xff] }
 0xd44   : > { %6375 = vmatpush3.bf16.msra.mxu0 %v6920_v11 }
 0xd45   : > { %6380 = vmatprep.subr.bf16.mxu0 %v6613_v0 }
 0xe16   : > { %v6187_v19 = vpop.f32.mrb[76].mxu0 }
 0xe17   : > { %v4371_v21 = vadd.f32 %v6187_v19, %v4368_v17  ;;  %v4349_v22 = vpop.f32.mrb[77].mxu0  ;;  %v7593_v17 = vld [vmem:[%s7726_s26 + $0x8] sm:$0xff] }
 0xe18   : > { %v4370_v23 = vadd.f32 %v4363_v20, %v4349_v22  ;;  %v4993_v19 = vmul.f32 %v7593_v17, %v7593_v17  ;;  %v4840_v22 = vpop.permute.xlu0 %4839 }
 0xe19   : > { %v4373_v24 = vsel %vm809_vm2, %v4371_v21, 0.0 }
 0xe1a   : > { %v4372_v25 = vsel %vm809_vm2, %v4370_v23, 0.0 }
 0xe1b   : > { %v4374_v26 = vadd.f32 %v4373_v24, %v4372_v25  ;;  %v4835_v24 = vpop.permute.xlu1 %4834 }
 0xe1d   : > { %v4375_v27 = vrot.slane %v4374_v26, 4 }
 0xe1f   : > { %v4376_v28 = vadd.f32 %v4375_v27, %v4374_v26 }
 0xe21   : > { %v4377_v7 = vrot.slane %v4376_v28, 2 }
 0xe23   : > { %v4378_v29 = vadd.f32 %v4377_v7, %v4376_v28 }
 0xe25   : > { %v4379_v30 = vrot.slane %v4378_v29, 1 }
 0xe27   : > { %v4380_v31 = vadd.f32 %v4379_v30, %v4378_v29 }
 0xe29   : > { %v4382_v11 = vmul.f32 0.0625, %v4380_v31 }
 0xe2b   : > { %v4383_v32 = vsub.f32 %v4370_v23, %v4382_v11  ;;  %v4384_v33 = vsub.f32 %v4371_v21, %v4382_v11  ;;  %v4998_v21 = vsel %vm4994_vm10, %v4993_v19, 0.0 }
 0xe2c   : > { %4999 = vadd.xlane.f32.xlu1 %v4998_v21 }
 0xe2d   : > { %v4385_v34 = vmul.f32 %v4383_v32, %v4383_v32  ;;  %v4386_v35 = vmul.f32 %v4384_v33, %v4384_v33 }
 0xe2f   : > { %v4387_v36 = vsel %vm809_vm2, %v4385_v34, 0.0  ;;  %v4388_v37 = vsel %vm809_vm2, %v4386_v35, 0.0 }
 0xe30   : > { %v4389_v38 = vadd.f32 %v4388_v37, %v4387_v36 }
 0xe32   : > { %v4390_v39 = vrot.slane %v4389_v38, 4 }
 0xe34   : > { %v4391_v43 = vadd.f32 %v4390_v39, %v4389_v38 }
 0xe36   : > { %v4392_v40 = vrot.slane %v4391_v43, 2 }
 0xe38   : > { %v4393_v42 = vadd.f32 %v4392_v40, %v4391_v43 }
 0xe3a   : > { %v4394_v45 = vrot.slane %v4393_v42, 1 }
 0xe3c   : > { %v4395_v41 = vadd.f32 %v4394_v45, %v4393_v42 }
 0xe3e   : > { %v4396_v46 = vmul.f32 0.0625, %v4395_v41 }
 0xe40   : > { %v4397_v44 = vadd.f32 1e-05, %v4396_v46 }
 0xe42   : > { %6465 = vrsqrt.f32 %v4397_v44 }
 0xe4c   : > { %v6466_v48 = vpop.eup %6465 }
 0xe4d   : > { %v4399_v49 = vmul.f32 %v6466_v48, %v4383_v32  ;;  %v4400_v50 = vmul.f32 %v6466_v48, %v4384_v33 }
 0xe4f   : > { %v4411_v51 = vmul.f32 %v4404_v47, %v4399_v49  ;;  %v4412_v53 = vmul.f32 %v4409_v52, %v4400_v50  ;;  %v4880_v50 = vpop.permute.xlu0 %4879 }
 0xe51   : > { %v4423_v55 = vadd.f32 %v4416_v54, %v4411_v51  ;;  %v4424_v56 = vadd.f32 %v4421_v18, %v4412_v53  ;;  %v4875_v51 = vpop.permute.xlu1 %4874 }
 0xe53   : > { %vm4425_vm6 = vcmp.ge.f32.partialorder %v4423_v55, 0.0  ;;  %v4427_v57 = vmul.f32 0.2, %v4423_v55  ;;  %vm4426_vm9 = vcmp.ge.f32.partialorder %v4424_v56, 0.0  ;;  %v4428_v58 = vmul.f32 0.2, %v4424_v56 }
 0xe55   : > { %v4429_v59 = vsel %vm4425_vm6, %v4423_v55, %v4427_v57  ;;  %v4430_v60 = vsel %vm4426_vm9, %v4424_v56, %v4428_v58  ;;  %v4892_v57 = vpop.permute.xlu0 %4891  ;;  %v4887_v58 = vpop.permute.xlu1 %4886 }
 0xe56   : > { %6192 = vmatprep.mubr.msk.f32.mxu1 %vm809_vm2, %v4429_v59  ;;  %6213 = vmatprep.mubr.msk.f32.mxu0 %vm809_vm2, %v4429_v59  ;;  %v6364_v63 = vpack.c.bf16 %v4430_v60, %v4429_v59 }
 0xe57   : > { %6193 = vmatmul.mubr.msk.f32.vlgmr.msra.gmra.mrb[84].mxu1 %vm809_vm2, %v4430_v60  ;;  %6214 = vmatmul.mubr.msk.f32.vlgmr.msra.gmra.mrb[78].mxu0 %vm809_vm2, %v4430_v60 }
 0xe58   : > { %6365 = vmatprep.subr.bf16.mxu1 %v6364_v63  ;;  %6199 = vmatprep.mubr.msk.f32.mxu1 %vm809_vm2, %v3943_v61 }
 0xe59   : > { %6367 = vmatpush3.bf16.msra.mxu1 %v6364_v63  ;;  %6227 = vmatprep.mubr.msk.f32.mxu0 %vm6614_vm0, %v6615_v1 }
 0xe5c   : > { %6200 = vmatmul.mubr.msk.f32.vlgmr.msra.gmra.mrb[86].mxu1 %vm809_vm2, %v3944_v3 }
 0xe5d   : > { %6206 = vmatprep.mubr.msk.f32.mxu1 %vm809_vm2, %v3941_v4 }
 0xf2a   : > { %v6194_v6 = vpop.f32.mrb[84].mxu1  ;;  %v6215_v8 = vpop.f32.mrb[78].mxu0 }
 0xf2b   : > { %v4503_v9 = vpop.f32.mrb[85].mxu1  ;;  %v4740_v10 = vpop.f32.mrb[79].mxu0 }
 0xf2c   : > { %v6368_v12 = vpack.c.bf16 %v6194_v6, %v4503_v9  ;;  %v6376_v13 = vpack.c.bf16 %v6215_v8, %v4740_v10 }
 0xf2e   : > { %6369 = vmatprep.subr.bf16.mxu1 %v6368_v12 }
 0xf2f   : > { %6371 = vmatpush3.bf16.msra.mxu1 %v6368_v12 }
 0xf30   : > { %6377 = vmatprep.subr.bf16.mxu1 %v6376_v13 }
 0xf32   : > { %6207 = vmatmul.mubr.msk.f32.vlgmr.msra.gmra.mrb[86].mxu1 %vm809_vm2, %v3942_v5 }
 0xf33   : > { %6379 = vmatpush3.bf16.msra.mxu1 %v6376_v13  ;;  %6220 = vmatprep.mubr.msk.f32.mxu1 %vm809_vm2, %v3945_v14  ;;  %v4910_v14 = vld [vmem:[#allocation7] sm:$0xff] }
 0xf34   : > { %6383 = vmatprep.subr.bf16.mxu1 %v6613_v0  ;;  %v4992_v0 = vmul.f32 %v7588_v16, %v7588_v16 }
 0xf36   : > { %v4995_v20 = vsel %vm4994_vm10, %v4992_v0, 0.0 }
 0xf37   : > { %4996 = vadd.xlane.f32.xlu0 %v4995_v20 }
 0xf3a   : > { %6221 = vmatmul.mubr.msk.f32.vlgmr.msra.gmra.mrb[86].mxu1 %vm809_vm2, %v3946_v15  ;;  %v4915_v15 = vpop.permute.xlu1 %4914 }
 0xf3b   : > { %6239 = vmatprep.mubr.msk.f32.mxu1 %vm6614_vm0, %v6615_v1 }
 0xf3e   : > { %v5000_v20 = vpop.xlane.xlu1 %4999 }
 0xf3f   : > { %v5002_v21 = vmax.f32 %v5000_v20, 1e-24 }
 0xfc4   : > { %v4997_v0 = vpop.xlane.xlu0 %4996 }
 0xfc5   : > { %v5001_v19 = vmax.f32 %v4997_v0, 1e-24 }
0x100d   : > { %v6222_v23 = vpop.f32.mrb[86].mxu1 }
0x100e   : > { %v4843_v25 = vadd.f32 %v6222_v23, %v4840_v22  ;;  %v4821_v26 = vpop.f32.mrb[87].mxu1 }
0x100f   : > { %v4842_v27 = vadd.f32 %v4835_v24, %v4821_v26 }
0x1010   : > { %v4845_v28 = vsel %vm809_vm2, %v4843_v25, 0.0 }
0x1011   : > { %v4844_v7 = vsel %vm809_vm2, %v4842_v27, 0.0 }
0x1012   : > { %v4846_v29 = vadd.f32 %v4845_v28, %v4844_v7 }
0x1014   : > { %v4847_v30 = vrot.slane %v4846_v29, 4 }
0x1016   : > { %v4848_v31 = vadd.f32 %v4847_v30, %v4846_v29 }
0x1018   : > { %v4849_v11 = vrot.slane %v4848_v31, 2 }
0x101a   : > { %v4850_v32 = vadd.f32 %v4849_v11, %v4848_v31 }
0x101c   : > { %v4851_v33 = vrot.slane %v4850_v32, 1 }
0x101e   : > { %v4852_v34 = vadd.f32 %v4851_v33, %v4850_v32 }
0x1020   : > { %v4853_v35 = vmul.f32 0.0625, %v4852_v34 }
0x1022   : > { %v4854_v36 = vsub.f32 %v4842_v27, %v4853_v35  ;;  %v4855_v37 = vsub.f32 %v4843_v25, %v4853_v35 }
0x1024   : > { %v4856_v38 = vmul.f32 %v4854_v36, %v4854_v36  ;;  %v4857_v39 = vmul.f32 %v4855_v37, %v4855_v37 }
0x1026   : > { %v4858_v43 = vsel %vm809_vm2, %v4856_v38, 0.0  ;;  %v4859_v40 = vsel %vm809_vm2, %v4857_v39, 0.0 }
0x1027   : > { %v4860_v42 = vadd.f32 %v4859_v40, %v4858_v43 }
0x1029   : > { %v4861_v45 = vrot.slane %v4860_v42, 4 }
0x102b   : > { %v4862_v41 = vadd.f32 %v4861_v45, %v4860_v42  ;;  %v5112_v42 = vlaneseq }
0x102d   : > { %v4863_v46 = vrot.slane %v4862_v41, 2 }
0x102f   : > { %v4864_v44 = vadd.f32 %v4863_v46, %v4862_v41  ;;  %v5113_v46 = vshrl.u32 %v5112_v42, 7 }
0x1031   : > { %v4865_v52 = vrot.slane %v4864_v44, 1 }
0x1033   : > { %v4866_v47 = vadd.f32 %v4865_v52, %v4864_v44 }
0x1035   : > { %v4867_v48 = vmul.f32 0.0625, %v4866_v47  ;;  %v5114_v47 = vadd.s32 8, %v5113_v46 }
0x1037   : > { %v4868_v49 = vadd.f32 1e-05, %v4867_v48 }
0x1039   : > { %6467 = vrsqrt.f32 %v4868_v49 }
0x103a   : > { %6469 = vrsqrt.f32 %v5001_v19 }
0x103b   : > { %6471 = vrsqrt.f32 %v5002_v21 }
0x1043   : > { %v6468_v53 = vpop.eup %6467 }
0x1044   : > { %v4870_v18 = vmul.f32 %v6468_v53, %v4854_v36  ;;  %v4871_v54 = vmul.f32 %v6468_v53, %v4855_v37 }
0x1046   : > { %v4882_v55 = vmul.f32 %v4875_v51, %v4870_v18  ;;  %v4883_v56 = vmul.f32 %v4880_v50, %v4871_v54  ;;  %v5115_v50 = vcvt.s32.f32 %v5113_v46  ;;  %v5116_v51 = vcvt.s32.f32 %v5114_v47 }
0x1048   : > { %v4894_v59 = vadd.f32 %v4887_v58, %v4882_v55  ;;  %v4895_v60 = vadd.f32 %v4892_v57, %v4883_v56 }
0x104a   : > { %vm4896_vm0 = vcmp.ge.f32.partialorder %v4894_v59, 0.0  ;;  %v4898_v61 = vmul.f32 0.2, %v4894_v59  ;;  %v4899_v63 = vmul.f32 0.2, %v4895_v60  ;;  %vm4897_vm11 = vcmp.ge.f32.partialorder %v4895_v60, 0.0 }
0x104c   : > { %v4900_v3 = vsel %vm4896_vm0, %v4894_v59, %v4898_v61  ;;  %v4901_v4 = vsel %vm4897_vm11, %v4895_v60, %v4899_v63 }
0x104d   : > { %v4902_v6 = vadd.f32 %v4900_v3, %v7510_v2  ;;  %v4903_v8 = vadd.f32 %v4901_v4, %v7508_v62  ;;  %v6470_v2 = vpop.eup %6469 }
0x104e   : > { %v5005_v62 = vmul.f32 %v6470_v2, %v7588_v16  ;;  %v6472_v22 = vpop.eup %6471 }
0x104f   : > { %vm4904_vm12 = vcmp.ge.f32.partialorder %v4902_v6, 0.0  ;;  %vm4905_vm13 = vcmp.ge.f32.partialorder %v4903_v8, 0.0  ;;  %v4906_v9 = vmul.f32 0.2, %v4902_v6  ;;  %v4907_v10 = vmul.f32 0.2, %v4903_v8 }
0x1050   : > { %5136 = vxpose.xlu0.b32.start [1/2] (short) (narrow) %v5005_v62, 8  ;;  %v5006_v23 = vmul.f32 %v6472_v22, %v7593_v17 }
0x1051   : > { %v4908_v12 = vsel %vm4904_vm12, %v4902_v6, %v4906_v9  ;;  %v4909_v13 = vsel %vm4905_vm13, %v4903_v8, %v4907_v10  ;;  %v6618_v8 = vmov 1.0|1.0  }
0x1052   : > { %v6381_v5 = vpack.c.bf16 %v4909_v13, %v4908_v12 }
0x1054   : > { %6382 = vmatpush3.bf16.msra.mxu0 %v6381_v5  ;;  %5137 = vxpose.xlu0.b32.end [2/2] (short) (narrow) %v5006_v23, 8 }
0x1057   : > { %6228 = vmatmul.mubr.msk.f32.vlgmr.msra.gmra.mrb[80].mxu0 %vm809_vm2, %v4910_v14 }
0x1058   : > { %6232 = vmatprep.mubr.msk.f32.mxu0 %vm4994_vm10, %v5005_v62 }
0x10d0   : > { %v5152_v9 = vpop.trf.xlu0 }
0x112a   : > { %v4986_v24 = vpop.f32.mrb[80].mxu0 }
0x112b   : > { %v4987_v25 = vadd.f32 %v4986_v24, %v4915_v15  ;;  %v6229_v26 = vpop.f32.mrb[81].mxu0 }
0x112d   : > { %v5007_v27 = vmul.f32 %v4987_v25, %v4987_v25 }
0x112f   : > { %v5008_v28 = vsel %vm809_vm2, %v5007_v27, 0.0 }
0x1130   : > { %v5009_v7 = vrot.slane %v5008_v28, 4 }
0x1132   : > { %v5010_v29 = vadd.f32 %v5009_v7, %v5008_v28 }
0x1134   : > { %v5011_v30 = vrot.slane %v5010_v29, 2 }
0x1136   : > { %v5012_v31 = vadd.f32 %v5011_v30, %v5010_v29 }
0x1138   : > { %v5013_v11 = vrot.slane %v5012_v31, 1 }
0x113a   : > { %v5014_v32 = vadd.f32 %v5013_v11, %v5012_v31 }
0x113c   : > { %v5015_v16 = vmax.f32 %v5014_v32, 1e-24 }
0x113e   : > { %6473 = vrsqrt.f32 %v5015_v16 }
0x1148   : > { %v6474_v33 = vpop.eup %6473 }
0x1149   : > { %v5017_v34 = vmul.f32 %v6474_v33, %v4987_v25 }
0x114b   : > { %6230 = vmatprep.subr.mxu0 %v5017_v34 }
0x114c   : > { %6231 = vmatpush3.msra.mxu0 %v5017_v34 }
0x114d   : > { %6233 = vmatmul.mubr.msk.f32.vlgmr.msra.gmra.mrb[82].mxu0 %vm4994_vm10, %v5006_v23 }
0x1220   : > { %v6234_v17 = vpop.f32.mrb[82].mxu0 }
0x1221   : > { %v5100_v35 = vmul.f32 2.0, %v6234_v17  ;;  %v5090_v36 = vpop.f32.mrb[83].mxu0 }
0x1222   : > { %v5099_v37 = vmul.f32 2.0, %v5090_v36 }
0x1223   : > { %v5102_v38 = vsub.f32 2.0, %v5100_v35 }
0x1224   : > { %v5101_v39 = vsub.f32 2.0, %v5099_v37 }
0x1225   : > { %v5104_v43 = vsel %vm809_vm2, %v5102_v38, inf }
0x1226   : > { %v5103_v40 = vsel %vm809_vm2, %v5101_v39, inf }
0x1227   : > { %v5105_v45 = vmin.f32 %v5103_v40, %v5104_v43 }
0x1229   : > { %v5106_v41 = vrot.slane %v5105_v45, 4 }
0x122b   : > { %v5107_v44 = vmin.f32 %v5105_v45, %v5106_v41 }
0x122d   : > { %v5108_v52 = vrot.slane %v5107_v44, 2 }
0x122f   : > { %v5109_v48 = vmin.f32 %v5107_v44, %v5108_v52 }
0x1231   : > { %v5110_v49 = vrot.slane %v5109_v48, 1 }
0x1233   : > { %v5111_v53 = vmin.f32 %v5109_v48, %v5110_v49 }
0x1235   : > { %vm5117_vm14 = vcmp.le.f32.partialorder %v5101_v39, %v5111_v53  ;;  %vm5118_vm15 = vcmp.le.f32.partialorder %v5102_v38, %v5111_v53 }
0x1236   : > { %v5119_v18 = vsel %vm5117_vm14, %v5115_v50, 16.0  ;;  %v5120_v54 = vsel %vm5118_vm15, %v5116_v51, 16.0 }
0x1237   : > { %v5121_v55 = vsel %vm809_vm2, %v5119_v18, inf  ;;  %v5122_v56 = vsel %vm809_vm2, %v5120_v54, inf }
0x1238   : > { %v5123_v57 = vmin.f32 %v5121_v55, %v5122_v56 }
0x123a   : > { %v5124_v58 = vrot.slane %v5123_v57, 4 }
0x123c   : > { %v5125_v59 = vmin.f32 %v5123_v57, %v5124_v58 }
0x123e   : > { %v5126_v60 = vrot.slane %v5125_v59, 2 }
0x1240   : > { %v5127_v61 = vmin.f32 %v5125_v59, %v5126_v60 }
0x1242   : > { %v5128_v63 = vrot.slane %v5127_v61, 1 }
0x1244   : > { %v5129_v3 = vmin.f32 %v5127_v61, %v5128_v63 }
0x1246   : > { %vm7617_vm1 = vcmp.eq.f32.partialorder %v5115_v50, %v5129_v3  ;;  %vm7621_vm3 = vcmp.eq.f32.partialorder %v5116_v51, %v5129_v3 }
0x1247   : > { %vm6384_vm4 = vmpackc.low %vm7621_vm3, %vm7617_vm1  ;;  %v5545_v15 = vsel %vm7617_vm1, 1.0, %v6615_v1  ;;  %v5546_v19 = vsel %vm7621_vm3, 1.0, %v6615_v1 }
0x1248   : > { %6385 = vmatpush3.bf16.msk.msra.mxu1 %vm6384_vm4, %v6618_v8  ;;  %v5255_v0 = vsel %vm809_vm2, %v5545_v15, 0.0  ;;  %v5258_v20 = vsel %vm809_vm2, %v5546_v19, 0.0 }
0x124b   : > { %6240 = vmatmul.mubr.msk.f32.vlgmr.msra.gmra.mrb[88].mxu1 %vm809_vm2, %v5152_v9 }
0x131e   : > { %v5237_v10 = vpop.f32.mrb[88].mxu1 }
0x131f   : > { %5241 = vst.msk [vmem:[%s778_s29] sm:$0xff] %vm809_vm2, %v5237_v10  ;;  %v5242_v12 = vsub.f32 %v5237_v10, %v5017_v34  ;;  %v6241_v13 = vpop.f32.mrb[89].mxu1 }
0x1321   : > { %v5243_v5 = vmul.f32 %v5242_v12, %v5242_v12 }
0x1323   : > { %v5244_v14 = vsel %vm809_vm2, %v5243_v5, 0.0  ;;  %vm5253_vm2 = vcmask 0  }
0x1324   : > { %5245 = vadd.xlane.f32.xlu1 %v5244_v14 }
0x1328   : > { %5256 = vadd.xlane.f32.xlu1 %v5255_v0 }
0x132c   : > { %5259 = vadd.xlane.f32.xlu1 %v5258_v20 }
0x13b1   : > { %v5246_v21 = vpop.xlane.xlu1 %5245 }
0x13b2   : > { %v5247_v2 = vrot.slane %v5246_v21, 4 }
0x13b4   : > { %v5248_v62 = vadd.f32 %v5247_v2, %v5246_v21 }
0x13b5   : > { %v5257_v22 = vpop.xlane.xlu1 %5256 }
0x13b6   : > { %v5249_v23 = vrot.slane %v5248_v62, 2  ;;  %5262 = vst.msk [vmem:[%s786_s20] sm:$0xff] %vm5261_vm5, %v5257_v22 }
0x13b8   : > { %v5250_v24 = vadd.f32 %v5249_v23, %v5248_v62 }
0x13b9   : > { %v5260_v25 = vpop.xlane.xlu1 %5259 }
0x13ba   : > { %v5251_v26 = vrot.slane %v5250_v24, 1  ;;  %5263 = vst.msk [vmem:[%s786_s20 + $0x8] sm:$0xff] %vm5261_vm5, %v5260_v25 }
0x13bc   : > { %v5252_v1 = vadd.f32 %v5251_v26, %v5250_v24 }
0x13be   : > { %5254 = vst.msk [vmem:[%s781_s6] sm:$0x1] %vm5253_vm2, %v5252_v1 }
0x13bf PF: > { %s7734_s7 = sld [smem:[#allocation12_spill]] }
0x13c5   : > { %s37_s4 = sadd.s32 1, %s7734_s7  }
0x13c6   : > { %p34_p6 = scmp.ge.s32.totalorder %s37_s4, 4  }
0x13c8   :  { %36 = sbr.rel (!%p34_p6) target bundleno = 17 (0x11), region = 175 }
0x13cf   :  { %5311 = vsyncpa [#allocation3], 1 }
0x13d0   :  { %5313 = vsyncpa [#allocation3 + $0x1], 1 }
0x13d1   :  { %5314 = vsyncpa [#allocation5], 1 }
0x13d2   :  { %5315 = vsyncpa [#allocation8], 1 }

</bundles_post_ra>
